<compile_context>
chip_gen: v6e
topology: v6e:2x2x1
jax: 0.10.0
libtpu: 0.0.40
codegen_flags: <defaults>
</compile_context>

<pallas_src>
import numpy as np

import jax
import jax.numpy as jnp
from jax.experimental import pallas as pl
from jax.experimental.pallas import tpu as pltpu


def _round_up(v, m):
    return (v + m - 1) // m * m


# ----------------------------------------------------------------------------
# Fused Pallas kernel (grid=())
# ----------------------------------------------------------------------------
def _vae_fused_kernel(x_ref, eps_ref,
                      enc_wih_ref, enc_whh_ref, enc_gib_ref, enc_bhn_ref,
                      dec_wih_ref, dec_whh_ref, dec_gib_ref, dec_bhn_ref,
                      wmu_ref, bmu_ref, wls_ref, bls_ref, wzh_ref, bzh_ref,
                      wout_ref, bout_ref,
                      recon_ref, mu_ref, ls_ref,
                      gi_scr, hs_scr):
    T, Bp, D = x_ref.shape            # x is time-major, batch padded to 8
    Hp = enc_whh_ref.shape[0]         # hidden padded to a multiple of 128
    unroll = min(T, 8)                # bounded unroll (perf review)

    def mxu(a_f32, w_bf16):
        # bf16 x bf16 MXU with f32 accumulation; carries stay f32.
        return jnp.dot(a_f32.astype(jnp.bfloat16), w_bf16,
                       preferred_element_type=jnp.float32)

    def sigmoid(v):
        return 1.0 / (1.0 + jnp.exp(-v))

    def run_gru(wih, whh, gib, bhn, h_init, stash_hidden):
        # --- hoisted input-side gates: ONE big MXU call, time-major scratch --
        # gib already contains b_ih + [b_hh_r, b_hh_z, 0]  (bias folding).
        x2d = x_ref[...].reshape(T * Bp, D)              # tile-preserving
        gi_scr[...] = (mxu(x2d, wih) + gib).reshape(gi_scr.shape)

        bhn_b = jnp.broadcast_to(bhn, (Bp, Hp))          # hoisted broadcast

        def step(t, h):
            gi = gi_scr[t]                               # (Bp, 3*Hp)
            gh = mxu(h, whh)                             # (Bp, 3*Hp)
            # PyTorch GRU gate math (gate order r, z, n); lane-aligned slices.
            r = sigmoid(gi[:, :Hp] + gh[:, :Hp])
            z = sigmoid(gi[:, Hp:2 * Hp] + gh[:, Hp:2 * Hp])
            n = jnp.tanh(gi[:, 2 * Hp:] + r * (gh[:, 2 * Hp:] + bhn_b))
            h_new = n + z * (h - n)                      # == (1-z)*n + z*h
            if stash_hidden:
                hs_scr[t] = h_new
            return h_new

        return jax.lax.fori_loop(0, T, step, h_init, unroll=unroll)

    # ---- encoder recurrence -------------------------------------------------
    h_enc = run_gru(enc_wih_ref[...], enc_whh_ref[...], enc_gib_ref[...],
                    enc_bhn_ref[...], jnp.zeros((Bp, Hp), jnp.float32),
                    stash_hidden=False)

    # ---- latent block: fc_mu / fc_logsigma / reparam / fc_z_to_h ------------
    mu = mxu(h_enc, wmu_ref[...]) + bmu_ref[...]
    ls = mxu(h_enc, wls_ref[...]) + bls_ref[...]
    mu_ref[...] = mu
    ls_ref[...] = ls
    z_lat = mu + eps_ref[...] * jnp.exp(ls)
    h0 = jnp.tanh(mxu(z_lat, wzh_ref[...]) + bzh_ref[...])

    # ---- decoder recurrence (reuses gi_scr -> halves peak gi VMEM) ----------
    run_gru(dec_wih_ref[...], dec_whh_ref[...], dec_gib_ref[...],
            dec_bhn_ref[...], h0, stash_hidden=True)

    # ---- fc_out as ONE batched matmul, lane-dense (Dp=128) store ------------
    h_all = hs_scr[...].reshape(T * Bp, Hp)              # tile-preserving
    recon = mxu(h_all, wout_ref[...]) + bout_ref[...]
    recon_ref[...] = recon.reshape(recon_ref.shape)


# ----------------------------------------------------------------------------
# Wrapper
# ----------------------------------------------------------------------------
@jax.jit
def error_compensation_vae_forward(x, eps, packed):
    """x: (B, T, D) f32, eps: (B, Z) f32 reparam noise, packed: padded params."""
    B, T, D = x.shape
    Z = eps.shape[1]
    Hp = packed["enc_w_hh"].shape[0]
    Zp = packed["w_mu"].shape[1]
    Dp = packed["w_out"].shape[1]
    Bp = _round_up(B, 8)

    # Time-major, batch-padded input (keeps every in-kernel reshape
    # tile-preserving and every dynamic index on a leading axis).
    x_t = jnp.transpose(x, (1, 0, 2))
    x_tp = jnp.pad(x_t, ((0, 0), (0, Bp - B), (0, 0)))
    eps_p = jnp.pad(eps, ((0, Bp - B), (0, Zp - Z)))

    operands = (
        x_tp, eps_p,
        packed["enc_w_ih"], packed["enc_w_hh"], packed["enc_gi_b"], packed["enc_bhh_n"],
        packed["dec_w_ih"], packed["dec_w_hh"], packed["dec_gi_b"], packed["dec_bhh_n"],
        packed["w_mu"], packed["b_mu"], packed["w_ls"], packed["b_ls"],
        packed["w_zh"], packed["b_zh"], packed["w_out"], packed["b_out"],
    )

    in_bytes = sum(int(np.prod(a.shape)) * a.dtype.itemsize for a in operands)
    out_bytes = 4 * (T * Bp * Dp + 2 * Bp * Zp)
    scratch_bytes = 4 * (T * Bp * 3 * Hp + T * Bp * Hp)
    vmem_limit = int(min(128 * 1024 * 1024,
                         max(32 * 1024 * 1024, 2 * (in_bytes + out_bytes + scratch_bytes))))

    vmem_spec = pl.BlockSpec(memory_space=pltpu.MemorySpace.VMEM)

    # TODO(synk): on v7x the batch could additionally be split across the two
    # TensorCores via a leading "parallel" grid axis; single-core here.
    recon_p, mu_p, ls_p = pl.pallas_call(
        _vae_fused_kernel,
        out_shape=(
            jax.ShapeDtypeStruct((T, Bp, Dp), jnp.float32),   # recon (padded)
            jax.ShapeDtypeStruct((Bp, Zp), jnp.float32),      # mu    (padded)
            jax.ShapeDtypeStruct((Bp, Zp), jnp.float32),      # logsigma
        ),
        in_specs=[vmem_spec] * len(operands),
        out_specs=(vmem_spec, vmem_spec, vmem_spec),
        scratch_shapes=[
            pltpu.VMEM((T, Bp, 3 * Hp), jnp.float32),   # gi (shared enc/dec)
            pltpu.VMEM((T, Bp, Hp), jnp.float32),       # decoder hidden states
        ],
        compiler_params=pltpu.CompilerParams(vmem_limit_bytes=vmem_limit),
    )(*operands)

    recon = jnp.transpose(recon_p[:, :B, :D], (1, 0, 2))     # (B, T, D)
    return recon, mu_p[:B, :Z], ls_p[:B, :Z]


# ----------------------------------------------------------------------------
# Parameter init (logical PyTorch shapes, stored transposed so kernels do x@W)
# and packing (128-lane padding, bf16 weights, GRU bias folding).
# ----------------------------------------------------------------------------
def init_params(key, input_dim, hidden_dim, z_dim):
    ks = jax.random.split(key, 14)
    u = lambda k, shape, bound: jax.random.uniform(k, shape, jnp.float32, -bound, bound)
    gb = 1.0 / np.sqrt(hidden_dim)
    return {
        "enc_w_ih": u(ks[0], (input_dim, 3 * hidden_dim), gb),
        "enc_w_hh": u(ks[1], (hidden_dim, 3 * hidden_dim), gb),
        "enc_b_ih": u(ks[2], (1, 3 * hidden_dim), gb),
        "enc_b_hh": u(ks[3], (1, 3 * hidden_dim), gb),
        "dec_w_ih": u(ks[4], (input_dim, 3 * hidden_dim), gb),
        "dec_w_hh": u(ks[5], (hidden_dim, 3 * hidden_dim), gb),
        "dec_b_ih": u(ks[6], (1, 3 * hidden_dim), gb),
        "dec_b_hh": u(ks[7], (1, 3 * hidden_dim), gb),
        "w_mu": u(ks[8], (hidden_dim, z_dim), gb),
        "b_mu": u(ks[9], (1, z_dim), gb),
        "w_ls": u(ks[10], (hidden_dim, z_dim), gb),
        "b_ls": u(ks[11], (1, z_dim), gb),
        "w_zh": u(ks[12], (z_dim, hidden_dim), 1.0 / np.sqrt(z_dim)),
        "b_zh": u(ks[13], (1, hidden_dim), 1.0 / np.sqrt(z_dim)),
        "w_out": u(jax.random.fold_in(key, 100), (hidden_dim, input_dim), gb),
        "b_out": u(jax.random.fold_in(key, 101), (1, input_dim), gb),
    }


def pack_params(p, input_dim, hidden_dim, z_dim):
    """Pad H/Z/D to 128 lanes, cast matmul weights to bf16, fold GRU biases."""
    H, Z, D = hidden_dim, z_dim, input_dim
    Hp, Zp, Dp = _round_up(H, 128), _round_up(Z, 128), _round_up(D, 128)

    def pad_gate_cols(w):                       # (..., 3H) -> (..., 3Hp)
        lead = w.shape[:-1]
        w3 = w.reshape(*lead, 3, H)
        w3 = jnp.pad(w3, [(0, 0)] * len(lead) + [(0, 0), (0, Hp - H)])
        return w3.reshape(*lead, 3 * Hp)

    def pad2(w, rows, cols):
        return jnp.pad(w, ((0, rows - w.shape[0]), (0, cols - w.shape[1])))

    out = {}
    for name in ("enc", "dec"):
        w_ih = pad_gate_cols(p[f"{name}_w_ih"])                      # (D, 3Hp)
        w_hh = pad2(pad_gate_cols(p[f"{name}_w_hh"]), Hp, 3 * Hp)    # (Hp, 3Hp)
        b_ih = pad_gate_cols(p[f"{name}_b_ih"])                      # (1, 3Hp)
        b_hh = pad_gate_cols(p[f"{name}_b_hh"])                      # (1, 3Hp)
        # Fold the r/z parts of b_hh into the precomputed input-side bias;
        # only the n-gate recurrent bias stays inside the serial loop.
        gi_b = b_ih.at[:, :2 * Hp].add(b_hh[:, :2 * Hp])
        out[f"{name}_w_ih"] = w_ih.astype(jnp.bfloat16)
        out[f"{name}_w_hh"] = w_hh.astype(jnp.bfloat16)
        out[f"{name}_gi_b"] = gi_b.astype(jnp.float32)
        out[f"{name}_bhh_n"] = b_hh[:, 2 * Hp:].astype(jnp.float32)  # (1, Hp)

    out["w_mu"] = pad2(p["w_mu"], Hp, Zp).astype(jnp.bfloat16)
    out["b_mu"] = pad2(p["b_mu"], 1, Zp).astype(jnp.float32)
    out["w_ls"] = pad2(p["w_ls"], Hp, Zp).astype(jnp.bfloat16)
    out["b_ls"] = pad2(p["b_ls"], 1, Zp).astype(jnp.float32)
    out["w_zh"] = pad2(p["w_zh"], Zp, Hp).astype(jnp.bfloat16)
    out["b_zh"] = pad2(p["b_zh"], 1, Hp).astype(jnp.float32)
    out["w_out"] = pad2(p["w_out"], Hp, Dp).astype(jnp.bfloat16)
    out["b_out"] = pad2(p["b_out"], 1, Dp).astype(jnp.float32)
    return out


# ----------------------------------------------------------------------------
# Pure-JAX reference (same math, same bf16-weight / f32-accumulate precision)
# ----------------------------------------------------------------------------
def _mm(a, w):
    return jnp.dot(a.astype(jnp.bfloat16), w.astype(jnp.bfloat16),
                   preferred_element_type=jnp.float32)


def _sigmoid(v):
    return 1.0 / (1.0 + jnp.exp(-v))


def _gru_ref(x_tbd, h0, w_ih, w_hh, b_ih, b_hh):
    H = w_hh.shape[0]

    def step(h, x_t):
        gi = _mm(x_t, w_ih) + b_ih
        gh = _mm(h, w_hh) + b_hh
        r = _sigmoid(gi[:, :H] + gh[:, :H])
        z = _sigmoid(gi[:, H:2 * H] + gh[:, H:2 * H])
        n = jnp.tanh(gi[:, 2 * H:] + r * gh[:, 2 * H:])
        h_new = (1.0 - z) * n + z * h
        return h_new, h_new

    h_last, hs = jax.lax.scan(step, h0, x_tbd)
    return hs, h_last


def reference_forward(x_btd, eps, p):
    x_tbd = jnp.transpose(x_btd, (1, 0, 2))
    B = x_btd.shape[0]
    H = p["enc_w_hh"].shape[0]
    _, h_enc = _gru_ref(x_tbd, jnp.zeros((B, H), jnp.float32),
                        p["enc_w_ih"], p["enc_w_hh"], p["enc_b_ih"], p["enc_b_hh"])
    mu = _mm(h_enc, p["w_mu"]) + p["b_mu"]
    ls = _mm(h_enc, p["w_ls"]) + p["b_ls"]
    z = mu + eps * jnp.exp(ls)
    h0 = jnp.tanh(_mm(z, p["w_zh"]) + p["b_zh"])
    hs, _ = _gru_ref(x_tbd, h0,
                     p["dec_w_ih"], p["dec_w_hh"], p["dec_b_ih"], p["dec_b_hh"])
    recon = _mm(hs, p["w_out"]) + p["b_out"]
    return jnp.transpose(recon, (1, 0, 2)), mu, ls


# ----------------------------------------------------------------------------
if __name__ == "__main__":
    B, T, INPUT_DIM, HIDDEN_DIM, Z_DIM = 2, 8, 4, 32, 8

    key = jax.random.PRNGKey(0)
    k_x, k_eps, k_p = jax.random.split(key, 3)

    x = jax.random.normal(k_x, (B, T, INPUT_DIM), jnp.float32)
    # TODO(synk): torch draws eps in forward (randn_like); passed explicitly
    # here for determinism (could use pltpu.prng_* in-kernel instead).
    eps = jax.random.normal(k_eps, (B, Z_DIM), jnp.float32)

    params = init_params(k_p, INPUT_DIM, HIDDEN_DIM, Z_DIM)
    packed = pack_params(params, INPUT_DIM, HIDDEN_DIM, Z_DIM)

    recon, mu, logsig = error_compensation_vae_forward(x, eps, packed)
    jax.block_until_ready((recon, mu, logsig))

    r_ref, mu_ref, ls_ref = reference_forward(x, eps, params)
    np.testing.assert_allclose(np.asarray(recon), np.asarray(r_ref),
                               rtol=5e-3, atol=5e-3)
    np.testing.assert_allclose(np.asarray(mu), np.asarray(mu_ref),
                               rtol=5e-3, atol=5e-3)
    np.testing.assert_allclose(np.asarray(logsig), np.asarray(ls_ref),
                               rtol=5e-3, atol=5e-3)

    assert recon.shape == (B, T, INPUT_DIM)
    assert mu.shape == (B, Z_DIM) and logsig.shape == (B, Z_DIM)
    print("KERNEL_OK")
</pallas_src>

<mosaic_0001>
module attributes {stable_mosaic.version = 11 : i64} {
  func.func @_vae_fused_kernel(%arg0: memref<8x8x4xf32, #tpu.memory_space<vmem>>, %arg1: memref<8x128xf32, #tpu.memory_space<vmem>>, %arg2: memref<4x384xbf16, #tpu.memory_space<vmem>>, %arg3: memref<128x384xbf16, #tpu.memory_space<vmem>>, %arg4: memref<1x384xf32, #tpu.memory_space<vmem>>, %arg5: memref<1x128xf32, #tpu.memory_space<vmem>>, %arg6: memref<4x384xbf16, #tpu.memory_space<vmem>>, %arg7: memref<128x384xbf16, #tpu.memory_space<vmem>>, %arg8: memref<1x384xf32, #tpu.memory_space<vmem>>, %arg9: memref<1x128xf32, #tpu.memory_space<vmem>>, %arg10: memref<128x128xbf16, #tpu.memory_space<vmem>>, %arg11: memref<1x128xf32, #tpu.memory_space<vmem>>, %arg12: memref<128x128xbf16, #tpu.memory_space<vmem>>, %arg13: memref<1x128xf32, #tpu.memory_space<vmem>>, %arg14: memref<128x128xbf16, #tpu.memory_space<vmem>>, %arg15: memref<1x128xf32, #tpu.memory_space<vmem>>, %arg16: memref<128x128xbf16, #tpu.memory_space<vmem>>, %arg17: memref<1x128xf32, #tpu.memory_space<vmem>>, %arg18: memref<8x8x128xf32, #tpu.memory_space<vmem>>, %arg19: memref<8x128xf32, #tpu.memory_space<vmem>>, %arg20: memref<8x128xf32, #tpu.memory_space<vmem>>, %arg21: memref<8x8x384xf32, #tpu.memory_space<vmem>>, %arg22: memref<8x8x128xf32, #tpu.memory_space<vmem>>) attributes {dimension_semantics = [], scalar_prefetch = 0 : i64, scratch_operands = 2 : i64, tpu.core_type = #tpu.core_type<tc>} {
    %c0 = arith.constant 0 : index
    %c0_0 = arith.constant 0 : index
    %0 = vector.load %arg2[%c0, %c0_0] : memref<4x384xbf16, #tpu.memory_space<vmem>>, vector<4x384xbf16>
    %c0_1 = arith.constant 0 : index
    %c0_2 = arith.constant 0 : index
    %1 = vector.load %arg3[%c0_1, %c0_2] : memref<128x384xbf16, #tpu.memory_space<vmem>>, vector<128x384xbf16>
    %c0_3 = arith.constant 0 : index
    %c0_4 = arith.constant 0 : index
    %2 = vector.load %arg4[%c0_3, %c0_4] : memref<1x384xf32, #tpu.memory_space<vmem>>, vector<1x384xf32>
    %c0_5 = arith.constant 0 : index
    %c0_6 = arith.constant 0 : index
    %3 = vector.load %arg5[%c0_5, %c0_6] : memref<1x128xf32, #tpu.memory_space<vmem>>, vector<1x128xf32>
    %cst = arith.constant 0.000000e+00 : f32
    %4 = vector.broadcast %cst : f32 to vector<8x128xf32>
    %c0_7 = arith.constant 0 : index
    %c0_8 = arith.constant 0 : index
    %c0_9 = arith.constant 0 : index
    %5 = vector.load %arg0[%c0_7, %c0_8, %c0_9] : memref<8x8x4xf32, #tpu.memory_space<vmem>>, vector<8x8x4xf32>
    %6 = vector.shape_cast %5 : vector<8x8x4xf32> to vector<64x4xf32>
    %7 = arith.truncf %6 : vector<64x4xf32> to vector<64x4xbf16>
    %cst_10 = arith.constant dense<0.000000e+00> : vector<64x384xf32>
    %8 = tpu.matmul %7, %0, %cst_10 {dimension_numbers = #tpu.dot_dimension_numbers<[1], [0], [0], [1], [0, 0, 1, 1], [], []>} : vector<64x4xbf16>, vector<4x384xbf16>, vector<64x384xf32> -> vector<64x384xf32>
    %9 = vector.broadcast %2 : vector<1x384xf32> to vector<64x384xf32>
    %10 = arith.addf %8, %9 : vector<64x384xf32>
    %11 = vector.shape_cast %10 : vector<64x384xf32> to vector<8x8x384xf32>
    %c0_11 = arith.constant 0 : index
    %c0_12 = arith.constant 0 : index
    %c0_13 = arith.constant 0 : index
    %12 = vector.load %arg21[%c0_11, %c0_12, %c0_13] : memref<8x8x384xf32, #tpu.memory_space<vmem>>, vector<8x8x384xf32>
    tpu.vector_store %arg21[%c0_11, %c0_12, %c0_13], %11 {strides = array<i32>} : memref<8x8x384xf32, #tpu.memory_space<vmem>>, vector<8x8x384xf32>,
    %13 = vector.shape_cast %3 : vector<1x128xf32> to vector<1x128xf32>
    %14 = vector.broadcast %13 : vector<1x128xf32> to vector<8x128xf32>
    %c0_i32 = arith.constant 0 : i32
    %15 = arith.index_cast %c0_i32 : i32 to index
    %c0_14 = arith.constant 0 : index
    %c0_15 = arith.constant 0 : index
    %16 = vector.load %arg21[%15, %c0_14, %c0_15] : memref<8x8x384xf32, #tpu.memory_space<vmem>>, vector<1x8x384xf32>
    %17 = vector.shape_cast %16 : vector<1x8x384xf32> to vector<8x384xf32>
    %18 = arith.truncf %4 : vector<8x128xf32> to vector<8x128xbf16>
    %cst_16 = arith.constant dense<0.000000e+00> : vector<8x384xf32>
    %19 = tpu.matmul %18, %1, %cst_16 {dimension_numbers = #tpu.dot_dimension_numbers<[1], [0], [0], [1], [0, 0, 1, 1], [], []>} : vector<8x128xbf16>, vector<128x384xbf16>, vector<8x384xf32> -> vector<8x384xf32>
    %20 = vector.extract_strided_slice %17 {offsets = [0, 0], sizes = [8, 128], strides = [1, 1]} : vector<8x384xf32> to vector<8x128xf32>
    %21 = vector.extract_strided_slice %19 {offsets = [0, 0], sizes = [8, 128], strides = [1, 1]} : vector<8x384xf32> to vector<8x128xf32>
    %22 = arith.addf %20, %21 : vector<8x128xf32>
    %cst_17 = arith.constant 0.000000e+00 : f32
    %23 = vector.broadcast %cst_17 : f32 to vector<8x128xf32>
    %24 = arith.subf %23, %22 : vector<8x128xf32>
    %25 = math.exp %24 : vector<8x128xf32>
    %cst_18 = arith.constant 1.000000e+00 : f32
    %26 = vector.broadcast %cst_18 : f32 to vector<8x128xf32>
    %27 = arith.addf %26, %25 : vector<8x128xf32>
    %cst_19 = arith.constant 1.000000e+00 : f32
    %28 = vector.broadcast %cst_19 : f32 to vector<8x128xf32>
    %29 = arith.divf %28, %27 : vector<8x128xf32>
    %30 = vector.extract_strided_slice %17 {offsets = [0, 128], sizes = [8, 128], strides = [1, 1]} : vector<8x384xf32> to vector<8x128xf32>
    %31 = vector.extract_strided_slice %19 {offsets = [0, 128], sizes = [8, 128], strides = [1, 1]} : vector<8x384xf32> to vector<8x128xf32>
    %32 = arith.addf %30, %31 : vector<8x128xf32>
    %cst_20 = arith.constant 0.000000e+00 : f32
    %33 = vector.broadcast %cst_20 : f32 to vector<8x128xf32>
    %34 = arith.subf %33, %32 : vector<8x128xf32>
    %35 = math.exp %34 : vector<8x128xf32>
    %cst_21 = arith.constant 1.000000e+00 : f32
    %36 = vector.broadcast %cst_21 : f32 to vector<8x128xf32>
    %37 = arith.addf %36, %35 : vector<8x128xf32>
    %cst_22 = arith.constant 1.000000e+00 : f32
    %38 = vector.broadcast %cst_22 : f32 to vector<8x128xf32>
    %39 = arith.divf %38, %37 : vector<8x128xf32>
    %40 = vector.extract_strided_slice %17 {offsets = [0, 256], sizes = [8, 128], strides = [1, 1]} : vector<8x384xf32> to vector<8x128xf32>
    %41 = vector.extract_strided_slice %19 {offsets = [0, 256], sizes = [8, 128], strides = [1, 1]} : vector<8x384xf32> to vector<8x128xf32>
    %42 = arith.addf %41, %14 : vector<8x128xf32>
    %43 = arith.mulf %29, %42 : vector<8x128xf32>
    %44 = arith.addf %40, %43 : vector<8x128xf32>
    %45 = math.tanh %44 : vector<8x128xf32>
    %46 = arith.subf %4, %45 : vector<8x128xf32>
    %47 = arith.mulf %39, %46 : vector<8x128xf32>
    %48 = arith.addf %45, %47 : vector<8x128xf32>
    %c1_i32 = arith.constant 1 : i32
    %49 = arith.index_cast %c1_i32 : i32 to index
    %c0_23 = arith.constant 0 : index
    %c0_24 = arith.constant 0 : index
    %50 = vector.load %arg21[%49, %c0_23, %c0_24] : memref<8x8x384xf32, #tpu.memory_space<vmem>>, vector<1x8x384xf32>
    %51 = vector.shape_cast %50 : vector<1x8x384xf32> to vector<8x384xf32>
    %52 = arith.truncf %48 : vector<8x128xf32> to vector<8x128xbf16>
    %cst_25 = arith.constant dense<0.000000e+00> : vector<8x384xf32>
    %53 = tpu.matmul %52, %1, %cst_25 {dimension_numbers = #tpu.dot_dimension_numbers<[1], [0], [0], [1], [0, 0, 1, 1], [], []>} : vector<8x128xbf16>, vector<128x384xbf16>, vector<8x384xf32> -> vector<8x384xf32>
    %54 = vector.extract_strided_slice %51 {offsets = [0, 0], sizes = [8, 128], strides = [1, 1]} : vector<8x384xf32> to vector<8x128xf32>
    %55 = vector.extract_strided_slice %53 {offsets = [0, 0], sizes = [8, 128], strides = [1, 1]} : vector<8x384xf32> to vector<8x128xf32>
    %56 = arith.addf %54, %55 : vector<8x128xf32>
    %cst_26 = arith.constant 0.000000e+00 : f32
    %57 = vector.broadcast %cst_26 : f32 to vector<8x128xf32>
    %58 = arith.subf %57, %56 : vector<8x128xf32>
    %59 = math.exp %58 : vector<8x128xf32>
    %cst_27 = arith.constant 1.000000e+00 : f32
    %60 = vector.broadcast %cst_27 : f32 to vector<8x128xf32>
    %61 = arith.addf %60, %59 : vector<8x128xf32>
    %cst_28 = arith.constant 1.000000e+00 : f32
    %62 = vector.broadcast %cst_28 : f32 to vector<8x128xf32>
    %63 = arith.divf %62, %61 : vector<8x128xf32>
    %64 = vector.extract_strided_slice %51 {offsets = [0, 128], sizes = [8, 128], strides = [1, 1]} : vector<8x384xf32> to vector<8x128xf32>
    %65 = vector.extract_strided_slice %53 {offsets = [0, 128], sizes = [8, 128], strides = [1, 1]} : vector<8x384xf32> to vector<8x128xf32>
    %66 = arith.addf %64, %65 : vector<8x128xf32>
    %cst_29 = arith.constant 0.000000e+00 : f32
    %67 = vector.broadcast %cst_29 : f32 to vector<8x128xf32>
    %68 = arith.subf %67, %66 : vector<8x128xf32>
    %69 = math.exp %68 : vector<8x128xf32>
    %cst_30 = arith.constant 1.000000e+00 : f32
    %70 = vector.broadcast %cst_30 : f32 to vector<8x128xf32>
    %71 = arith.addf %70, %69 : vector<8x128xf32>
    %cst_31 = arith.constant 1.000000e+00 : f32
    %72 = vector.broadcast %cst_31 : f32 to vector<8x128xf32>
    %73 = arith.divf %72, %71 : vector<8x128xf32>
    %74 = vector.extract_strided_slice %51 {offsets = [0, 256], sizes = [8, 128], strides = [1, 1]} : vector<8x384xf32> to vector<8x128xf32>
    %75 = vector.extract_strided_slice %53 {offsets = [0, 256], sizes = [8, 128], strides = [1, 1]} : vector<8x384xf32> to vector<8x128xf32>
    %76 = arith.addf %75, %14 : vector<8x128xf32>
    %77 = arith.mulf %63, %76 : vector<8x128xf32>
    %78 = arith.addf %74, %77 : vector<8x128xf32>
    %79 = math.tanh %78 : vector<8x128xf32>
    %80 = arith.subf %48, %79 : vector<8x128xf32>
    %81 = arith.mulf %73, %80 : vector<8x128xf32>
    %82 = arith.addf %79, %81 : vector<8x128xf32>
    %c2_i32 = arith.constant 2 : i32
    %83 = arith.index_cast %c2_i32 : i32 to index
    %c0_32 = arith.constant 0 : index
    %c0_33 = arith.constant 0 : index
    %84 = vector.load %arg21[%83, %c0_32, %c0_33] : memref<8x8x384xf32, #tpu.memory_space<vmem>>, vector<1x8x384xf32>
    %85 = vector.shape_cast %84 : vector<1x8x384xf32> to vector<8x384xf32>
    %86 = arith.truncf %82 : vector<8x128xf32> to vector<8x128xbf16>
    %cst_34 = arith.constant dense<0.000000e+00> : vector<8x384xf32>
    %87 = tpu.matmul %86, %1, %cst_34 {dimension_numbers = #tpu.dot_dimension_numbers<[1], [0], [0], [1], [0, 0, 1, 1], [], []>} : vector<8x128xbf16>, vector<128x384xbf16>, vector<8x384xf32> -> vector<8x384xf32>
    %88 = vector.extract_strided_slice %85 {offsets = [0, 0], sizes = [8, 128], strides = [1, 1]} : vector<8x384xf32> to vector<8x128xf32>
    %89 = vector.extract_strided_slice %87 {offsets = [0, 0], sizes = [8, 128], strides = [1, 1]} : vector<8x384xf32> to vector<8x128xf32>
    %90 = arith.addf %88, %89 : vector<8x128xf32>
    %cst_35 = arith.constant 0.000000e+00 : f32
    %91 = vector.broadcast %cst_35 : f32 to vector<8x128xf32>
    %92 = arith.subf %91, %90 : vector<8x128xf32>
    %93 = math.exp %92 : vector<8x128xf32>
    %cst_36 = arith.constant 1.000000e+00 : f32
    %94 = vector.broadcast %cst_36 : f32 to vector<8x128xf32>
    %95 = arith.addf %94, %93 : vector<8x128xf32>
    %cst_37 = arith.constant 1.000000e+00 : f32
    %96 = vector.broadcast %cst_37 : f32 to vector<8x128xf32>
    %97 = arith.divf %96, %95 : vector<8x128xf32>
    %98 = vector.extract_strided_slice %85 {offsets = [0, 128], sizes = [8, 128], strides = [1, 1]} : vector<8x384xf32> to vector<8x128xf32>
    %99 = vector.extract_strided_slice %87 {offsets = [0, 128], sizes = [8, 128], strides = [1, 1]} : vector<8x384xf32> to vector<8x128xf32>
    %100 = arith.addf %98, %99 : vector<8x128xf32>
    %cst_38 = arith.constant 0.000000e+00 : f32
    %101 = vector.broadcast %cst_38 : f32 to vector<8x128xf32>
    %102 = arith.subf %101, %100 : vector<8x128xf32>
    %103 = math.exp %102 : vector<8x128xf32>
    %cst_39 = arith.constant 1.000000e+00 : f32
    %104 = vector.broadcast %cst_39 : f32 to vector<8x128xf32>
    %105 = arith.addf %104, %103 : vector<8x128xf32>
    %cst_40 = arith.constant 1.000000e+00 : f32
    %106 = vector.broadcast %cst_40 : f32 to vector<8x128xf32>
    %107 = arith.divf %106, %105 : vector<8x128xf32>
    %108 = vector.extract_strided_slice %85 {offsets = [0, 256], sizes = [8, 128], strides = [1, 1]} : vector<8x384xf32> to vector<8x128xf32>
    %109 = vector.extract_strided_slice %87 {offsets = [0, 256], sizes = [8, 128], strides = [1, 1]} : vector<8x384xf32> to vector<8x128xf32>
    %110 = arith.addf %109, %14 : vector<8x128xf32>
    %111 = arith.mulf %97, %110 : vector<8x128xf32>
    %112 = arith.addf %108, %111 : vector<8x128xf32>
    %113 = math.tanh %112 : vector<8x128xf32>
    %114 = arith.subf %82, %113 : vector<8x128xf32>
    %115 = arith.mulf %107, %114 : vector<8x128xf32>
    %116 = arith.addf %113, %115 : vector<8x128xf32>
    %c3_i32 = arith.constant 3 : i32
    %117 = arith.index_cast %c3_i32 : i32 to index
    %c0_41 = arith.constant 0 : index
    %c0_42 = arith.constant 0 : index
    %118 = vector.load %arg21[%117, %c0_41, %c0_42] : memref<8x8x384xf32, #tpu.memory_space<vmem>>, vector<1x8x384xf32>
    %119 = vector.shape_cast %118 : vector<1x8x384xf32> to vector<8x384xf32>
    %120 = arith.truncf %116 : vector<8x128xf32> to vector<8x128xbf16>
    %cst_43 = arith.constant dense<0.000000e+00> : vector<8x384xf32>
    %121 = tpu.matmul %120, %1, %cst_43 {dimension_numbers = #tpu.dot_dimension_numbers<[1], [0], [0], [1], [0, 0, 1, 1], [], []>} : vector<8x128xbf16>, vector<128x384xbf16>, vector<8x384xf32> -> vector<8x384xf32>
    %122 = vector.extract_strided_slice %119 {offsets = [0, 0], sizes = [8, 128], strides = [1, 1]} : vector<8x384xf32> to vector<8x128xf32>
    %123 = vector.extract_strided_slice %121 {offsets = [0, 0], sizes = [8, 128], strides = [1, 1]} : vector<8x384xf32> to vector<8x128xf32>
    %124 = arith.addf %122, %123 : vector<8x128xf32>
    %cst_44 = arith.constant 0.000000e+00 : f32
    %125 = vector.broadcast %cst_44 : f32 to vector<8x128xf32>
    %126 = arith.subf %125, %124 : vector<8x128xf32>
    %127 = math.exp %126 : vector<8x128xf32>
    %cst_45 = arith.constant 1.000000e+00 : f32
    %128 = vector.broadcast %cst_45 : f32 to vector<8x128xf32>
    %129 = arith.addf %128, %127 : vector<8x128xf32>
    %cst_46 = arith.constant 1.000000e+00 : f32
    %130 = vector.broadcast %cst_46 : f32 to vector<8x128xf32>
    %131 = arith.divf %130, %129 : vector<8x128xf32>
    %132 = vector.extract_strided_slice %119 {offsets = [0, 128], sizes = [8, 128], strides = [1, 1]} : vector<8x384xf32> to vector<8x128xf32>
    %133 = vector.extract_strided_slice %121 {offsets = [0, 128], sizes = [8, 128], strides = [1, 1]} : vector<8x384xf32> to vector<8x128xf32>
    %134 = arith.addf %132, %133 : vector<8x128xf32>
    %cst_47 = arith.constant 0.000000e+00 : f32
    %135 = vector.broadcast %cst_47 : f32 to vector<8x128xf32>
    %136 = arith.subf %135, %134 : vector<8x128xf32>
    %137 = math.exp %136 : vector<8x128xf32>
    %cst_48 = arith.constant 1.000000e+00 : f32
    %138 = vector.broadcast %cst_48 : f32 to vector<8x128xf32>
    %139 = arith.addf %138, %137 : vector<8x128xf32>
    %cst_49 = arith.constant 1.000000e+00 : f32
    %140 = vector.broadcast %cst_49 : f32 to vector<8x128xf32>
    %141 = arith.divf %140, %139 : vector<8x128xf32>
    %142 = vector.extract_strided_slice %119 {offsets = [0, 256], sizes = [8, 128], strides = [1, 1]} : vector<8x384xf32> to vector<8x128xf32>
    %143 = vector.extract_strided_slice %121 {offsets = [0, 256], sizes = [8, 128], strides = [1, 1]} : vector<8x384xf32> to vector<8x128xf32>
    %144 = arith.addf %143, %14 : vector<8x128xf32>
    %145 = arith.mulf %131, %144 : vector<8x128xf32>
    %146 = arith.addf %142, %145 : vector<8x128xf32>
    %147 = math.tanh %146 : vector<8x128xf32>
    %148 = arith.subf %116, %147 : vector<8x128xf32>
    %149 = arith.mulf %141, %148 : vector<8x128xf32>
    %150 = arith.addf %147, %149 : vector<8x128xf32>
    %c4_i32 = arith.constant 4 : i32
    %151 = arith.index_cast %c4_i32 : i32 to index
    %c0_50 = arith.constant 0 : index
    %c0_51 = arith.constant 0 : index
    %152 = vector.load %arg21[%151, %c0_50, %c0_51] : memref<8x8x384xf32, #tpu.memory_space<vmem>>, vector<1x8x384xf32>
    %153 = vector.shape_cast %152 : vector<1x8x384xf32> to vector<8x384xf32>
    %154 = arith.truncf %150 : vector<8x128xf32> to vector<8x128xbf16>
    %cst_52 = arith.constant dense<0.000000e+00> : vector<8x384xf32>
    %155 = tpu.matmul %154, %1, %cst_52 {dimension_numbers = #tpu.dot_dimension_numbers<[1], [0], [0], [1], [0, 0, 1, 1], [], []>} : vector<8x128xbf16>, vector<128x384xbf16>, vector<8x384xf32> -> vector<8x384xf32>
    %156 = vector.extract_strided_slice %153 {offsets = [0, 0], sizes = [8, 128], strides = [1, 1]} : vector<8x384xf32> to vector<8x128xf32>
    %157 = vector.extract_strided_slice %155 {offsets = [0, 0], sizes = [8, 128], strides = [1, 1]} : vector<8x384xf32> to vector<8x128xf32>
    %158 = arith.addf %156, %157 : vector<8x128xf32>
    %cst_53 = arith.constant 0.000000e+00 : f32
    %159 = vector.broadcast %cst_53 : f32 to vector<8x128xf32>
    %160 = arith.subf %159, %158 : vector<8x128xf32>
    %161 = math.exp %160 : vector<8x128xf32>
    %cst_54 = arith.constant 1.000000e+00 : f32
    %162 = vector.broadcast %cst_54 : f32 to vector<8x128xf32>
    %163 = arith.addf %162, %161 : vector<8x128xf32>
    %cst_55 = arith.constant 1.000000e+00 : f32
    %164 = vector.broadcast %cst_55 : f32 to vector<8x128xf32>
    %165 = arith.divf %164, %163 : vector<8x128xf32>
    %166 = vector.extract_strided_slice %153 {offsets = [0, 128], sizes = [8, 128], strides = [1, 1]} : vector<8x384xf32> to vector<8x128xf32>
    %167 = vector.extract_strided_slice %155 {offsets = [0, 128], sizes = [8, 128], strides = [1, 1]} : vector<8x384xf32> to vector<8x128xf32>
    %168 = arith.addf %166, %167 : vector<8x128xf32>
    %cst_56 = arith.constant 0.000000e+00 : f32
    %169 = vector.broadcast %cst_56 : f32 to vector<8x128xf32>
    %170 = arith.subf %169, %168 : vector<8x128xf32>
    %171 = math.exp %170 : vector<8x128xf32>
    %cst_57 = arith.constant 1.000000e+00 : f32
    %172 = vector.broadcast %cst_57 : f32 to vector<8x128xf32>
    %173 = arith.addf %172, %171 : vector<8x128xf32>
    %cst_58 = arith.constant 1.000000e+00 : f32
    %174 = vector.broadcast %cst_58 : f32 to vector<8x128xf32>
    %175 = arith.divf %174, %173 : vector<8x128xf32>
    %176 = vector.extract_strided_slice %153 {offsets = [0, 256], sizes = [8, 128], strides = [1, 1]} : vector<8x384xf32> to vector<8x128xf32>
    %177 = vector.extract_strided_slice %155 {offsets = [0, 256], sizes = [8, 128], strides = [1, 1]} : vector<8x384xf32> to vector<8x128xf32>
    %178 = arith.addf %177, %14 : vector<8x128xf32>
    %179 = arith.mulf %165, %178 : vector<8x128xf32>
    %180 = arith.addf %176, %179 : vector<8x128xf32>
    %181 = math.tanh %180 : vector<8x128xf32>
    %182 = arith.subf %150, %181 : vector<8x128xf32>
    %183 = arith.mulf %175, %182 : vector<8x128xf32>
    %184 = arith.addf %181, %183 : vector<8x128xf32>
    %c5_i32 = arith.constant 5 : i32
    %185 = arith.index_cast %c5_i32 : i32 to index
    %c0_59 = arith.constant 0 : index
    %c0_60 = arith.constant 0 : index
    %186 = vector.load %arg21[%185, %c0_59, %c0_60] : memref<8x8x384xf32, #tpu.memory_space<vmem>>, vector<1x8x384xf32>
    %187 = vector.shape_cast %186 : vector<1x8x384xf32> to vector<8x384xf32>
    %188 = arith.truncf %184 : vector<8x128xf32> to vector<8x128xbf16>
    %cst_61 = arith.constant dense<0.000000e+00> : vector<8x384xf32>
    %189 = tpu.matmul %188, %1, %cst_61 {dimension_numbers = #tpu.dot_dimension_numbers<[1], [0], [0], [1], [0, 0, 1, 1], [], []>} : vector<8x128xbf16>, vector<128x384xbf16>, vector<8x384xf32> -> vector<8x384xf32>
    %190 = vector.extract_strided_slice %187 {offsets = [0, 0], sizes = [8, 128], strides = [1, 1]} : vector<8x384xf32> to vector<8x128xf32>
    %191 = vector.extract_strided_slice %189 {offsets = [0, 0], sizes = [8, 128], strides = [1, 1]} : vector<8x384xf32> to vector<8x128xf32>
    %192 = arith.addf %190, %191 : vector<8x128xf32>
    %cst_62 = arith.constant 0.000000e+00 : f32
    %193 = vector.broadcast %cst_62 : f32 to vector<8x128xf32>
    %194 = arith.subf %193, %192 : vector<8x128xf32>
    %195 = math.exp %194 : vector<8x128xf32>
    %cst_63 = arith.constant 1.000000e+00 : f32
    %196 = vector.broadcast %cst_63 : f32 to vector<8x128xf32>
    %197 = arith.addf %196, %195 : vector<8x128xf32>
    %cst_64 = arith.constant 1.000000e+00 : f32
    %198 = vector.broadcast %cst_64 : f32 to vector<8x128xf32>
    %199 = arith.divf %198, %197 : vector<8x128xf32>
    %200 = vector.extract_strided_slice %187 {offsets = [0, 128], sizes = [8, 128], strides = [1, 1]} : vector<8x384xf32> to vector<8x128xf32>
    %201 = vector.extract_strided_slice %189 {offsets = [0, 128], sizes = [8, 128], strides = [1, 1]} : vector<8x384xf32> to vector<8x128xf32>
    %202 = arith.addf %200, %201 : vector<8x128xf32>
    %cst_65 = arith.constant 0.000000e+00 : f32
    %203 = vector.broadcast %cst_65 : f32 to vector<8x128xf32>
    %204 = arith.subf %203, %202 : vector<8x128xf32>
    %205 = math.exp %204 : vector<8x128xf32>
    %cst_66 = arith.constant 1.000000e+00 : f32
    %206 = vector.broadcast %cst_66 : f32 to vector<8x128xf32>
    %207 = arith.addf %206, %205 : vector<8x128xf32>
    %cst_67 = arith.constant 1.000000e+00 : f32
    %208 = vector.broadcast %cst_67 : f32 to vector<8x128xf32>
    %209 = arith.divf %208, %207 : vector<8x128xf32>
    %210 = vector.extract_strided_slice %187 {offsets = [0, 256], sizes = [8, 128], strides = [1, 1]} : vector<8x384xf32> to vector<8x128xf32>
    %211 = vector.extract_strided_slice %189 {offsets = [0, 256], sizes = [8, 128], strides = [1, 1]} : vector<8x384xf32> to vector<8x128xf32>
    %212 = arith.addf %211, %14 : vector<8x128xf32>
    %213 = arith.mulf %199, %212 : vector<8x128xf32>
    %214 = arith.addf %210, %213 : vector<8x128xf32>
    %215 = math.tanh %214 : vector<8x128xf32>
    %216 = arith.subf %184, %215 : vector<8x128xf32>
    %217 = arith.mulf %209, %216 : vector<8x128xf32>
    %218 = arith.addf %215, %217 : vector<8x128xf32>
    %c6_i32 = arith.constant 6 : i32
    %219 = arith.index_cast %c6_i32 : i32 to index
    %c0_68 = arith.constant 0 : index
    %c0_69 = arith.constant 0 : index
    %220 = vector.load %arg21[%219, %c0_68, %c0_69] : memref<8x8x384xf32, #tpu.memory_space<vmem>>, vector<1x8x384xf32>
    %221 = vector.shape_cast %220 : vector<1x8x384xf32> to vector<8x384xf32>
    %222 = arith.truncf %218 : vector<8x128xf32> to vector<8x128xbf16>
    %cst_70 = arith.constant dense<0.000000e+00> : vector<8x384xf32>
    %223 = tpu.matmul %222, %1, %cst_70 {dimension_numbers = #tpu.dot_dimension_numbers<[1], [0], [0], [1], [0, 0, 1, 1], [], []>} : vector<8x128xbf16>, vector<128x384xbf16>, vector<8x384xf32> -> vector<8x384xf32>
    %224 = vector.extract_strided_slice %221 {offsets = [0, 0], sizes = [8, 128], strides = [1, 1]} : vector<8x384xf32> to vector<8x128xf32>
    %225 = vector.extract_strided_slice %223 {offsets = [0, 0], sizes = [8, 128], strides = [1, 1]} : vector<8x384xf32> to vector<8x128xf32>
    %226 = arith.addf %224, %225 : vector<8x128xf32>
    %cst_71 = arith.constant 0.000000e+00 : f32
    %227 = vector.broadcast %cst_71 : f32 to vector<8x128xf32>
    %228 = arith.subf %227, %226 : vector<8x128xf32>
    %229 = math.exp %228 : vector<8x128xf32>
    %cst_72 = arith.constant 1.000000e+00 : f32
    %230 = vector.broadcast %cst_72 : f32 to vector<8x128xf32>
    %231 = arith.addf %230, %229 : vector<8x128xf32>
    %cst_73 = arith.constant 1.000000e+00 : f32
    %232 = vector.broadcast %cst_73 : f32 to vector<8x128xf32>
    %233 = arith.divf %232, %231 : vector<8x128xf32>
    %234 = vector.extract_strided_slice %221 {offsets = [0, 128], sizes = [8, 128], strides = [1, 1]} : vector<8x384xf32> to vector<8x128xf32>
    %235 = vector.extract_strided_slice %223 {offsets = [0, 128], sizes = [8, 128], strides = [1, 1]} : vector<8x384xf32> to vector<8x128xf32>
    %236 = arith.addf %234, %235 : vector<8x128xf32>
    %cst_74 = arith.constant 0.000000e+00 : f32
    %237 = vector.broadcast %cst_74 : f32 to vector<8x128xf32>
    %238 = arith.subf %237, %236 : vector<8x128xf32>
    %239 = math.exp %238 : vector<8x128xf32>
    %cst_75 = arith.constant 1.000000e+00 : f32
    %240 = vector.broadcast %cst_75 : f32 to vector<8x128xf32>
    %241 = arith.addf %240, %239 : vector<8x128xf32>
    %cst_76 = arith.constant 1.000000e+00 : f32
    %242 = vector.broadcast %cst_76 : f32 to vector<8x128xf32>
    %243 = arith.divf %242, %241 : vector<8x128xf32>
    %244 = vector.extract_strided_slice %221 {offsets = [0, 256], sizes = [8, 128], strides = [1, 1]} : vector<8x384xf32> to vector<8x128xf32>
    %245 = vector.extract_strided_slice %223 {offsets = [0, 256], sizes = [8, 128], strides = [1, 1]} : vector<8x384xf32> to vector<8x128xf32>
    %246 = arith.addf %245, %14 : vector<8x128xf32>
    %247 = arith.mulf %233, %246 : vector<8x128xf32>
    %248 = arith.addf %244, %247 : vector<8x128xf32>
    %249 = math.tanh %248 : vector<8x128xf32>
    %250 = arith.subf %218, %249 : vector<8x128xf32>
    %251 = arith.mulf %243, %250 : vector<8x128xf32>
    %252 = arith.addf %249, %251 : vector<8x128xf32>
    %c7_i32 = arith.constant 7 : i32
    %253 = arith.index_cast %c7_i32 : i32 to index
    %c0_77 = arith.constant 0 : index
    %c0_78 = arith.constant 0 : index
    %254 = vector.load %arg21[%253, %c0_77, %c0_78] : memref<8x8x384xf32, #tpu.memory_space<vmem>>, vector<1x8x384xf32>
    %255 = vector.shape_cast %254 : vector<1x8x384xf32> to vector<8x384xf32>
    %256 = arith.truncf %252 : vector<8x128xf32> to vector<8x128xbf16>
    %cst_79 = arith.constant dense<0.000000e+00> : vector<8x384xf32>
    %257 = tpu.matmul %256, %1, %cst_79 {dimension_numbers = #tpu.dot_dimension_numbers<[1], [0], [0], [1], [0, 0, 1, 1], [], []>} : vector<8x128xbf16>, vector<128x384xbf16>, vector<8x384xf32> -> vector<8x384xf32>
    %258 = vector.extract_strided_slice %255 {offsets = [0, 0], sizes = [8, 128], strides = [1, 1]} : vector<8x384xf32> to vector<8x128xf32>
    %259 = vector.extract_strided_slice %257 {offsets = [0, 0], sizes = [8, 128], strides = [1, 1]} : vector<8x384xf32> to vector<8x128xf32>
    %260 = arith.addf %258, %259 : vector<8x128xf32>
    %cst_80 = arith.constant 0.000000e+00 : f32
    %261 = vector.broadcast %cst_80 : f32 to vector<8x128xf32>
    %262 = arith.subf %261, %260 : vector<8x128xf32>
    %263 = math.exp %262 : vector<8x128xf32>
    %cst_81 = arith.constant 1.000000e+00 : f32
    %264 = vector.broadcast %cst_81 : f32 to vector<8x128xf32>
    %265 = arith.addf %264, %263 : vector<8x128xf32>
    %cst_82 = arith.constant 1.000000e+00 : f32
    %266 = vector.broadcast %cst_82 : f32 to vector<8x128xf32>
    %267 = arith.divf %266, %265 : vector<8x128xf32>
    %268 = vector.extract_strided_slice %255 {offsets = [0, 128], sizes = [8, 128], strides = [1, 1]} : vector<8x384xf32> to vector<8x128xf32>
    %269 = vector.extract_strided_slice %257 {offsets = [0, 128], sizes = [8, 128], strides = [1, 1]} : vector<8x384xf32> to vector<8x128xf32>
    %270 = arith.addf %268, %269 : vector<8x128xf32>
    %cst_83 = arith.constant 0.000000e+00 : f32
    %271 = vector.broadcast %cst_83 : f32 to vector<8x128xf32>
    %272 = arith.subf %271, %270 : vector<8x128xf32>
    %273 = math.exp %272 : vector<8x128xf32>
    %cst_84 = arith.constant 1.000000e+00 : f32
    %274 = vector.broadcast %cst_84 : f32 to vector<8x128xf32>
    %275 = arith.addf %274, %273 : vector<8x128xf32>
    %cst_85 = arith.constant 1.000000e+00 : f32
    %276 = vector.broadcast %cst_85 : f32 to vector<8x128xf32>
    %277 = arith.divf %276, %275 : vector<8x128xf32>
    %278 = vector.extract_strided_slice %255 {offsets = [0, 256], sizes = [8, 128], strides = [1, 1]} : vector<8x384xf32> to vector<8x128xf32>
    %279 = vector.extract_strided_slice %257 {offsets = [0, 256], sizes = [8, 128], strides = [1, 1]} : vector<8x384xf32> to vector<8x128xf32>
    %280 = arith.addf %279, %14 : vector<8x128xf32>
    %281 = arith.mulf %267, %280 : vector<8x128xf32>
    %282 = arith.addf %278, %281 : vector<8x128xf32>
    %283 = math.tanh %282 : vector<8x128xf32>
    %284 = arith.subf %252, %283 : vector<8x128xf32>
    %285 = arith.mulf %277, %284 : vector<8x128xf32>
    %286 = arith.addf %283, %285 : vector<8x128xf32>
    %c8_i32 = arith.constant 8 : i32
    %c0_86 = arith.constant 0 : index
    %c0_87 = arith.constant 0 : index
    %287 = vector.load %arg10[%c0_86, %c0_87] : memref<128x128xbf16, #tpu.memory_space<vmem>>, vector<128x128xbf16>
    %288 = arith.truncf %286 : vector<8x128xf32> to vector<8x128xbf16>
    %cst_88 = arith.constant dense<0.000000e+00> : vector<8x128xf32>
    %289 = tpu.matmul %288, %287, %cst_88 {dimension_numbers = #tpu.dot_dimension_numbers<[1], [0], [0], [1], [0, 0, 1, 1], [], []>} : vector<8x128xbf16>, vector<128x128xbf16>, vector<8x128xf32> -> vector<8x128xf32>
    %c0_89 = arith.constant 0 : index
    %c0_90 = arith.constant 0 : index
    %290 = vector.load %arg11[%c0_89, %c0_90] : memref<1x128xf32, #tpu.memory_space<vmem>>, vector<1x128xf32>
    %291 = vector.broadcast %290 : vector<1x128xf32> to vector<8x128xf32>
    %292 = arith.addf %289, %291 : vector<8x128xf32>
    %c0_91 = arith.constant 0 : index
    %c0_92 = arith.constant 0 : index
    %293 = vector.load %arg12[%c0_91, %c0_92] : memref<128x128xbf16, #tpu.memory_space<vmem>>, vector<128x128xbf16>
    %294 = arith.truncf %286 : vector<8x128xf32> to vector<8x128xbf16>
    %cst_93 = arith.constant dense<0.000000e+00> : vector<8x128xf32>
    %295 = tpu.matmul %294, %293, %cst_93 {dimension_numbers = #tpu.dot_dimension_numbers<[1], [0], [0], [1], [0, 0, 1, 1], [], []>} : vector<8x128xbf16>, vector<128x128xbf16>, vector<8x128xf32> -> vector<8x128xf32>
    %c0_94 = arith.constant 0 : index
    %c0_95 = arith.constant 0 : index
    %296 = vector.load %arg13[%c0_94, %c0_95] : memref<1x128xf32, #tpu.memory_space<vmem>>, vector<1x128xf32>
    %297 = vector.broadcast %296 : vector<1x128xf32> to vector<8x128xf32>
    %298 = arith.addf %295, %297 : vector<8x128xf32>
    %c0_96 = arith.constant 0 : index
    %c0_97 = arith.constant 0 : index
    %299 = vector.load %arg19[%c0_96, %c0_97] : memref<8x128xf32, #tpu.memory_space<vmem>>, vector<8x128xf32>
    tpu.vector_store %arg19[%c0_96, %c0_97], %292 {strides = array<i32>} : memref<8x128xf32, #tpu.memory_space<vmem>>, vector<8x128xf32>,
    %c0_98 = arith.constant 0 : index
    %c0_99 = arith.constant 0 : index
    %300 = vector.load %arg20[%c0_98, %c0_99] : memref<8x128xf32, #tpu.memory_space<vmem>>, vector<8x128xf32>
    tpu.vector_store %arg20[%c0_98, %c0_99], %298 {strides = array<i32>} : memref<8x128xf32, #tpu.memory_space<vmem>>, vector<8x128xf32>,
    %c0_100 = arith.constant 0 : index
    %c0_101 = arith.constant 0 : index
    %301 = vector.load %arg1[%c0_100, %c0_101] : memref<8x128xf32, #tpu.memory_space<vmem>>, vector<8x128xf32>
    %302 = math.exp %298 : vector<8x128xf32>
    %303 = arith.mulf %301, %302 : vector<8x128xf32>
    %304 = arith.addf %292, %303 : vector<8x128xf32>
    %c0_102 = arith.constant 0 : index
    %c0_103 = arith.constant 0 : index
    %305 = vector.load %arg14[%c0_102, %c0_103] : memref<128x128xbf16, #tpu.memory_space<vmem>>, vector<128x128xbf16>
    %306 = arith.truncf %304 : vector<8x128xf32> to vector<8x128xbf16>
    %cst_104 = arith.constant dense<0.000000e+00> : vector<8x128xf32>
    %307 = tpu.matmul %306, %305, %cst_104 {dimension_numbers = #tpu.dot_dimension_numbers<[1], [0], [0], [1], [0, 0, 1, 1], [], []>} : vector<8x128xbf16>, vector<128x128xbf16>, vector<8x128xf32> -> vector<8x128xf32>
    %c0_105 = arith.constant 0 : index
    %c0_106 = arith.constant 0 : index
    %308 = vector.load %arg15[%c0_105, %c0_106] : memref<1x128xf32, #tpu.memory_space<vmem>>, vector<1x128xf32>
    %309 = vector.broadcast %308 : vector<1x128xf32> to vector<8x128xf32>
    %310 = arith.addf %307, %309 : vector<8x128xf32>
    %311 = math.tanh %310 : vector<8x128xf32>
    %c0_107 = arith.constant 0 : index
    %c0_108 = arith.constant 0 : index
    %312 = vector.load %arg6[%c0_107, %c0_108] : memref<4x384xbf16, #tpu.memory_space<vmem>>, vector<4x384xbf16>
    %c0_109 = arith.constant 0 : index
    %c0_110 = arith.constant 0 : index
    %313 = vector.load %arg7[%c0_109, %c0_110] : memref<128x384xbf16, #tpu.memory_space<vmem>>, vector<128x384xbf16>
    %c0_111 = arith.constant 0 : index
    %c0_112 = arith.constant 0 : index
    %314 = vector.load %arg8[%c0_111, %c0_112] : memref<1x384xf32, #tpu.memory_space<vmem>>, vector<1x384xf32>
    %c0_113 = arith.constant 0 : index
    %c0_114 = arith.constant 0 : index
    %315 = vector.load %arg9[%c0_113, %c0_114] : memref<1x128xf32, #tpu.memory_space<vmem>>, vector<1x128xf32>
    %c0_115 = arith.constant 0 : index
    %c0_116 = arith.constant 0 : index
    %c0_117 = arith.constant 0 : index
    %316 = vector.load %arg0[%c0_115, %c0_116, %c0_117] : memref<8x8x4xf32, #tpu.memory_space<vmem>>, vector<8x8x4xf32>
    %317 = vector.shape_cast %316 : vector<8x8x4xf32> to vector<64x4xf32>
    %318 = arith.truncf %317 : vector<64x4xf32> to vector<64x4xbf16>
    %cst_118 = arith.constant dense<0.000000e+00> : vector<64x384xf32>
    %319 = tpu.matmul %318, %312, %cst_118 {dimension_numbers = #tpu.dot_dimension_numbers<[1], [0], [0], [1], [0, 0, 1, 1], [], []>} : vector<64x4xbf16>, vector<4x384xbf16>, vector<64x384xf32> -> vector<64x384xf32>
    %320 = vector.broadcast %314 : vector<1x384xf32> to vector<64x384xf32>
    %321 = arith.addf %319, %320 : vector<64x384xf32>
    %322 = vector.shape_cast %321 : vector<64x384xf32> to vector<8x8x384xf32>
    %c0_119 = arith.constant 0 : index
    %c0_120 = arith.constant 0 : index
    %c0_121 = arith.constant 0 : index
    %323 = vector.load %arg21[%c0_119, %c0_120, %c0_121] : memref<8x8x384xf32, #tpu.memory_space<vmem>>, vector<8x8x384xf32>
    tpu.vector_store %arg21[%c0_119, %c0_120, %c0_121], %322 {strides = array<i32>} : memref<8x8x384xf32, #tpu.memory_space<vmem>>, vector<8x8x384xf32>,
    %324 = vector.shape_cast %315 : vector<1x128xf32> to vector<1x128xf32>
    %325 = vector.broadcast %324 : vector<1x128xf32> to vector<8x128xf32>
    %c0_i32_122 = arith.constant 0 : i32
    %326 = arith.index_cast %c0_i32_122 : i32 to index
    %c0_123 = arith.constant 0 : index
    %c0_124 = arith.constant 0 : index
    %327 = vector.load %arg21[%326, %c0_123, %c0_124] : memref<8x8x384xf32, #tpu.memory_space<vmem>>, vector<1x8x384xf32>
    %328 = vector.shape_cast %327 : vector<1x8x384xf32> to vector<8x384xf32>
    %329 = arith.truncf %311 : vector<8x128xf32> to vector<8x128xbf16>
    %cst_125 = arith.constant dense<0.000000e+00> : vector<8x384xf32>
    %330 = tpu.matmul %329, %313, %cst_125 {dimension_numbers = #tpu.dot_dimension_numbers<[1], [0], [0], [1], [0, 0, 1, 1], [], []>} : vector<8x128xbf16>, vector<128x384xbf16>, vector<8x384xf32> -> vector<8x384xf32>
    %331 = vector.extract_strided_slice %328 {offsets = [0, 0], sizes = [8, 128], strides = [1, 1]} : vector<8x384xf32> to vector<8x128xf32>
    %332 = vector.extract_strided_slice %330 {offsets = [0, 0], sizes = [8, 128], strides = [1, 1]} : vector<8x384xf32> to vector<8x128xf32>
    %333 = arith.addf %331, %332 : vector<8x128xf32>
    %cst_126 = arith.constant 0.000000e+00 : f32
    %334 = vector.broadcast %cst_126 : f32 to vector<8x128xf32>
    %335 = arith.subf %334, %333 : vector<8x128xf32>
    %336 = math.exp %335 : vector<8x128xf32>
    %cst_127 = arith.constant 1.000000e+00 : f32
    %337 = vector.broadcast %cst_127 : f32 to vector<8x128xf32>
    %338 = arith.addf %337, %336 : vector<8x128xf32>
    %cst_128 = arith.constant 1.000000e+00 : f32
    %339 = vector.broadcast %cst_128 : f32 to vector<8x128xf32>
    %340 = arith.divf %339, %338 : vector<8x128xf32>
    %341 = vector.extract_strided_slice %328 {offsets = [0, 128], sizes = [8, 128], strides = [1, 1]} : vector<8x384xf32> to vector<8x128xf32>
    %342 = vector.extract_strided_slice %330 {offsets = [0, 128], sizes = [8, 128], strides = [1, 1]} : vector<8x384xf32> to vector<8x128xf32>
    %343 = arith.addf %341, %342 : vector<8x128xf32>
    %cst_129 = arith.constant 0.000000e+00 : f32
    %344 = vector.broadcast %cst_129 : f32 to vector<8x128xf32>
    %345 = arith.subf %344, %343 : vector<8x128xf32>
    %346 = math.exp %345 : vector<8x128xf32>
    %cst_130 = arith.constant 1.000000e+00 : f32
    %347 = vector.broadcast %cst_130 : f32 to vector<8x128xf32>
    %348 = arith.addf %347, %346 : vector<8x128xf32>
    %cst_131 = arith.constant 1.000000e+00 : f32
    %349 = vector.broadcast %cst_131 : f32 to vector<8x128xf32>
    %350 = arith.divf %349, %348 : vector<8x128xf32>
    %351 = vector.extract_strided_slice %328 {offsets = [0, 256], sizes = [8, 128], strides = [1, 1]} : vector<8x384xf32> to vector<8x128xf32>
    %352 = vector.extract_strided_slice %330 {offsets = [0, 256], sizes = [8, 128], strides = [1, 1]} : vector<8x384xf32> to vector<8x128xf32>
    %353 = arith.addf %352, %325 : vector<8x128xf32>
    %354 = arith.mulf %340, %353 : vector<8x128xf32>
    %355 = arith.addf %351, %354 : vector<8x128xf32>
    %356 = math.tanh %355 : vector<8x128xf32>
    %357 = arith.subf %311, %356 : vector<8x128xf32>
    %358 = arith.mulf %350, %357 : vector<8x128xf32>
    %359 = arith.addf %356, %358 : vector<8x128xf32>
    %360 = arith.index_cast %c0_i32_122 : i32 to index
    %c0_132 = arith.constant 0 : index
    %c0_133 = arith.constant 0 : index
    %361 = vector.load %arg22[%360, %c0_132, %c0_133] : memref<8x8x128xf32, #tpu.memory_space<vmem>>, vector<1x8x128xf32>
    %362 = vector.shape_cast %361 : vector<1x8x128xf32> to vector<8x128xf32>
    %363 = vector.shape_cast %359 : vector<8x128xf32> to vector<1x8x128xf32>
    tpu.vector_store %arg22[%360, %c0_132, %c0_133], %363 {strides = array<i32>} : memref<8x8x128xf32, #tpu.memory_space<vmem>>, vector<1x8x128xf32>,
    %c1_i32_134 = arith.constant 1 : i32
    %364 = arith.index_cast %c1_i32_134 : i32 to index
    %c0_135 = arith.constant 0 : index
    %c0_136 = arith.constant 0 : index
    %365 = vector.load %arg21[%364, %c0_135, %c0_136] : memref<8x8x384xf32, #tpu.memory_space<vmem>>, vector<1x8x384xf32>
    %366 = vector.shape_cast %365 : vector<1x8x384xf32> to vector<8x384xf32>
    %367 = arith.truncf %359 : vector<8x128xf32> to vector<8x128xbf16>
    %cst_137 = arith.constant dense<0.000000e+00> : vector<8x384xf32>
    %368 = tpu.matmul %367, %313, %cst_137 {dimension_numbers = #tpu.dot_dimension_numbers<[1], [0], [0], [1], [0, 0, 1, 1], [], []>} : vector<8x128xbf16>, vector<128x384xbf16>, vector<8x384xf32> -> vector<8x384xf32>
    %369 = vector.extract_strided_slice %366 {offsets = [0, 0], sizes = [8, 128], strides = [1, 1]} : vector<8x384xf32> to vector<8x128xf32>
    %370 = vector.extract_strided_slice %368 {offsets = [0, 0], sizes = [8, 128], strides = [1, 1]} : vector<8x384xf32> to vector<8x128xf32>
    %371 = arith.addf %369, %370 : vector<8x128xf32>
    %cst_138 = arith.constant 0.000000e+00 : f32
    %372 = vector.broadcast %cst_138 : f32 to vector<8x128xf32>
    %373 = arith.subf %372, %371 : vector<8x128xf32>
    %374 = math.exp %373 : vector<8x128xf32>
    %cst_139 = arith.constant 1.000000e+00 : f32
    %375 = vector.broadcast %cst_139 : f32 to vector<8x128xf32>
    %376 = arith.addf %375, %374 : vector<8x128xf32>
    %cst_140 = arith.constant 1.000000e+00 : f32
    %377 = vector.broadcast %cst_140 : f32 to vector<8x128xf32>
    %378 = arith.divf %377, %376 : vector<8x128xf32>
    %379 = vector.extract_strided_slice %366 {offsets = [0, 128], sizes = [8, 128], strides = [1, 1]} : vector<8x384xf32> to vector<8x128xf32>
    %380 = vector.extract_strided_slice %368 {offsets = [0, 128], sizes = [8, 128], strides = [1, 1]} : vector<8x384xf32> to vector<8x128xf32>
    %381 = arith.addf %379, %380 : vector<8x128xf32>
    %cst_141 = arith.constant 0.000000e+00 : f32
    %382 = vector.broadcast %cst_141 : f32 to vector<8x128xf32>
    %383 = arith.subf %382, %381 : vector<8x128xf32>
    %384 = math.exp %383 : vector<8x128xf32>
    %cst_142 = arith.constant 1.000000e+00 : f32
    %385 = vector.broadcast %cst_142 : f32 to vector<8x128xf32>
    %386 = arith.addf %385, %384 : vector<8x128xf32>
    %cst_143 = arith.constant 1.000000e+00 : f32
    %387 = vector.broadcast %cst_143 : f32 to vector<8x128xf32>
    %388 = arith.divf %387, %386 : vector<8x128xf32>
    %389 = vector.extract_strided_slice %366 {offsets = [0, 256], sizes = [8, 128], strides = [1, 1]} : vector<8x384xf32> to vector<8x128xf32>
    %390 = vector.extract_strided_slice %368 {offsets = [0, 256], sizes = [8, 128], strides = [1, 1]} : vector<8x384xf32> to vector<8x128xf32>
    %391 = arith.addf %390, %325 : vector<8x128xf32>
    %392 = arith.mulf %378, %391 : vector<8x128xf32>
    %393 = arith.addf %389, %392 : vector<8x128xf32>
    %394 = math.tanh %393 : vector<8x128xf32>
    %395 = arith.subf %359, %394 : vector<8x128xf32>
    %396 = arith.mulf %388, %395 : vector<8x128xf32>
    %397 = arith.addf %394, %396 : vector<8x128xf32>
    %398 = arith.index_cast %c1_i32_134 : i32 to index
    %c0_144 = arith.constant 0 : index
    %c0_145 = arith.constant 0 : index
    %399 = vector.load %arg22[%398, %c0_144, %c0_145] : memref<8x8x128xf32, #tpu.memory_space<vmem>>, vector<1x8x128xf32>
    %400 = vector.shape_cast %399 : vector<1x8x128xf32> to vector<8x128xf32>
    %401 = vector.shape_cast %397 : vector<8x128xf32> to vector<1x8x128xf32>
    tpu.vector_store %arg22[%398, %c0_144, %c0_145], %401 {strides = array<i32>} : memref<8x8x128xf32, #tpu.memory_space<vmem>>, vector<1x8x128xf32>,
    %c2_i32_146 = arith.constant 2 : i32
    %402 = arith.index_cast %c2_i32_146 : i32 to index
    %c0_147 = arith.constant 0 : index
    %c0_148 = arith.constant 0 : index
    %403 = vector.load %arg21[%402, %c0_147, %c0_148] : memref<8x8x384xf32, #tpu.memory_space<vmem>>, vector<1x8x384xf32>
    %404 = vector.shape_cast %403 : vector<1x8x384xf32> to vector<8x384xf32>
    %405 = arith.truncf %397 : vector<8x128xf32> to vector<8x128xbf16>
    %cst_149 = arith.constant dense<0.000000e+00> : vector<8x384xf32>
    %406 = tpu.matmul %405, %313, %cst_149 {dimension_numbers = #tpu.dot_dimension_numbers<[1], [0], [0], [1], [0, 0, 1, 1], [], []>} : vector<8x128xbf16>, vector<128x384xbf16>, vector<8x384xf32> -> vector<8x384xf32>
    %407 = vector.extract_strided_slice %404 {offsets = [0, 0], sizes = [8, 128], strides = [1, 1]} : vector<8x384xf32> to vector<8x128xf32>
    %408 = vector.extract_strided_slice %406 {offsets = [0, 0], sizes = [8, 128], strides = [1, 1]} : vector<8x384xf32> to vector<8x128xf32>
    %409 = arith.addf %407, %408 : vector<8x128xf32>
    %cst_150 = arith.constant 0.000000e+00 : f32
    %410 = vector.broadcast %cst_150 : f32 to vector<8x128xf32>
    %411 = arith.subf %410, %409 : vector<8x128xf32>
    %412 = math.exp %411 : vector<8x128xf32>
    %cst_151 = arith.constant 1.000000e+00 : f32
    %413 = vector.broadcast %cst_151 : f32 to vector<8x128xf32>
    %414 = arith.addf %413, %412 : vector<8x128xf32>
    %cst_152 = arith.constant 1.000000e+00 : f32
    %415 = vector.broadcast %cst_152 : f32 to vector<8x128xf32>
    %416 = arith.divf %415, %414 : vector<8x128xf32>
    %417 = vector.extract_strided_slice %404 {offsets = [0, 128], sizes = [8, 128], strides = [1, 1]} : vector<8x384xf32> to vector<8x128xf32>
    %418 = vector.extract_strided_slice %406 {offsets = [0, 128], sizes = [8, 128], strides = [1, 1]} : vector<8x384xf32> to vector<8x128xf32>
    %419 = arith.addf %417, %418 : vector<8x128xf32>
    %cst_153 = arith.constant 0.000000e+00 : f32
    %420 = vector.broadcast %cst_153 : f32 to vector<8x128xf32>
    %421 = arith.subf %420, %419 : vector<8x128xf32>
    %422 = math.exp %421 : vector<8x128xf32>
    %cst_154 = arith.constant 1.000000e+00 : f32
    %423 = vector.broadcast %cst_154 : f32 to vector<8x128xf32>
    %424 = arith.addf %423, %422 : vector<8x128xf32>
    %cst_155 = arith.constant 1.000000e+00 : f32
    %425 = vector.broadcast %cst_155 : f32 to vector<8x128xf32>
    %426 = arith.divf %425, %424 : vector<8x128xf32>
    %427 = vector.extract_strided_slice %404 {offsets = [0, 256], sizes = [8, 128], strides = [1, 1]} : vector<8x384xf32> to vector<8x128xf32>
    %428 = vector.extract_strided_slice %406 {offsets = [0, 256], sizes = [8, 128], strides = [1, 1]} : vector<8x384xf32> to vector<8x128xf32>
    %429 = arith.addf %428, %325 : vector<8x128xf32>
    %430 = arith.mulf %416, %429 : vector<8x128xf32>
    %431 = arith.addf %427, %430 : vector<8x128xf32>
    %432 = math.tanh %431 : vector<8x128xf32>
    %433 = arith.subf %397, %432 : vector<8x128xf32>
    %434 = arith.mulf %426, %433 : vector<8x128xf32>
    %435 = arith.addf %432, %434 : vector<8x128xf32>
    %436 = arith.index_cast %c2_i32_146 : i32 to index
    %c0_156 = arith.constant 0 : index
    %c0_157 = arith.constant 0 : index
    %437 = vector.load %arg22[%436, %c0_156, %c0_157] : memref<8x8x128xf32, #tpu.memory_space<vmem>>, vector<1x8x128xf32>
    %438 = vector.shape_cast %437 : vector<1x8x128xf32> to vector<8x128xf32>
    %439 = vector.shape_cast %435 : vector<8x128xf32> to vector<1x8x128xf32>
    tpu.vector_store %arg22[%436, %c0_156, %c0_157], %439 {strides = array<i32>} : memref<8x8x128xf32, #tpu.memory_space<vmem>>, vector<1x8x128xf32>,
    %c3_i32_158 = arith.constant 3 : i32
    %440 = arith.index_cast %c3_i32_158 : i32 to index
    %c0_159 = arith.constant 0 : index
    %c0_160 = arith.constant 0 : index
    %441 = vector.load %arg21[%440, %c0_159, %c0_160] : memref<8x8x384xf32, #tpu.memory_space<vmem>>, vector<1x8x384xf32>
    %442 = vector.shape_cast %441 : vector<1x8x384xf32> to vector<8x384xf32>
    %443 = arith.truncf %435 : vector<8x128xf32> to vector<8x128xbf16>
    %cst_161 = arith.constant dense<0.000000e+00> : vector<8x384xf32>
    %444 = tpu.matmul %443, %313, %cst_161 {dimension_numbers = #tpu.dot_dimension_numbers<[1], [0], [0], [1], [0, 0, 1, 1], [], []>} : vector<8x128xbf16>, vector<128x384xbf16>, vector<8x384xf32> -> vector<8x384xf32>
    %445 = vector.extract_strided_slice %442 {offsets = [0, 0], sizes = [8, 128], strides = [1, 1]} : vector<8x384xf32> to vector<8x128xf32>
    %446 = vector.extract_strided_slice %444 {offsets = [0, 0], sizes = [8, 128], strides = [1, 1]} : vector<8x384xf32> to vector<8x128xf32>
    %447 = arith.addf %445, %446 : vector<8x128xf32>
    %cst_162 = arith.constant 0.000000e+00 : f32
    %448 = vector.broadcast %cst_162 : f32 to vector<8x128xf32>
    %449 = arith.subf %448, %447 : vector<8x128xf32>
    %450 = math.exp %449 : vector<8x128xf32>
    %cst_163 = arith.constant 1.000000e+00 : f32
    %451 = vector.broadcast %cst_163 : f32 to vector<8x128xf32>
    %452 = arith.addf %451, %450 : vector<8x128xf32>
    %cst_164 = arith.constant 1.000000e+00 : f32
    %453 = vector.broadcast %cst_164 : f32 to vector<8x128xf32>
    %454 = arith.divf %453, %452 : vector<8x128xf32>
    %455 = vector.extract_strided_slice %442 {offsets = [0, 128], sizes = [8, 128], strides = [1, 1]} : vector<8x384xf32> to vector<8x128xf32>
    %456 = vector.extract_strided_slice %444 {offsets = [0, 128], sizes = [8, 128], strides = [1, 1]} : vector<8x384xf32> to vector<8x128xf32>
    %457 = arith.addf %455, %456 : vector<8x128xf32>
    %cst_165 = arith.constant 0.000000e+00 : f32
    %458 = vector.broadcast %cst_165 : f32 to vector<8x128xf32>
    %459 = arith.subf %458, %457 : vector<8x128xf32>
    %460 = math.exp %459 : vector<8x128xf32>
    %cst_166 = arith.constant 1.000000e+00 : f32
    %461 = vector.broadcast %cst_166 : f32 to vector<8x128xf32>
    %462 = arith.addf %461, %460 : vector<8x128xf32>
    %cst_167 = arith.constant 1.000000e+00 : f32
    %463 = vector.broadcast %cst_167 : f32 to vector<8x128xf32>
    %464 = arith.divf %463, %462 : vector<8x128xf32>
    %465 = vector.extract_strided_slice %442 {offsets = [0, 256], sizes = [8, 128], strides = [1, 1]} : vector<8x384xf32> to vector<8x128xf32>
    %466 = vector.extract_strided_slice %444 {offsets = [0, 256], sizes = [8, 128], strides = [1, 1]} : vector<8x384xf32> to vector<8x128xf32>
    %467 = arith.addf %466, %325 : vector<8x128xf32>
    %468 = arith.mulf %454, %467 : vector<8x128xf32>
    %469 = arith.addf %465, %468 : vector<8x128xf32>
    %470 = math.tanh %469 : vector<8x128xf32>
    %471 = arith.subf %435, %470 : vector<8x128xf32>
    %472 = arith.mulf %464, %471 : vector<8x128xf32>
    %473 = arith.addf %470, %472 : vector<8x128xf32>
    %474 = arith.index_cast %c3_i32_158 : i32 to index
    %c0_168 = arith.constant 0 : index
    %c0_169 = arith.constant 0 : index
    %475 = vector.load %arg22[%474, %c0_168, %c0_169] : memref<8x8x128xf32, #tpu.memory_space<vmem>>, vector<1x8x128xf32>
    %476 = vector.shape_cast %475 : vector<1x8x128xf32> to vector<8x128xf32>
    %477 = vector.shape_cast %473 : vector<8x128xf32> to vector<1x8x128xf32>
    tpu.vector_store %arg22[%474, %c0_168, %c0_169], %477 {strides = array<i32>} : memref<8x8x128xf32, #tpu.memory_space<vmem>>, vector<1x8x128xf32>,
    %c4_i32_170 = arith.constant 4 : i32
    %478 = arith.index_cast %c4_i32_170 : i32 to index
    %c0_171 = arith.constant 0 : index
    %c0_172 = arith.constant 0 : index
    %479 = vector.load %arg21[%478, %c0_171, %c0_172] : memref<8x8x384xf32, #tpu.memory_space<vmem>>, vector<1x8x384xf32>
    %480 = vector.shape_cast %479 : vector<1x8x384xf32> to vector<8x384xf32>
    %481 = arith.truncf %473 : vector<8x128xf32> to vector<8x128xbf16>
    %cst_173 = arith.constant dense<0.000000e+00> : vector<8x384xf32>
    %482 = tpu.matmul %481, %313, %cst_173 {dimension_numbers = #tpu.dot_dimension_numbers<[1], [0], [0], [1], [0, 0, 1, 1], [], []>} : vector<8x128xbf16>, vector<128x384xbf16>, vector<8x384xf32> -> vector<8x384xf32>
    %483 = vector.extract_strided_slice %480 {offsets = [0, 0], sizes = [8, 128], strides = [1, 1]} : vector<8x384xf32> to vector<8x128xf32>
    %484 = vector.extract_strided_slice %482 {offsets = [0, 0], sizes = [8, 128], strides = [1, 1]} : vector<8x384xf32> to vector<8x128xf32>
    %485 = arith.addf %483, %484 : vector<8x128xf32>
    %cst_174 = arith.constant 0.000000e+00 : f32
    %486 = vector.broadcast %cst_174 : f32 to vector<8x128xf32>
    %487 = arith.subf %486, %485 : vector<8x128xf32>
    %488 = math.exp %487 : vector<8x128xf32>
    %cst_175 = arith.constant 1.000000e+00 : f32
    %489 = vector.broadcast %cst_175 : f32 to vector<8x128xf32>
    %490 = arith.addf %489, %488 : vector<8x128xf32>
    %cst_176 = arith.constant 1.000000e+00 : f32
    %491 = vector.broadcast %cst_176 : f32 to vector<8x128xf32>
    %492 = arith.divf %491, %490 : vector<8x128xf32>
    %493 = vector.extract_strided_slice %480 {offsets = [0, 128], sizes = [8, 128], strides = [1, 1]} : vector<8x384xf32> to vector<8x128xf32>
    %494 = vector.extract_strided_slice %482 {offsets = [0, 128], sizes = [8, 128], strides = [1, 1]} : vector<8x384xf32> to vector<8x128xf32>
    %495 = arith.addf %493, %494 : vector<8x128xf32>
    %cst_177 = arith.constant 0.000000e+00 : f32
    %496 = vector.broadcast %cst_177 : f32 to vector<8x128xf32>
    %497 = arith.subf %496, %495 : vector<8x128xf32>
    %498 = math.exp %497 : vector<8x128xf32>
    %cst_178 = arith.constant 1.000000e+00 : f32
    %499 = vector.broadcast %cst_178 : f32 to vector<8x128xf32>
    %500 = arith.addf %499, %498 : vector<8x128xf32>
    %cst_179 = arith.constant 1.000000e+00 : f32
    %501 = vector.broadcast %cst_179 : f32 to vector<8x128xf32>
    %502 = arith.divf %501, %500 : vector<8x128xf32>
    %503 = vector.extract_strided_slice %480 {offsets = [0, 256], sizes = [8, 128], strides = [1, 1]} : vector<8x384xf32> to vector<8x128xf32>
    %504 = vector.extract_strided_slice %482 {offsets = [0, 256], sizes = [8, 128], strides = [1, 1]} : vector<8x384xf32> to vector<8x128xf32>
    %505 = arith.addf %504, %325 : vector<8x128xf32>
    %506 = arith.mulf %492, %505 : vector<8x128xf32>
    %507 = arith.addf %503, %506 : vector<8x128xf32>
    %508 = math.tanh %507 : vector<8x128xf32>
    %509 = arith.subf %473, %508 : vector<8x128xf32>
    %510 = arith.mulf %502, %509 : vector<8x128xf32>
    %511 = arith.addf %508, %510 : vector<8x128xf32>
    %512 = arith.index_cast %c4_i32_170 : i32 to index
    %c0_180 = arith.constant 0 : index
    %c0_181 = arith.constant 0 : index
    %513 = vector.load %arg22[%512, %c0_180, %c0_181] : memref<8x8x128xf32, #tpu.memory_space<vmem>>, vector<1x8x128xf32>
    %514 = vector.shape_cast %513 : vector<1x8x128xf32> to vector<8x128xf32>
    %515 = vector.shape_cast %511 : vector<8x128xf32> to vector<1x8x128xf32>
    tpu.vector_store %arg22[%512, %c0_180, %c0_181], %515 {strides = array<i32>} : memref<8x8x128xf32, #tpu.memory_space<vmem>>, vector<1x8x128xf32>,
    %c5_i32_182 = arith.constant 5 : i32
    %516 = arith.index_cast %c5_i32_182 : i32 to index
    %c0_183 = arith.constant 0 : index
    %c0_184 = arith.constant 0 : index
    %517 = vector.load %arg21[%516, %c0_183, %c0_184] : memref<8x8x384xf32, #tpu.memory_space<vmem>>, vector<1x8x384xf32>
    %518 = vector.shape_cast %517 : vector<1x8x384xf32> to vector<8x384xf32>
    %519 = arith.truncf %511 : vector<8x128xf32> to vector<8x128xbf16>
    %cst_185 = arith.constant dense<0.000000e+00> : vector<8x384xf32>
    %520 = tpu.matmul %519, %313, %cst_185 {dimension_numbers = #tpu.dot_dimension_numbers<[1], [0], [0], [1], [0, 0, 1, 1], [], []>} : vector<8x128xbf16>, vector<128x384xbf16>, vector<8x384xf32> -> vector<8x384xf32>
    %521 = vector.extract_strided_slice %518 {offsets = [0, 0], sizes = [8, 128], strides = [1, 1]} : vector<8x384xf32> to vector<8x128xf32>
    %522 = vector.extract_strided_slice %520 {offsets = [0, 0], sizes = [8, 128], strides = [1, 1]} : vector<8x384xf32> to vector<8x128xf32>
    %523 = arith.addf %521, %522 : vector<8x128xf32>
    %cst_186 = arith.constant 0.000000e+00 : f32
    %524 = vector.broadcast %cst_186 : f32 to vector<8x128xf32>
    %525 = arith.subf %524, %523 : vector<8x128xf32>
    %526 = math.exp %525 : vector<8x128xf32>
    %cst_187 = arith.constant 1.000000e+00 : f32
    %527 = vector.broadcast %cst_187 : f32 to vector<8x128xf32>
    %528 = arith.addf %527, %526 : vector<8x128xf32>
    %cst_188 = arith.constant 1.000000e+00 : f32
    %529 = vector.broadcast %cst_188 : f32 to vector<8x128xf32>
    %530 = arith.divf %529, %528 : vector<8x128xf32>
    %531 = vector.extract_strided_slice %518 {offsets = [0, 128], sizes = [8, 128], strides = [1, 1]} : vector<8x384xf32> to vector<8x128xf32>
    %532 = vector.extract_strided_slice %520 {offsets = [0, 128], sizes = [8, 128], strides = [1, 1]} : vector<8x384xf32> to vector<8x128xf32>
    %533 = arith.addf %531, %532 : vector<8x128xf32>
    %cst_189 = arith.constant 0.000000e+00 : f32
    %534 = vector.broadcast %cst_189 : f32 to vector<8x128xf32>
    %535 = arith.subf %534, %533 : vector<8x128xf32>
    %536 = math.exp %535 : vector<8x128xf32>
    %cst_190 = arith.constant 1.000000e+00 : f32
    %537 = vector.broadcast %cst_190 : f32 to vector<8x128xf32>
    %538 = arith.addf %537, %536 : vector<8x128xf32>
    %cst_191 = arith.constant 1.000000e+00 : f32
    %539 = vector.broadcast %cst_191 : f32 to vector<8x128xf32>
    %540 = arith.divf %539, %538 : vector<8x128xf32>
    %541 = vector.extract_strided_slice %518 {offsets = [0, 256], sizes = [8, 128], strides = [1, 1]} : vector<8x384xf32> to vector<8x128xf32>
    %542 = vector.extract_strided_slice %520 {offsets = [0, 256], sizes = [8, 128], strides = [1, 1]} : vector<8x384xf32> to vector<8x128xf32>
    %543 = arith.addf %542, %325 : vector<8x128xf32>
    %544 = arith.mulf %530, %543 : vector<8x128xf32>
    %545 = arith.addf %541, %544 : vector<8x128xf32>
    %546 = math.tanh %545 : vector<8x128xf32>
    %547 = arith.subf %511, %546 : vector<8x128xf32>
    %548 = arith.mulf %540, %547 : vector<8x128xf32>
    %549 = arith.addf %546, %548 : vector<8x128xf32>
    %550 = arith.index_cast %c5_i32_182 : i32 to index
    %c0_192 = arith.constant 0 : index
    %c0_193 = arith.constant 0 : index
    %551 = vector.load %arg22[%550, %c0_192, %c0_193] : memref<8x8x128xf32, #tpu.memory_space<vmem>>, vector<1x8x128xf32>
    %552 = vector.shape_cast %551 : vector<1x8x128xf32> to vector<8x128xf32>
    %553 = vector.shape_cast %549 : vector<8x128xf32> to vector<1x8x128xf32>
    tpu.vector_store %arg22[%550, %c0_192, %c0_193], %553 {strides = array<i32>} : memref<8x8x128xf32, #tpu.memory_space<vmem>>, vector<1x8x128xf32>,
    %c6_i32_194 = arith.constant 6 : i32
    %554 = arith.index_cast %c6_i32_194 : i32 to index
    %c0_195 = arith.constant 0 : index
    %c0_196 = arith.constant 0 : index
    %555 = vector.load %arg21[%554, %c0_195, %c0_196] : memref<8x8x384xf32, #tpu.memory_space<vmem>>, vector<1x8x384xf32>
    %556 = vector.shape_cast %555 : vector<1x8x384xf32> to vector<8x384xf32>
    %557 = arith.truncf %549 : vector<8x128xf32> to vector<8x128xbf16>
    %cst_197 = arith.constant dense<0.000000e+00> : vector<8x384xf32>
    %558 = tpu.matmul %557, %313, %cst_197 {dimension_numbers = #tpu.dot_dimension_numbers<[1], [0], [0], [1], [0, 0, 1, 1], [], []>} : vector<8x128xbf16>, vector<128x384xbf16>, vector<8x384xf32> -> vector<8x384xf32>
    %559 = vector.extract_strided_slice %556 {offsets = [0, 0], sizes = [8, 128], strides = [1, 1]} : vector<8x384xf32> to vector<8x128xf32>
    %560 = vector.extract_strided_slice %558 {offsets = [0, 0], sizes = [8, 128], strides = [1, 1]} : vector<8x384xf32> to vector<8x128xf32>
    %561 = arith.addf %559, %560 : vector<8x128xf32>
    %cst_198 = arith.constant 0.000000e+00 : f32
    %562 = vector.broadcast %cst_198 : f32 to vector<8x128xf32>
    %563 = arith.subf %562, %561 : vector<8x128xf32>
    %564 = math.exp %563 : vector<8x128xf32>
    %cst_199 = arith.constant 1.000000e+00 : f32
    %565 = vector.broadcast %cst_199 : f32 to vector<8x128xf32>
    %566 = arith.addf %565, %564 : vector<8x128xf32>
    %cst_200 = arith.constant 1.000000e+00 : f32
    %567 = vector.broadcast %cst_200 : f32 to vector<8x128xf32>
    %568 = arith.divf %567, %566 : vector<8x128xf32>
    %569 = vector.extract_strided_slice %556 {offsets = [0, 128], sizes = [8, 128], strides = [1, 1]} : vector<8x384xf32> to vector<8x128xf32>
    %570 = vector.extract_strided_slice %558 {offsets = [0, 128], sizes = [8, 128], strides = [1, 1]} : vector<8x384xf32> to vector<8x128xf32>
    %571 = arith.addf %569, %570 : vector<8x128xf32>
    %cst_201 = arith.constant 0.000000e+00 : f32
    %572 = vector.broadcast %cst_201 : f32 to vector<8x128xf32>
    %573 = arith.subf %572, %571 : vector<8x128xf32>
    %574 = math.exp %573 : vector<8x128xf32>
    %cst_202 = arith.constant 1.000000e+00 : f32
    %575 = vector.broadcast %cst_202 : f32 to vector<8x128xf32>
    %576 = arith.addf %575, %574 : vector<8x128xf32>
    %cst_203 = arith.constant 1.000000e+00 : f32
    %577 = vector.broadcast %cst_203 : f32 to vector<8x128xf32>
    %578 = arith.divf %577, %576 : vector<8x128xf32>
    %579 = vector.extract_strided_slice %556 {offsets = [0, 256], sizes = [8, 128], strides = [1, 1]} : vector<8x384xf32> to vector<8x128xf32>
    %580 = vector.extract_strided_slice %558 {offsets = [0, 256], sizes = [8, 128], strides = [1, 1]} : vector<8x384xf32> to vector<8x128xf32>
    %581 = arith.addf %580, %325 : vector<8x128xf32>
    %582 = arith.mulf %568, %581 : vector<8x128xf32>
    %583 = arith.addf %579, %582 : vector<8x128xf32>
    %584 = math.tanh %583 : vector<8x128xf32>
    %585 = arith.subf %549, %584 : vector<8x128xf32>
    %586 = arith.mulf %578, %585 : vector<8x128xf32>
    %587 = arith.addf %584, %586 : vector<8x128xf32>
    %588 = arith.index_cast %c6_i32_194 : i32 to index
    %c0_204 = arith.constant 0 : index
    %c0_205 = arith.constant 0 : index
    %589 = vector.load %arg22[%588, %c0_204, %c0_205] : memref<8x8x128xf32, #tpu.memory_space<vmem>>, vector<1x8x128xf32>
    %590 = vector.shape_cast %589 : vector<1x8x128xf32> to vector<8x128xf32>
    %591 = vector.shape_cast %587 : vector<8x128xf32> to vector<1x8x128xf32>
    tpu.vector_store %arg22[%588, %c0_204, %c0_205], %591 {strides = array<i32>} : memref<8x8x128xf32, #tpu.memory_space<vmem>>, vector<1x8x128xf32>,
    %c7_i32_206 = arith.constant 7 : i32
    %592 = arith.index_cast %c7_i32_206 : i32 to index
    %c0_207 = arith.constant 0 : index
    %c0_208 = arith.constant 0 : index
    %593 = vector.load %arg21[%592, %c0_207, %c0_208] : memref<8x8x384xf32, #tpu.memory_space<vmem>>, vector<1x8x384xf32>
    %594 = vector.shape_cast %593 : vector<1x8x384xf32> to vector<8x384xf32>
    %595 = arith.truncf %587 : vector<8x128xf32> to vector<8x128xbf16>
    %cst_209 = arith.constant dense<0.000000e+00> : vector<8x384xf32>
    %596 = tpu.matmul %595, %313, %cst_209 {dimension_numbers = #tpu.dot_dimension_numbers<[1], [0], [0], [1], [0, 0, 1, 1], [], []>} : vector<8x128xbf16>, vector<128x384xbf16>, vector<8x384xf32> -> vector<8x384xf32>
    %597 = vector.extract_strided_slice %594 {offsets = [0, 0], sizes = [8, 128], strides = [1, 1]} : vector<8x384xf32> to vector<8x128xf32>
    %598 = vector.extract_strided_slice %596 {offsets = [0, 0], sizes = [8, 128], strides = [1, 1]} : vector<8x384xf32> to vector<8x128xf32>
    %599 = arith.addf %597, %598 : vector<8x128xf32>
    %cst_210 = arith.constant 0.000000e+00 : f32
    %600 = vector.broadcast %cst_210 : f32 to vector<8x128xf32>
    %601 = arith.subf %600, %599 : vector<8x128xf32>
    %602 = math.exp %601 : vector<8x128xf32>
    %cst_211 = arith.constant 1.000000e+00 : f32
    %603 = vector.broadcast %cst_211 : f32 to vector<8x128xf32>
    %604 = arith.addf %603, %602 : vector<8x128xf32>
    %cst_212 = arith.constant 1.000000e+00 : f32
    %605 = vector.broadcast %cst_212 : f32 to vector<8x128xf32>
    %606 = arith.divf %605, %604 : vector<8x128xf32>
    %607 = vector.extract_strided_slice %594 {offsets = [0, 128], sizes = [8, 128], strides = [1, 1]} : vector<8x384xf32> to vector<8x128xf32>
    %608 = vector.extract_strided_slice %596 {offsets = [0, 128], sizes = [8, 128], strides = [1, 1]} : vector<8x384xf32> to vector<8x128xf32>
    %609 = arith.addf %607, %608 : vector<8x128xf32>
    %cst_213 = arith.constant 0.000000e+00 : f32
    %610 = vector.broadcast %cst_213 : f32 to vector<8x128xf32>
    %611 = arith.subf %610, %609 : vector<8x128xf32>
    %612 = math.exp %611 : vector<8x128xf32>
    %cst_214 = arith.constant 1.000000e+00 : f32
    %613 = vector.broadcast %cst_214 : f32 to vector<8x128xf32>
    %614 = arith.addf %613, %612 : vector<8x128xf32>
    %cst_215 = arith.constant 1.000000e+00 : f32
    %615 = vector.broadcast %cst_215 : f32 to vector<8x128xf32>
    %616 = arith.divf %615, %614 : vector<8x128xf32>
    %617 = vector.extract_strided_slice %594 {offsets = [0, 256], sizes = [8, 128], strides = [1, 1]} : vector<8x384xf32> to vector<8x128xf32>
    %618 = vector.extract_strided_slice %596 {offsets = [0, 256], sizes = [8, 128], strides = [1, 1]} : vector<8x384xf32> to vector<8x128xf32>
    %619 = arith.addf %618, %325 : vector<8x128xf32>
    %620 = arith.mulf %606, %619 : vector<8x128xf32>
    %621 = arith.addf %617, %620 : vector<8x128xf32>
    %622 = math.tanh %621 : vector<8x128xf32>
    %623 = arith.subf %587, %622 : vector<8x128xf32>
    %624 = arith.mulf %616, %623 : vector<8x128xf32>
    %625 = arith.addf %622, %624 : vector<8x128xf32>
    %626 = arith.index_cast %c7_i32_206 : i32 to index
    %c0_216 = arith.constant 0 : index
    %c0_217 = arith.constant 0 : index
    %627 = vector.load %arg22[%626, %c0_216, %c0_217] : memref<8x8x128xf32, #tpu.memory_space<vmem>>, vector<1x8x128xf32>
    %628 = vector.shape_cast %627 : vector<1x8x128xf32> to vector<8x128xf32>
    %629 = vector.shape_cast %625 : vector<8x128xf32> to vector<1x8x128xf32>
    tpu.vector_store %arg22[%626, %c0_216, %c0_217], %629 {strides = array<i32>} : memref<8x8x128xf32, #tpu.memory_space<vmem>>, vector<1x8x128xf32>,
    %c8_i32_218 = arith.constant 8 : i32
    %c0_219 = arith.constant 0 : index
    %c0_220 = arith.constant 0 : index
    %c0_221 = arith.constant 0 : index
    %630 = vector.load %arg22[%c0_219, %c0_220, %c0_221] : memref<8x8x128xf32, #tpu.memory_space<vmem>>, vector<8x8x128xf32>
    %631 = vector.shape_cast %630 : vector<8x8x128xf32> to vector<64x128xf32>
    %c0_222 = arith.constant 0 : index
    %c0_223 = arith.constant 0 : index
    %632 = vector.load %arg16[%c0_222, %c0_223] : memref<128x128xbf16, #tpu.memory_space<vmem>>, vector<128x128xbf16>
    %633 = arith.truncf %631 : vector<64x128xf32> to vector<64x128xbf16>
    %cst_224 = arith.constant dense<0.000000e+00> : vector<64x128xf32>
    %634 = tpu.matmul %633, %632, %cst_224 {dimension_numbers = #tpu.dot_dimension_numbers<[1], [0], [0], [1], [0, 0, 1, 1], [], []>} : vector<64x128xbf16>, vector<128x128xbf16>, vector<64x128xf32> -> vector<64x128xf32>
    %c0_225 = arith.constant 0 : index
    %c0_226 = arith.constant 0 : index
    %635 = vector.load %arg17[%c0_225, %c0_226] : memref<1x128xf32, #tpu.memory_space<vmem>>, vector<1x128xf32>
    %636 = vector.broadcast %635 : vector<1x128xf32> to vector<64x128xf32>
    %637 = arith.addf %634, %636 : vector<64x128xf32>
    %638 = vector.shape_cast %637 : vector<64x128xf32> to vector<8x8x128xf32>
    %c0_227 = arith.constant 0 : index
    %c0_228 = arith.constant 0 : index
    %c0_229 = arith.constant 0 : index
    %639 = vector.load %arg18[%c0_227, %c0_228, %c0_229] : memref<8x8x128xf32, #tpu.memory_space<vmem>>, vector<8x8x128xf32>
    tpu.vector_store %arg18[%c0_227, %c0_228, %c0_229], %638 {strides = array<i32>} : memref<8x8x128xf32, #tpu.memory_space<vmem>>, vector<8x8x128xf32>,
    return
  }
}

</mosaic_0001>

<bundles_post_ra>
// kernel: error_compensation_vae_forward.1
= control target key start
LH: loop header
LB: loop body
LE: loop exit
PB: predicated region body
PF: predicated region fallthrough
CT: control target
= control target key end

     0   :  { %s5883_s0 = inlined_call_operand.vmem [shape: f32[8,8,4], index: 0, kind: input, shape index: {}]   ;;  %s5884_s1 = inlined_call_operand.vmem [shape: f32[8,128], index: 1, kind: input, shape index: {}]   ;;  %s5885_s2 = inlined_call_operand.vmem [shape: bf16[4,384], index: 2, kind: input, shape index: {}]   ;;  %s5886_s3 = inlined_call_operand.hbm [shape: bf16[128,384], index: 3, kind: input, shape index: {}]   ;;  %s5887_s4 = inlined_call_operand.vmem [shape: f32[1,384], index: 4, kind: input, shape index: {}]   ;;  %s5888_s5 = inlined_call_operand.hbm [shape: f32[1,128], index: 5, kind: input, shape index: {}]   ;;  %s5889_s6 = inlined_call_operand.hbm [shape: bf16[4,384], index: 6, kind: input, shape index: {}]   ;;  %s5890_s7 = inlined_call_operand.hbm [shape: bf16[128,384], index: 7, kind: input, shape index: {}]   ;;  %s5891_s8 = inlined_call_operand.hbm [shape: f32[1,384], index: 8, kind: input, shape index: {}]   ;;  %s5892_s9 = inlined_call_operand.hbm [shape: f32[1,128], index: 9, kind: input, shape index: {}]   ;;  %s5893_s10 = inlined_call_operand.vmem [shape: bf16[128,128], index: 10, kind: input, shape index: {}]   ;;  %s5894_s11 = inlined_call_operand.hbm [shape: f32[1,128], index: 11, kind: input, shape index: {}]   ;;  %s5895_s12 = inlined_call_operand.vmem [shape: bf16[128,128], index: 12, kind: input, shape index: {}]   ;;  %s5896_s13 = inlined_call_operand.hbm [shape: f32[1,128], index: 13, kind: input, shape index: {}]   ;;  %s5897_s14 = inlined_call_operand.hbm [shape: bf16[128,128], index: 14, kind: input, shape index: {}]   ;;  %s5898_s15 = inlined_call_operand.hbm [shape: f32[1,128], index: 15, kind: input, shape index: {}]   ;;  %s5899_s16 = inlined_call_operand.hbm [shape: bf16[128,128], index: 16, kind: input, shape index: {}]   ;;  %s5900_s17 = inlined_call_operand.hbm [shape: f32[1,128], index: 17, kind: input, shape index: {}]   ;;  %s5901_s18 = inlined_call_operand.vmem [shape: f32[8,8,128], index: 18, kind: output, shape index: {0}]   ;;  %s5902_s19 = inlined_call_operand.vmem [shape: f32[8,128], index: 19, kind: output, shape index: {1}]   ;;  %s5903_s20 = inlined_call_operand.vmem [shape: f32[8,128], index: 20, kind: output, shape index: {2}]  }
   0x1   :  { %5916 = sst [smem:[#allocation38_spill]] %s5883_s0 }
   0x2   :  { %5917 = sst [smem:[#allocation39_spill]] %s5884_s1 }
   0x3   :  { %5918 = sst [smem:[#allocation40_spill]] %s5885_s2 }
   0x4   :  { %5919 = sst [smem:[#allocation41_spill]] %s5886_s3 }
   0x5   :  { %5920 = sst [smem:[#allocation42_spill]] %s5887_s4 }
   0x6   :  { %26 = vsyncpa [#allocation5], 0 }
   0x7   :  { %27 = vsyncpa [#allocation7], 0 }
   0x8   :  { %28 = vsyncpa [#allocation10], 0 }
   0x9   :  { %29 = vsyncpa [#allocation13], 0 }
   0xa   :  { %30 = vsyncpa [#allocation16], 0 }
   0xb   :  { %31 = vsyncpa [#allocation19], 0 }
   0xc   :  { %32 = vsyncpa [#allocation22], 0  ;;  %s4546_s1 = smov [#allocation6]  }
   0xd   :  { %s59_s22 = sshll.u32 %s4546_s1, 4  ;;  %s60_s22 = int_to_ptr.vmem [resolvable:$true] %s59_s22 }
   0xe   :  { %s4300_s23 = scalar_lea.vmem %s60_s22, 16  ;;  %s4304_s24 = scalar_lea.vmem %s60_s22, 32 }
   0xf   :  { %p4301_p0 = scmp.ne.s32.totalorder %s60_s22, %s4300_s23  ;;  %p4305_p1 = scmp.lt.s32.totalorder %s60_s22, %s60_s22 }
  0x10   :  { %p4306_p2 = scmp.lt.s32.totalorder %s4304_s24, %s4300_s23 }
  0x12   :  { %p4307_p3 = por %p4306_p2, %p4305_p1 }
  0x14   :  { %p4308_p4 = pnand %p4307_p3, %p4301_p0 }
  0x16   :  { %4311 = shalt.err (!%p4308_p4)
}
  0x17   :  { %62 = dma.hbm_to_vmem [thread:$0]  %s5888_s5, 16, %s60_s22, [#allocation7]  }
  0x18   :  { %s4547_s3 = smov [#allocation9]   ;;  %s4548_s27 = smov [#allocation12]  }
  0x19   :  { %s78_s26 = sshll.u32 %s4547_s3, 4  ;;  %s101_s28 = sshll.u32 %s4548_s27, 4  ;;  %s79_s26 = int_to_ptr.vmem [resolvable:$true] %s78_s26  ;;  %s102_s28 = int_to_ptr.vmem [resolvable:$true] %s101_s28 }
  0x1a   :  { %s4320_s4 = scalar_lea.vmem %s79_s26, 3072  ;;  %p4325_p6 = scmp.lt.s32.totalorder %s79_s26, %s79_s26 }
  0x1b   :  { %p4321_p5 = scmp.ne.s32.totalorder %s79_s26, %s4320_s4  ;;  %p4326_p7 = scmp.lt.s32.totalorder %s4320_s4, %s4320_s4 }
  0x1d   :  { %p4327_p8 = por %p4326_p7, %p4325_p6 }
  0x1f   :  { %p4328_p9 = pnand %p4327_p8, %p4321_p5 }
  0x21   :  { %4331 = shalt.err (!%p4328_p9)
}
  0x22   :  { %s4549_s29 = smov 192   ;;  %s4550_s30 = smov 12  }
  0x23   :  { %84 = dma.hbm_to_vmem [thread:$0]  %s5890_s7, 3072, %s79_s26, [#allocation10], %s4549_s29, %s4549_s29, %s4550_s30  }
  0x24   :  { %s4340_s5 = scalar_lea.vmem %s102_s28, 16  ;;  %s4344_s1 = scalar_lea.vmem %s102_s28, 32 }
  0x25   :  { %p4341_p10 = scmp.ne.s32.totalorder %s102_s28, %s4340_s5  ;;  %p4345_p11 = scmp.lt.s32.totalorder %s102_s28, %s102_s28 }
  0x26   :  { %p4346_p12 = scmp.lt.s32.totalorder %s4344_s1, %s4340_s5 }
  0x28   :  { %p4347_p13 = por %p4346_p12, %p4345_p11 }
  0x2a   :  { %p4348_p0 = pnand %p4347_p13, %p4341_p10 }
  0x2c   :  { %4351 = shalt.err (!%p4348_p0)
}
  0x2d   :  { %104 = dma.hbm_to_vmem [thread:$0]  %s5892_s9, 16, %s102_s28, [#allocation13]  }
  0x2e   :  { %s4551_s24 = smov [#allocation15]   ;;  %s4552_s25 = smov [#allocation18]  }
  0x2f   :  { %s125_s2 = sshll.u32 %s4551_s24, 4  ;;  %s147_s3 = sshll.u32 %s4552_s25, 4  ;;  %s126_s2 = int_to_ptr.vmem [resolvable:$true] %s125_s2  ;;  %s148_s3 = int_to_ptr.vmem [resolvable:$true] %s147_s3 }
  0x30   :  { %s4360_s27 = scalar_lea.vmem %s126_s2, 16  ;;  %s4364_s7 = scalar_lea.vmem %s126_s2, 32 }
  0x31   :  { %p4361_p1 = scmp.ne.s32.totalorder %s126_s2, %s4360_s27  ;;  %p4365_p2 = scmp.lt.s32.totalorder %s126_s2, %s126_s2 }
  0x32   :  { %p4366_p3 = scmp.lt.s32.totalorder %s4364_s7, %s4360_s27 }
  0x34   :  { %p4367_p4 = por %p4366_p3, %p4365_p2 }
  0x36   :  { %p4368_p5 = pnand %p4367_p4, %p4361_p1 }
  0x38   :  { %4371 = shalt.err (!%p4368_p5)
}
  0x39   :  { %128 = dma.hbm_to_vmem [thread:$0]  %s5896_s13, 16, %s126_s2, [#allocation16]  }
  0x3a   :  { %s4380_s0 = scalar_lea.vmem %s148_s3, 16  ;;  %s4384_s9 = scalar_lea.vmem %s148_s3, 32 }
  0x3b   :  { %p4381_p6 = scmp.ne.s32.totalorder %s148_s3, %s4380_s0  ;;  %p4385_p7 = scmp.lt.s32.totalorder %s148_s3, %s148_s3 }
  0x3c   :  { %p4386_p8 = scmp.lt.s32.totalorder %s4384_s9, %s4380_s0 }
  0x3e   :  { %p4387_p9 = por %p4386_p8, %p4385_p7 }
  0x40   :  { %p4388_p10 = pnand %p4387_p9, %p4381_p6 }
  0x42   :  { %4391 = shalt.err (!%p4388_p10)
}
  0x43   :  { %150 = dma.hbm_to_vmem [thread:$0]  %s5898_s15, 16, %s148_s3, [#allocation19]  }
  0x44   :  { %s4553_s5 = smov [#allocation4]   ;;  %s4554_s22 = smov [#allocation8]  }
  0x45   :  { %s44_s1 = sshll.u32 %s4553_s5, 4  ;;  %s69_s23 = sshll.u32 %s4554_s22, 4  ;;  %s45_s1 = int_to_ptr.vmem [resolvable:$true] %s44_s1  ;;  %s70_s23 = int_to_ptr.vmem [resolvable:$true] %s69_s23 }
  0x46   :  { %s4400_s24 = scalar_lea.vmem %s45_s1, 3072  ;;  %p4405_p12 = scmp.lt.s32.totalorder %s45_s1, %s45_s1 }
  0x47   :  { %p4401_p11 = scmp.ne.s32.totalorder %s45_s1, %s4400_s24  ;;  %p4406_p13 = scmp.lt.s32.totalorder %s4400_s24, %s4400_s24 }
  0x49   :  { %p4407_p0 = por %p4406_p13, %p4405_p12 }
  0x4b   :  { %p4408_p1 = pnand %p4407_p0, %p4401_p11 }
  0x4d   :  { %4411 = shalt.err (!%p4408_p1)
}
  0x4e   :  { %s5921_s25 = sld [smem:[#allocation41_spill]]  ;;  %s4420_s15 = scalar_lea.vmem %s70_s23, 96 }
  0x4f   :  { %p4421_p2 = scmp.ne.s32.totalorder %s70_s23, %s4420_s15  ;;  %p4425_p3 = scmp.lt.s32.totalorder %s70_s23, %s70_s23 }
  0x50   :  { %p4426_p4 = scmp.lt.s32.totalorder %s4420_s15, %s4420_s15 }
  0x52   :  { %p4427_p5 = por %p4426_p4, %p4425_p3 }
  0x54   :  { %50 = dma.hbm_to_vmem [thread:$0]  %s5921_s25, 3072, %s45_s1, [#allocation5], %s4549_s29, %s4549_s29, %s4550_s30  }
  0x55   :  { %p4428_p6 = pnand %p4427_p5, %p4421_p2 }
  0x57   :  { %4431 = shalt.err (!%p4428_p6)
}
  0x58   :  { %72 = dma.hbm_to_vmem [thread:$0]  %s5889_s6, 96, %s70_s23, [#allocation7]  }
  0x59   :  { %s4555_s7 = smov [#allocation11]   ;;  %s4556_s4 = smov [#allocation14]  }
  0x5a   :  { %s91_s26 = sshll.u32 %s4555_s7, 4  ;;  %s113_s0 = sshll.u32 %s4556_s4, 4  ;;  %s92_s26 = int_to_ptr.vmem [resolvable:$true] %s91_s26  ;;  %s114_s0 = int_to_ptr.vmem [resolvable:$true] %s113_s0 }
  0x5b   :  { %s4440_s9 = scalar_lea.vmem %s92_s26, 48  ;;  %s4444_s29 = scalar_lea.vmem %s92_s26, 64 }
  0x5c   :  { %p4441_p7 = scmp.ne.s32.totalorder %s92_s26, %s4440_s9  ;;  %p4445_p8 = scmp.lt.s32.totalorder %s92_s26, %s92_s26 }
  0x5d   :  { %p4446_p9 = scmp.lt.s32.totalorder %s4444_s29, %s4440_s9 }
  0x5f   :  { %p4447_p10 = por %p4446_p9, %p4445_p8 }
  0x61   :  { %p4448_p11 = pnand %p4447_p10, %p4441_p7 }
  0x63   :  { %4451 = shalt.err (!%p4448_p11)
}
  0x64   :  { %94 = dma.hbm_to_vmem [thread:$0]  %s5891_s8, 48, %s92_s26, [#allocation10]  }
  0x65   :  { %s4460_s21 = scalar_lea.vmem %s114_s0, 16  ;;  %s4464_s6 = scalar_lea.vmem %s114_s0, 32 }
  0x66   :  { %p4461_p12 = scmp.ne.s32.totalorder %s114_s0, %s4460_s21  ;;  %p4465_p13 = scmp.lt.s32.totalorder %s114_s0, %s114_s0 }
  0x67   :  { %p4466_p0 = scmp.lt.s32.totalorder %s4464_s6, %s4460_s21 }
  0x69   :  { %p4467_p1 = por %p4466_p0, %p4465_p13 }
  0x6b   :  { %p4468_p2 = pnand %p4467_p1, %p4461_p12 }
  0x6d   :  { %4471 = shalt.err (!%p4468_p2)
}
  0x6e   :  { %116 = dma.hbm_to_vmem [thread:$0]  %s5894_s11, 16, %s114_s0, [#allocation13]  }
  0x6f   :  { %s4557_s22 = smov [#allocation17]  }
  0x70   :  { %s134_s23 = sshll.u32 %s4557_s22, 4  ;;  %s135_s23 = int_to_ptr.vmem [resolvable:$true] %s134_s23 }
  0x71   :  { %s4480_s24 = scalar_lea.vmem %s135_s23, 1024  ;;  %p4485_p4 = scmp.lt.s32.totalorder %s135_s23, %s135_s23 }
  0x72   :  { %p4481_p3 = scmp.ne.s32.totalorder %s135_s23, %s4480_s24  ;;  %p4486_p5 = scmp.lt.s32.totalorder %s4480_s24, %s4480_s24 }
  0x74   :  { %p4487_p6 = por %p4486_p5, %p4485_p4 }
  0x76   :  { %p4488_p7 = pnand %p4487_p6, %p4481_p3 }
  0x78   :  { %4491 = shalt.err (!%p4488_p7)
}
  0x79   :  { %s4558_s8 = smov 64   ;;  %s4559_s13 = smov 4  }
  0x7a   :  { %140 = dma.hbm_to_vmem [thread:$0]  %s5897_s14, 1024, %s135_s23, [#allocation16], %s4558_s8, %s4558_s8, %s4559_s13  }
  0x7b   :  { %s4560_s15 = smov [#allocation20]   ;;  %s4561_s27 = smov [#allocation21]  }
  0x7c   :  { %s156_s3 = sshll.u32 %s4560_s15, 4  ;;  %s169_s11 = sshll.u32 %s4561_s27, 4  ;;  %s157_s3 = int_to_ptr.vmem [resolvable:$true] %s156_s3  ;;  %s170_s11 = int_to_ptr.vmem [resolvable:$true] %s169_s11 }
  0x7d   :  { %s4500_s7 = scalar_lea.vmem %s157_s3, 1024  ;;  %p4505_p9 = scmp.lt.s32.totalorder %s157_s3, %s157_s3 }
  0x7e   :  { %p4501_p8 = scmp.ne.s32.totalorder %s157_s3, %s4500_s7  ;;  %p4506_p10 = scmp.lt.s32.totalorder %s4500_s7, %s4500_s7 }
  0x80   :  { %p4507_p11 = por %p4506_p10, %p4505_p9 }
  0x82   :  { %p4508_p12 = pnand %p4507_p11, %p4501_p8 }
  0x84   :  { %4511 = shalt.err (!%p4508_p12)
}
  0x85   :  { %162 = dma.hbm_to_vmem [thread:$0]  %s5899_s16, 1024, %s157_s3, [#allocation19], %s4558_s8, %s4558_s8, %s4559_s13  }
  0x86   :  { %s4520_s0 = scalar_lea.vmem %s170_s11, 16  ;;  %s4524_s14 = scalar_lea.vmem %s170_s11, 32 }
  0x87   :  { %p4521_p13 = scmp.ne.s32.totalorder %s170_s11, %s4520_s0  ;;  %p4525_p0 = scmp.lt.s32.totalorder %s170_s11, %s170_s11 }
  0x88   :  { %p4526_p1 = scmp.lt.s32.totalorder %s4524_s14, %s4520_s0 }
  0x8a   :  { %p4527_p2 = por %p4526_p1, %p4525_p0 }
  0x8c   :  { %p4528_p3 = pnand %p4527_p2, %p4521_p13 }
  0x8e   :  { %4531 = shalt.err (!%p4528_p3)
}
  0x8f   :  { %172 = dma.hbm_to_vmem [thread:$0]  %s5900_s17, 16, %s170_s11, [#allocation22]  }
  0x90   :  { %4532 = dma.done.wait [#allocation5], 3072  }
  0x91   :  { %4533 = vsyncadd [#allocation5], 4294964224 }
  0x92   :  { %4534 = dma.done.wait [#allocation7], 112  }
  0x93   :  { %4535 = vsyncadd [#allocation7], 4294967184 }
  0x94   :  { %4536 = dma.done.wait [#allocation10], 3120  }
  0x95   :  { %4537 = vsyncadd [#allocation10], 4294964176 }
  0x96   :  { %4538 = dma.done.wait [#allocation13], 32  }
  0x97   :  { %4539 = vsyncadd [#allocation13], 4294967264 }
  0x98   :  { %4540 = dma.done.wait [#allocation16], 1040  }
  0x99   :  { %4541 = vsyncadd [#allocation16], 4294966256 }
  0x9a   :  { %4542 = dma.done.wait [#allocation19], 1040  }
  0x9b   :  { %4543 = vsyncadd [#allocation19], 4294966256 }
  0x9c   :  { %4544 = dma.done.wait [#allocation22], 16  }
  0x9d   :  { %4545 = vsyncadd [#allocation22], 4294967280  ;;  %v258_v0 = vlaneseq  ;;  %v4562_v1 = vmov 1983009808   ;;  %v5908_v3 = vmov 0   ;;  %s5924_s30 = sld [smem:[#allocation40_spill]] }
  0x9e   :  { %v276_v2 = vunpack.c.l.s4 %v4562_v1  ;;  %345 = vmatprep.mubr.bf16.mxu0 %v5908_v3  ;;  %vm303_vm0 = vcmask 1041408   ;;  %s5925_s6 = sld [smem:[#allocation38_spill]]  ;;  %vm290_vm1 = vcmask 31744   ;;  %v4730_v14 = vld [vmem:[#allocation4 + $0xac] ss:$12 sps:$4 sm:$0xff]   ;;  %v5910_v25 = vmov 0.0  }
  0x9f   :  { %v4714_v4 = vshrl.u32 %v258_v0, 7  ;;  %v4732_v16 = vld [vmem:[#allocation4 + $0xa8] ss:$12 sps:$4 sm:$0xff]   ;;  %v4757_v26 = vld [vmem:[#allocation4 + $0x90] ss:$12 sps:$4 sm:$0xff]   ;;  %vm4565_vm2 = vmmov 0  }
  0xa0   :  { %v277_v5 = vunpack.c.0.s8 %v276_v2  ;;  %v4744_v20 = vld [vmem:[#allocation4 + $0x94] ss:$12 sps:$4 sm:$0xff]   ;;  %v4761_v28 = vld [vmem:[#allocation4 + $0x7c] ss:$12 sps:$4 sm:$0xff]   ;;  %v4764_v29 = vld [vmem:[#allocation4 + $0x78] ss:$12 sps:$4 sm:$0xff]  }
  0xa1   :  { %5922 = vst [vmem:[#allocation30_spill] sm:$0xff] %v4714_v4  ;;  %v4767_v30 = vld [vmem:[#allocation4 + $0x64] ss:$12 sps:$4 sm:$0xff]   ;;  %v4784_v35 = vld [vmem:[#allocation4 + $0x60] ss:$12 sps:$4 sm:$0xff]   ;;  %v5905_v51 = vsub.s32 2, %v4714_v4 }
  0xa2   :  { %v4717_v6 = vsub.s32 %v277_v5, %v4714_v4  ;;  %v4777_v33 = vld [vmem:[#allocation4 + $0xb0] ss:$12 sps:$4 sm:$0xff]   ;;  %v4781_v34 = vld [vmem:[#allocation4 + $0x98] ss:$12 sps:$4 sm:$0xff]   ;;  %v4791_v38 = vld [vmem:[#allocation4 + $0x48] ss:$12 sps:$4 sm:$0xff]  }
  0xa3   :  { %v210_v7 = vld [vmem:[%s5924_s30] sm:$0x3f]  ;;  %v4788_v37 = vld [vmem:[#allocation4 + $0x4c] ss:$12 sps:$4 sm:$0xff]   ;;  %v4804_v41 = vld [vmem:[#allocation4 + $0x68] ss:$12 sps:$4 sm:$0xff]  }
  0xa4   :  { %5923 = vst [vmem:[#allocation31_spill] sm:$0xff] %v4717_v6  ;;  %v281_v8 = vrot.slane %v210_v7, %v4717_v6  ;;  %v245_v9 = vld [vmem:[%s5925_s6] sm:$0xff]  ;;  %v246_v10 = vld [vmem:[%s5925_s6 + $0x8] sm:$0xff]  ;;  %v274_v15 = vcombine.high %v210_v7, %v210_v7  ;;  %v247_v17 = vld [vmem:[%s5925_s6 + $0x10] sm:$0xff]  ;;  %s5926_s0 = sld [smem:[#allocation42_spill]]  ;;  %v5907_v53 = vsub.s32 0, %v4714_v4 }
  0xa5   :  { %v253_v11 = vpack.c.bf16 %v246_v10, %v245_v9  ;;  %v248_v19 = vld [vmem:[%s5925_s6 + $0x18] sm:$0xff]  ;;  %v249_v21 = vld [vmem:[%s5925_s6 + $0x20] sm:$0xff]  ;;  %v250_v23 = vld [vmem:[%s5925_s6 + $0x28] sm:$0xff]  ;;  %v5906_v56 = vsub.s32 1, %v4714_v4  ;;  %s5940_s4 = sld [smem:[#allocation39_spill]] }
  0xa6   :  { %v289_v12 = vcombine.high %v281_v8, %v281_v8  ;;  %v305_v13 = vsel %vm303_vm0, %v281_v8, 0  ;;  %v288_v18 = vrot.slane %v274_v15, %v4717_v6  ;;  %v254_v24 = vpack.c.bf16 %v248_v19, %v247_v17  ;;  %v251_v31 = vld [vmem:[%s5925_s6 + $0x30] sm:$0xff]  ;;  %v252_v32 = vld [vmem:[%s5925_s6 + $0x38] sm:$0xff]  ;;  %v4795_v39 = vld [vmem:[#allocation4 + $0x80] ss:$12 sps:$4 sm:$0xff]  }
  0xa7   :  { %3540 = vmatprep.mubr.msk.bf16.mxu1 %vm290_vm1, %v253_v11  ;;  %v255_v27 = vpack.c.bf16 %v250_v23, %v249_v21  ;;  %v256_v36 = vpack.c.bf16 %v252_v32, %v251_v31  ;;  %v4800_v40 = vld [vmem:[#allocation4 + $0x34] ss:$12 sps:$4 sm:$0xff]   ;;  %v4806_v42 = vld [vmem:[#allocation4 + $0x30] ss:$12 sps:$4 sm:$0xff]   ;;  %v4818_v45 = vld [vmem:[#allocation4 + $0x18] ss:$12 sps:$4 sm:$0xff]  }
  0xa8   :  { %3241 = vmatprep.subr.msk.bf16.mxu0 %vm303_vm0, %v289_v12  ;;  %3962 = vmatprep.subr.msk.bf16.mxu1 %vm303_vm0, %v288_v18  ;;  %v311_v22 = vsel %vm303_vm0, %v288_v18, 0  ;;  %v4809_v43 = vld [vmem:[#allocation4 + $0x1c] ss:$12 sps:$4 sm:$0xff]   ;;  %v4820_v46 = vld [vmem:[#allocation4 + $0x4] ss:$12 sps:$4 sm:$0xff]  }
  0xa9   :  { %328 = vmatpush1.bf16.msra.mxu0 %v305_v13  ;;  %3539 = vmatpush3.bf16.msra.mxu1 %v311_v22  ;;  %v4816_v44 = vld [vmem:[#allocation4 + $0x50] ss:$12 sps:$4 sm:$0xff]   ;;  %v4826_v47 = vld [vmem:[#allocation4 + $0x38] ss:$12 sps:$4 sm:$0xff]   ;;  %v4828_v48 = vld [vmem:[#allocation4] ss:$12 sps:$4 sm:$0xff]  }
  0xaa   :  { %612 = vmatprep.subr.bf16.mxu0 %v4730_v14  ;;  %3548 = vmatprep.subr.bf16.mxu1 %v5910_v25  ;;  %v4836_v49 = vld [vmem:[#allocation4 + $0x20] ss:$12 sps:$4 sm:$0xff]   ;;  %v4841_v50 = vld [vmem:[#allocation4 + $0x8] ss:$12 sps:$4 sm:$0xff]  }
  0xab   :  { %v243_v52 = vld [vmem:[%s5926_s0] sm:$0x7] }
  0xac   :  { %3242 = vmatmul.mubr.msk.bf16.vlgmr.msra.gmra.mxu0 %vm290_vm1, %v253_v11  ;;  %3541 = vmatmul.mubr.msk.bf16.vlgmr.msra.gmra.mxu1 %vm290_vm1, %v254_v24  ;;  %v4892_v54 = vrot.slane %v243_v52, %v5905_v51  ;;  %v261_v59 = vrot.slane %v243_v52, %v5907_v53  ;;  %v265_v63 = vrot.slane %v243_v52, %v5906_v56 }
  0xad   :  { %613 = vmatpush1.bf16.msra.mxu0 %v4732_v16  ;;  %355 = vmatprep.mubr.bf16.mxu0 %v5908_v3 }
  0xae   :  { %614 = vmatprep.subr.bf16.mxu0 %v4744_v20  ;;  %3544 = vmatprep.mubr.msk.bf16.mxu1 %vm290_vm1, %v255_v27 }
  0xaf   :  { %3549 = vmatpush3.bf16.msra.mxu1 %v4777_v33 }
  0xb0   :  { %3550 = vmatprep.subr.bf16.mxu1 %v5910_v25 }
  0xb1   :  { %615 = vmatpush1.bf16.msra.mxu0 %v4757_v26 }
  0xb2   :  { %616 = vmatprep.subr.bf16.mxu0 %v4761_v28 }
  0xb3   :  { %3551 = vmatpush3.bf16.msra.mxu1 %v4781_v34 }
  0xb4   :  { %3243 = vmatmul.mubr.msk.bf16.gmra.mxu0 %vm290_vm1, %v254_v24  ;;  %3545 = vmatmul.mubr.msk.bf16.gmra.mxu1 %vm290_vm1, %v256_v36 }
  0xb5   :  { %617 = vmatpush1.bf16.msra.mxu0 %v4764_v29  ;;  %365 = vmatprep.mubr.bf16.mxu0 %v5908_v3 }
  0xb6   :  { %618 = vmatprep.subr.bf16.mxu0 %v4767_v30  ;;  %3564 = vmatprep.mubr.msk.bf16.mxu1 %vm4565_vm2, %v5910_v25 }
  0xb7   :  { %3552 = vmatprep.subr.bf16.mxu1 %v5910_v25 }
  0xb8   :  { %3553 = vmatpush3.bf16.msra.mxu1 %v4795_v39 }
  0xb9   :  { %619 = vmatpush1.bf16.msra.mxu0 %v4784_v35  ;;  %3554 = vmatprep.subr.bf16.mxu1 %v5910_v25 }
  0xba   :  { %620 = vmatprep.subr.bf16.mxu0 %v4788_v37 }
  0xbc   :  { %3244 = vmatmul.mubr.msk.bf16.gmra.mxu0 %vm290_vm1, %v255_v27  ;;  %3555 = vmatpush3.bf16.msra.mxu1 %v4804_v41 }
  0xbd   :  { %621 = vmatpush1.bf16.msra.mxu0 %v4791_v38  ;;  %375 = vmatprep.mubr.bf16.mxu0 %v5908_v3 }
  0xbe   :  { %622 = vmatprep.subr.bf16.mxu0 %v4800_v40  ;;  %3556 = vmatprep.subr.bf16.mxu1 %v5910_v25 }
  0xc0   :  { %3557 = vmatpush3.bf16.msra.mxu1 %v4816_v44 }
  0xc1   :  { %623 = vmatpush1.bf16.msra.mxu0 %v4806_v42  ;;  %3558 = vmatprep.subr.bf16.mxu1 %v5910_v25 }
  0xc2   :  { %624 = vmatprep.subr.bf16.mxu0 %v4809_v43 }
  0xc4   :  { %3245 = vmatmul.mubr.msk.bf16.gmra.mxu0 %vm290_vm1, %v256_v36  ;;  %3559 = vmatpush3.bf16.msra.mxu1 %v4826_v47 }
  0xc5   :  { %625 = vmatpush1.bf16.msra.mxu0 %v4818_v45  ;;  %644 = vmatprep.mubr.bf16.mxu0 %v5908_v3 }
  0xc6   :  { %626 = vmatprep.subr.bf16.mxu0 %v4820_v46  ;;  %3560 = vmatprep.subr.bf16.mxu1 %v5910_v25 }
  0xc8   :  { %3561 = vmatpush3.bf16.msra.mxu1 %v4836_v49 }
  0xc9   :  { %627 = vmatpush1.bf16.msra.mxu0 %v4828_v48  ;;  %3562 = vmatprep.subr.bf16.mxu1 %v5910_v25 }
  0xca   :  { %719 = vmatprep.subr.bf16.mxu0 %v4730_v14 }
  0xcc   :  { %645 = vmatmul.mubr.bf16.vlgmr.msra.gmra.mxu0 %v5908_v3  ;;  %3563 = vmatpush3.bf16.msra.mxu1 %v4841_v50 }
  0xcd   :  { %720 = vmatpush1.bf16.msra.mxu0 %v4732_v16  ;;  %751 = vmatprep.mubr.bf16.mxu0 %v5908_v3 }
  0xce   :  { %721 = vmatprep.subr.bf16.mxu0 %v4744_v20  ;;  %3568 = vmatprep.subr.bf16.mxu1 %v5910_v25 }
  0xcf   :  { %3565 = vmatmul.mubr.bf16.vlgmr.msra.gmra.mxu1 %v5908_v3 }
  0xd0   :  { %3569 = vmatpush3.bf16.msra.mxu1 %v4777_v33  ;;  %3584 = vmatprep.mubr.msk.bf16.mxu1 %vm4565_vm2, %v5910_v25 }
  0xd1   :  { %722 = vmatpush1.bf16.msra.mxu0 %v4757_v26  ;;  %3570 = vmatprep.subr.bf16.mxu1 %v5910_v25 }
  0xd2   :  { %723 = vmatprep.subr.bf16.mxu0 %v4761_v28 }
  0xd4   :  { %3571 = vmatpush3.bf16.msra.mxu1 %v4781_v34 }
  0xd5   :  { %724 = vmatpush1.bf16.msra.mxu0 %v4764_v29  ;;  %3572 = vmatprep.subr.bf16.mxu1 %v5910_v25 }
  0xd6   :  { %725 = vmatprep.subr.bf16.mxu0 %v4767_v30 }
  0xd8   :  { %3573 = vmatpush3.bf16.msra.mxu1 %v4795_v39 }
  0xd9   :  { %726 = vmatpush1.bf16.msra.mxu0 %v4784_v35  ;;  %3574 = vmatprep.subr.bf16.mxu1 %v5910_v25 }
  0xda   :  { %727 = vmatprep.subr.bf16.mxu0 %v4788_v37 }
  0xdc   :  { %3575 = vmatpush3.bf16.msra.mxu1 %v4804_v41 }
  0xdd   :  { %728 = vmatpush1.bf16.msra.mxu0 %v4791_v38  ;;  %3576 = vmatprep.subr.bf16.mxu1 %v5910_v25 }
  0xde   :  { %729 = vmatprep.subr.bf16.mxu0 %v4800_v40 }
  0xe0   :  { %3577 = vmatpush3.bf16.msra.mxu1 %v4816_v44 }
  0xe1   :  { %730 = vmatpush1.bf16.msra.mxu0 %v4806_v42  ;;  %3578 = vmatprep.subr.bf16.mxu1 %v5910_v25 }
  0xe2   :  { %731 = vmatprep.subr.bf16.mxu0 %v4809_v43 }
  0xe4   :  { %3579 = vmatpush3.bf16.msra.mxu1 %v4826_v47 }
  0xe5   :  { %732 = vmatpush1.bf16.msra.mxu0 %v4818_v45  ;;  %3580 = vmatprep.subr.bf16.mxu1 %v5910_v25 }
  0xe6   :  { %733 = vmatprep.subr.bf16.mxu0 %v4820_v46 }
  0xe8   :  { %3581 = vmatpush3.bf16.msra.mxu1 %v4836_v49 }
  0xe9   :  { %734 = vmatpush1.bf16.msra.mxu0 %v4828_v48  ;;  %3582 = vmatprep.subr.bf16.mxu1 %v5910_v25 }
  0xea   :  { %826 = vmatprep.subr.bf16.mxu0 %v4730_v14 }
  0xec   :  { %3583 = vmatpush3.bf16.msra.mxu1 %v4841_v50 }
  0xed   :  { %3588 = vmatprep.subr.bf16.mxu1 %v5910_v25 }
 0x16c   :  { %v347_v55 = vpop.f32.mrf.mxu0  ;;  %v3542_v58 = vpop.f32.mrf.mxu1 }
 0x16d   :  { %v4898_v60 = vadd.f32 %v3542_v58, %v4892_v54 }
 0x16e   :  { %v349_v57 = vpop.f32.mrf.mxu0  ;;  %v4900_v62 = vpop.f32.mrf.mxu1 }
 0x16f   :  { %v350_v6 = vadd.f32 %v349_v57, %v265_v63 }
 0x170   :  { %v351_v61 = vpop.f32.mrf.mxu0  ;;  %v3543_v2 = vpop.f32.mrf.mxu1 }
 0x171   :  { %v4904_v0 = vadd.f32 %v351_v61, %v261_v59  ;;  %v4909_v7 = vadd.f32 %v3543_v2, %v4892_v54 }
 0x172   :  { %v353_v1 = vpop.f32.mrf.mxu0  ;;  %v423_v9 = vpop.f32.mrf.mxu1 }
 0x173   :  { %v4906_v5 = vadd.f32 %v353_v1, %v265_v63  ;;  %v4914_v11 = vadd.f32 %v423_v9, %v4892_v54 }
 0x174   :  { %v357_v8 = vpop.f32.mrf.mxu0  ;;  %v3546_v15 = vpop.f32.mrf.mxu1 }
 0x175   :  { %v4911_v10 = vadd.f32 %v357_v8, %v261_v59  ;;  %v4919_v18 = vadd.f32 %v3546_v15, %v4892_v54 }
 0x176   :  { %v359_v12 = vpop.f32.mrf.mxu0  ;;  %v436_v21 = vpop.f32.mrf.mxu1 }
 0x177   :  { %v4916_v13 = vadd.f32 %v359_v12, %v265_v63  ;;  %5927 = vst [vmem:[#allocation32_spill] sm:$0xff] %v4919_v18  ;;  %v4924_v23 = vadd.f32 %v436_v21, %v4892_v54 }
 0x178   :  { %v361_v17 = vpop.f32.mrf.mxu0  ;;  %v3547_v27 = vpop.f32.mrf.mxu1 }
 0x179   :  { %v4921_v19 = vadd.f32 %v361_v17, %v261_v59  ;;  %v4929_v32 = vadd.f32 %v3547_v27, %v4892_v54 }
 0x17a   :  { %v363_v22 = vpop.f32.mrf.mxu0  ;;  %v439_v52 = vpop.f32.mrf.mxu1 }
 0x17b   :  { %v4926_v24 = vadd.f32 %v363_v22, %v265_v63  ;;  %5928 = vst [vmem:[#allocation33_spill] sm:$0xff] %v4929_v32  ;;  %v4934_v61 = vadd.f32 %v439_v52, %v4892_v54  ;;  %v348_v52 = vadd.f32 %v347_v55, %v261_v59 }
 0x17c   :  { %v367_v31 = vpop.f32.mrf.mxu0 }
 0x17d   :  { %v4931_v36 = vadd.f32 %v367_v31, %v261_v59 }
 0x17e   :  { %v369_v58 = vpop.f32.mrf.mxu0 }
 0x17f   :  { %v4936_v1 = vadd.f32 %v369_v58, %v265_v63 }
 0x180   :  { %v371_v2 = vpop.f32.mrf.mxu0 }
 0x181   :  { %v4938_v8 = vadd.f32 %v371_v2, %v261_v59 }
 0x182   :  { %v373_v9 = vpop.f32.mrf.mxu0 }
 0x183   :  { %v4940_v12 = vadd.f32 %v373_v9, %v265_v63 }
 0x184   :  { %v377_v15 = vpop.f32.mrf.mxu0 }
 0x185   :  { %v4942_v17 = vadd.f32 %v377_v15, %v261_v59 }
 0x186   :  { %v379_v21 = vpop.f32.mrf.mxu0 }
 0x187   :  { %5929 = vst [vmem:[#allocation34_spill] sm:$0xff] %v4942_v17  ;;  %v4944_v22 = vadd.f32 %v379_v21, %v265_v63 }
 0x188   :  { %v381_v27 = vpop.f32.mrf.mxu0 }
 0x189   :  { %5930 = vst [vmem:[#allocation35_spill] sm:$0xff] %v4944_v22  ;;  %v4946_v31 = vadd.f32 %v381_v27, %v261_v59 }
 0x18a   :  { %v383_v51 = vpop.f32.mrf.mxu0 }
 0x18b   :  { %5931 = vst [vmem:[#allocation36_spill] sm:$0xff] %v4946_v31  ;;  %v4948_v56 = vadd.f32 %v383_v51, %v265_v63  ;;  %v4950_v51 = vld [vmem:[#allocation6] ss:$0 sm:$0xff] }
 0x18c   :  { %v646_v58 = vpop.f32.mrf.mxu0 }
 0x18d   :  { %v693_v53 = vadd.f32 %v646_v58, %v348_v52 }
 0x18e   :  { %v648_v2 = vpop.f32.mrf.mxu0 }
 0x18f   :  { %v694_v3 = vsub.f32 0.0, %v693_v53  ;;  %v687_v15 = vpop.f32.mrf.mxu1  ;;  %v700_v21 = vadd.f32 %v648_v2, %v350_v6 }
 0x190   :  { %v650_v25 = vpop.f32.mrf.mxu0  ;;  %v707_v53 = vadd.f32 %v4950_v51, %v687_v15 }
 0x191   :  { %v695_v9 = vmul.f32 1.442695, %v694_v3  ;;  %v3566_v32 = vpop.f32.mrf.mxu1  ;;  %v701_v27 = vsub.f32 0.0, %v700_v21 }
 0x192   :  { %v651_v4 = vpop.f32.mrf.mxu0 }
 0x193   :  { %4082 = vpow2.f32 %v695_v9  ;;  %v690_v18 = vpop.f32.mrf.mxu1  ;;  %v702_v31 = vmul.f32 1.442695, %v701_v27  ;;  %v421_v4 = vadd.f32 %v4900_v62, %v4892_v54  ;;  %v5932_v54 = vmov 0.0  }
 0x194   :  { %v5933_v62 = vmov 0  }
 0x195   :  { %v3567_v22 = vpop.f32.mrf.mxu1  ;;  %4084 = vpow2.f32 %v702_v31 }
 0x1a0   :  { %v4083_v17 = vpop.eup %4082 }
 0x1a1   :  { %v697_v55 = vadd.f32 1.0, %v4083_v17 }
 0x1a2   :  { %v4085_v25 = vpop.eup %4084 }
 0x1a3   :  { %4086 = vrcp.f32 %v697_v55  ;;  %v704_v59 = vadd.f32 1.0, %v4085_v25 }
 0x1b0   :  { %v4087_v3 = vpop.eup %4086 }
 0x1b1   :  { %v708_v57 = vmul.f32 %v4087_v3, %v707_v53 }
 0x1b3   :  { %v709_v6 = vadd.f32 %v708_v57, %v421_v4 }
 0x1b5   :  { %4088 = vtanh.f32 %v709_v6 }
 0x1b6   :  { %4090 = vrcp.f32 %v704_v59 }
 0x1c2   :  { %v4089_v63 = vpop.eup %4088 }
 0x1c3   :  { %v711_v18 = vsub.f32 0.0, %v4089_v63  ;;  %v4091_v32 = vpop.eup %4090 }
 0x1c5   :  { %v712_v17 = vmul.f32 %v4091_v32, %v711_v18 }
 0x1c7   :  { %v4955_v22 = vadd.f32 %v4089_v63, %v712_v17 }
 0x1c9   :  { %v718_v31 = vpack.c.bf16 %v4955_v22, %v4955_v22 }
 0x1cb   :  { %752 = vmatmul.mubr.bf16.vlgmr.msra.gmra.mxu0 %v718_v31  ;;  %3585 = vmatmul.mubr.bf16.vlgmr.msra.gmra.mxu1 %v718_v31 }
 0x1cc   :  { %827 = vmatpush1.bf16.msra.mxu0 %v4732_v16  ;;  %3589 = vmatpush3.bf16.msra.mxu1 %v4777_v33 }
 0x1cd   :  { %828 = vmatprep.subr.bf16.mxu0 %v4744_v20  ;;  %3590 = vmatprep.subr.bf16.mxu1 %v5932_v54 }
 0x1ce   :  { %858 = vmatprep.mubr.bf16.mxu0 %v5933_v62  ;;  %3604 = vmatprep.mubr.msk.bf16.mxu1 %vm4565_vm2, %v5932_v54 }
 0x1d0   :  { %829 = vmatpush1.bf16.msra.mxu0 %v4757_v26  ;;  %3591 = vmatpush3.bf16.msra.mxu1 %v4781_v34 }
 0x1d1   :  { %830 = vmatprep.subr.bf16.mxu0 %v4761_v28  ;;  %3592 = vmatprep.subr.bf16.mxu1 %v5932_v54 }
 0x1d4   :  { %831 = vmatpush1.bf16.msra.mxu0 %v4764_v29  ;;  %3593 = vmatpush3.bf16.msra.mxu1 %v4795_v39 }
 0x1d5   :  { %832 = vmatprep.subr.bf16.mxu0 %v4767_v30  ;;  %3594 = vmatprep.subr.bf16.mxu1 %v5932_v54 }
 0x1d8   :  { %833 = vmatpush1.bf16.msra.mxu0 %v4784_v35  ;;  %3595 = vmatpush3.bf16.msra.mxu1 %v4804_v41 }
 0x1d9   :  { %834 = vmatprep.subr.bf16.mxu0 %v4788_v37  ;;  %3596 = vmatprep.subr.bf16.mxu1 %v5932_v54 }
 0x1dc   :  { %835 = vmatpush1.bf16.msra.mxu0 %v4791_v38  ;;  %3597 = vmatpush3.bf16.msra.mxu1 %v4816_v44 }
 0x1dd   :  { %836 = vmatprep.subr.bf16.mxu0 %v4800_v40  ;;  %3598 = vmatprep.subr.bf16.mxu1 %v5932_v54 }
 0x1e0   :  { %837 = vmatpush1.bf16.msra.mxu0 %v4806_v42  ;;  %3599 = vmatpush3.bf16.msra.mxu1 %v4826_v47 }
 0x1e1   :  { %838 = vmatprep.subr.bf16.mxu0 %v4809_v43  ;;  %3600 = vmatprep.subr.bf16.mxu1 %v5932_v54 }
 0x1e4   :  { %839 = vmatpush1.bf16.msra.mxu0 %v4818_v45  ;;  %3601 = vmatpush3.bf16.msra.mxu1 %v4836_v49 }
 0x1e5   :  { %840 = vmatprep.subr.bf16.mxu0 %v4820_v46  ;;  %3602 = vmatprep.subr.bf16.mxu1 %v5932_v54 }
 0x1e8   :  { %841 = vmatpush1.bf16.msra.mxu0 %v4828_v48  ;;  %3603 = vmatpush3.bf16.msra.mxu1 %v4841_v50 }
 0x1e9   :  { %933 = vmatprep.subr.bf16.mxu0 %v4730_v14  ;;  %3608 = vmatprep.subr.bf16.mxu1 %v5932_v54 }
 0x28b   :  { %v753_v52 = vpop.f32.mrf.mxu0  ;;  %v794_v58 = vpop.f32.mrf.mxu1 }
 0x28c   :  { %v800_v2 = vadd.f32 %v753_v52, %v4904_v0  ;;  %v814_v0 = vadd.f32 %v4950_v51, %v794_v58 }
 0x28d   :  { %v755_v9 = vpop.f32.mrf.mxu0  ;;  %v3586_v15 = vpop.f32.mrf.mxu1 }
 0x28e   :  { %v801_v21 = vsub.f32 0.0, %v800_v2  ;;  %v807_v4 = vadd.f32 %v755_v9, %v4906_v5 }
 0x28f   :  { %v757_v27 = vpop.f32.mrf.mxu0  ;;  %v797_v55 = vpop.f32.mrf.mxu1 }
 0x290   :  { %v802_v53 = vmul.f32 1.442695, %v801_v21  ;;  %v808_v57 = vsub.f32 0.0, %v807_v4 }
 0x291   :  { %v758_v25 = vpop.f32.mrf.mxu0  ;;  %v3587_v3 = vpop.f32.mrf.mxu1 }
 0x292   :  { %4092 = vpow2.f32 %v802_v53  ;;  %v809_v59 = vmul.f32 1.442695, %v808_v57 }
 0x294   :  { %4094 = vpow2.f32 %v809_v59 }
 0x29f   :  { %v4093_v6 = vpop.eup %4092 }
 0x2a0   :  { %v804_v63 = vadd.f32 1.0, %v4093_v6 }
 0x2a1   :  { %v4095_v18 = vpop.eup %4094 }
 0x2a2   :  { %4096 = vrcp.f32 %v804_v63  ;;  %v811_v52 = vadd.f32 1.0, %v4095_v18 }
 0x2af   :  { %v4097_v32 = vpop.eup %4096 }
 0x2b0   :  { %v815_v17 = vmul.f32 %v4097_v32, %v814_v0 }
 0x2b2   :  { %v816_v31 = vadd.f32 %v815_v17, %v4914_v11 }
 0x2b4   :  { %4098 = vtanh.f32 %v816_v31 }
 0x2b5   :  { %4100 = vrcp.f32 %v811_v52 }
 0x2c1   :  { %v4099_v2 = vpop.eup %4098 }
 0x2c2   :  { %v818_v15 = vsub.f32 %v4955_v22, %v4099_v2  ;;  %v4101_v5 = vpop.eup %4100 }
 0x2c4   :  { %v819_v9 = vmul.f32 %v4101_v5, %v818_v15 }
 0x2c6   :  { %v4999_v21 = vadd.f32 %v4099_v2, %v819_v9 }
 0x2c8   :  { %v825_v27 = vpack.c.bf16 %v4999_v21, %v4999_v21 }
 0x2ca   :  { %859 = vmatmul.mubr.bf16.vlgmr.msra.gmra.mxu0 %v825_v27  ;;  %3605 = vmatmul.mubr.bf16.vlgmr.msra.gmra.mxu1 %v825_v27 }
 0x2cb   :  { %934 = vmatpush1.bf16.msra.mxu0 %v4732_v16  ;;  %3609 = vmatpush3.bf16.msra.mxu1 %v4777_v33 }
 0x2cc   :  { %935 = vmatprep.subr.bf16.mxu0 %v4744_v20  ;;  %3610 = vmatprep.subr.bf16.mxu1 %v5932_v54 }
 0x2cd   :  { %965 = vmatprep.mubr.bf16.mxu0 %v5933_v62  ;;  %3624 = vmatprep.mubr.msk.bf16.mxu1 %vm4565_vm2, %v5932_v54 }
 0x2cf   :  { %936 = vmatpush1.bf16.msra.mxu0 %v4757_v26  ;;  %3611 = vmatpush3.bf16.msra.mxu1 %v4781_v34 }
 0x2d0   :  { %937 = vmatprep.subr.bf16.mxu0 %v4761_v28  ;;  %3612 = vmatprep.subr.bf16.mxu1 %v5932_v54 }
 0x2d3   :  { %938 = vmatpush1.bf16.msra.mxu0 %v4764_v29  ;;  %3613 = vmatpush3.bf16.msra.mxu1 %v4795_v39 }
 0x2d4   :  { %939 = vmatprep.subr.bf16.mxu0 %v4767_v30  ;;  %3614 = vmatprep.subr.bf16.mxu1 %v5932_v54 }
 0x2d7   :  { %940 = vmatpush1.bf16.msra.mxu0 %v4784_v35  ;;  %3615 = vmatpush3.bf16.msra.mxu1 %v4804_v41 }
 0x2d8   :  { %941 = vmatprep.subr.bf16.mxu0 %v4788_v37  ;;  %3616 = vmatprep.subr.bf16.mxu1 %v5932_v54 }
 0x2db   :  { %942 = vmatpush1.bf16.msra.mxu0 %v4791_v38  ;;  %3617 = vmatpush3.bf16.msra.mxu1 %v4816_v44 }
 0x2dc   :  { %943 = vmatprep.subr.bf16.mxu0 %v4800_v40  ;;  %3618 = vmatprep.subr.bf16.mxu1 %v5932_v54 }
 0x2df   :  { %944 = vmatpush1.bf16.msra.mxu0 %v4806_v42  ;;  %3619 = vmatpush3.bf16.msra.mxu1 %v4826_v47 }
 0x2e0   :  { %945 = vmatprep.subr.bf16.mxu0 %v4809_v43  ;;  %3620 = vmatprep.subr.bf16.mxu1 %v5932_v54 }
 0x2e3   :  { %946 = vmatpush1.bf16.msra.mxu0 %v4818_v45  ;;  %3621 = vmatpush3.bf16.msra.mxu1 %v4836_v49 }
 0x2e4   :  { %947 = vmatprep.subr.bf16.mxu0 %v4820_v46  ;;  %3622 = vmatprep.subr.bf16.mxu1 %v5932_v54 }
 0x2e7   :  { %948 = vmatpush1.bf16.msra.mxu0 %v4828_v48  ;;  %3623 = vmatpush3.bf16.msra.mxu1 %v4841_v50 }
 0x2e8   :  { %1040 = vmatprep.subr.bf16.mxu0 %v4730_v14  ;;  %3628 = vmatprep.subr.bf16.mxu1 %v5932_v54 }
 0x38a   :  { %v860_v11 = vpop.f32.mrf.mxu0  ;;  %v901_v22 = vpop.f32.mrf.mxu1 }
 0x38b   :  { %v907_v58 = vadd.f32 %v860_v11, %v4911_v10  ;;  %v921_v10 = vadd.f32 %v4950_v51, %v901_v22 }
 0x38c   :  { %v862_v55 = vpop.f32.mrf.mxu0  ;;  %v3606_v53 = vpop.f32.mrf.mxu1 }
 0x38d   :  { %v908_v25 = vsub.f32 0.0, %v907_v58  ;;  %v914_v63 = vadd.f32 %v862_v55, %v4916_v13 }
 0x38e   :  { %v864_v3 = vpop.f32.mrf.mxu0  ;;  %v904_v4 = vpop.f32.mrf.mxu1 }
 0x38f   :  { %v909_v57 = vmul.f32 1.442695, %v908_v25  ;;  %v915_v18 = vsub.f32 0.0, %v914_v63 }
 0x390   :  { %v865_v59 = vpop.f32.mrf.mxu0  ;;  %v3607_v6 = vpop.f32.mrf.mxu1 }
 0x391   :  { %4102 = vpow2.f32 %v909_v57  ;;  %v916_v0 = vmul.f32 1.442695, %v915_v18 }
 0x393   :  { %4104 = vpow2.f32 %v916_v0 }
 0x39e   :  { %v4103_v14 = vpop.eup %4102 }
 0x39f   :  { %v911_v32 = vadd.f32 1.0, %v4103_v14 }
 0x3a0   :  { %v4105_v17 = vpop.eup %4104 }
 0x3a1   :  { %4106 = vrcp.f32 %v911_v32  ;;  %v918_v15 = vadd.f32 1.0, %v4105_v17 }
 0x3ae   :  { %v4107_v31 = vpop.eup %4106 }
 0x3af   :  { %v922_v52 = vmul.f32 %v4107_v31, %v921_v10 }
 0x3b1   :  { %v923_v2 = vadd.f32 %v922_v52, %v4898_v60 }
 0x3b3   :  { %4108 = vtanh.f32 %v923_v2 }
 0x3b4   :  { %4110 = vrcp.f32 %v918_v15  ;;  %v5093_v15 = vld [vmem:[#allocation4 + $0xa8] ss:$12 sps:$4 sm:$0xff]  }
 0x3c0   :  { %v4109_v5 = vpop.eup %4108 }
 0x3c1   :  { %v925_v9 = vsub.f32 %v4999_v21, %v4109_v5  ;;  %v4111_v13 = vpop.eup %4110 }
 0x3c3   :  { %v926_v27 = vmul.f32 %v4111_v13, %v925_v9  ;;  %v5108_v9 = vld [vmem:[#allocation4 + $0x7c] ss:$12 sps:$4 sm:$0xff]   ;;  %v5116_v13 = vld [vmem:[#allocation4 + $0x64] ss:$12 sps:$4 sm:$0xff]  }
 0x3c5   :  { %v5043_v11 = vadd.f32 %v4109_v5, %v926_v27  ;;  %v5104_v5 = vld [vmem:[#allocation4 + $0x90] ss:$12 sps:$4 sm:$0xff]  }
 0x3c7   :  { %v932_v58 = vpack.c.bf16 %v5043_v11, %v5043_v11 }
 0x3c9   :  { %966 = vmatmul.mubr.bf16.vlgmr.msra.gmra.mxu0 %v932_v58  ;;  %3625 = vmatmul.mubr.bf16.vlgmr.msra.gmra.mxu1 %v932_v58 }
 0x3ca   :  { %1041 = vmatpush1.bf16.msra.mxu0 %v4732_v16  ;;  %3629 = vmatpush3.bf16.msra.mxu1 %v4777_v33  ;;  %v5080_v16 = vld [vmem:[#allocation4 + $0xac] ss:$12 sps:$4 sm:$0xff]  }
 0x3cb   :  { %1042 = vmatprep.subr.bf16.mxu0 %v4744_v20  ;;  %3630 = vmatprep.subr.bf16.mxu1 %v5932_v54 }
 0x3cc   :  { %1072 = vmatprep.mubr.bf16.mxu0 %v5933_v62  ;;  %3644 = vmatprep.mubr.msk.bf16.mxu1 %vm4565_vm2, %v5932_v54 }
 0x3ce   :  { %1043 = vmatpush1.bf16.msra.mxu0 %v4757_v26  ;;  %3631 = vmatpush3.bf16.msra.mxu1 %v4781_v34 }
 0x3cf   :  { %1044 = vmatprep.subr.bf16.mxu0 %v4761_v28  ;;  %3632 = vmatprep.subr.bf16.mxu1 %v5932_v54 }
 0x3d2   :  { %1045 = vmatpush1.bf16.msra.mxu0 %v4764_v29  ;;  %3633 = vmatpush3.bf16.msra.mxu1 %v4795_v39 }
 0x3d3   :  { %1046 = vmatprep.subr.bf16.mxu0 %v4767_v30  ;;  %3634 = vmatprep.subr.bf16.mxu1 %v5932_v54 }
 0x3d6   :  { %1047 = vmatpush1.bf16.msra.mxu0 %v4784_v35  ;;  %3635 = vmatpush3.bf16.msra.mxu1 %v4804_v41 }
 0x3d7   :  { %1048 = vmatprep.subr.bf16.mxu0 %v4788_v37  ;;  %3636 = vmatprep.subr.bf16.mxu1 %v5932_v54 }
 0x3da   :  { %1049 = vmatpush1.bf16.msra.mxu0 %v4791_v38  ;;  %3637 = vmatpush3.bf16.msra.mxu1 %v4816_v44 }
 0x3db   :  { %1050 = vmatprep.subr.bf16.mxu0 %v4800_v40  ;;  %3638 = vmatprep.subr.bf16.mxu1 %v5932_v54 }
 0x3de   :  { %1051 = vmatpush1.bf16.msra.mxu0 %v4806_v42  ;;  %3639 = vmatpush3.bf16.msra.mxu1 %v4826_v47 }
 0x3df   :  { %1052 = vmatprep.subr.bf16.mxu0 %v4809_v43  ;;  %3640 = vmatprep.subr.bf16.mxu1 %v5932_v54 }
 0x3e2   :  { %1053 = vmatpush1.bf16.msra.mxu0 %v4818_v45  ;;  %3641 = vmatpush3.bf16.msra.mxu1 %v4836_v49 }
 0x3e3   :  { %1054 = vmatprep.subr.bf16.mxu0 %v4820_v46  ;;  %3642 = vmatprep.subr.bf16.mxu1 %v5932_v54 }
 0x3e6   :  { %1055 = vmatpush1.bf16.msra.mxu0 %v4828_v48  ;;  %3643 = vmatpush3.bf16.msra.mxu1 %v4841_v50 }
 0x3e7   :  { %1147 = vmatprep.subr.bf16.mxu0 %v5080_v16  ;;  %3648 = vmatprep.subr.bf16.mxu1 %v5932_v54 }
 0x489   :  { %v967_v20 = vpop.f32.mrf.mxu0  ;;  %v1008_v26 = vpop.f32.mrf.mxu1 }
 0x48a   :  { %v1014_v28 = vadd.f32 %v967_v20, %v4921_v19  ;;  %v1028_v19 = vadd.f32 %v4950_v51, %v1008_v26 }
 0x48b   :  { %v969_v29 = vpop.f32.mrf.mxu0  ;;  %v3626_v30 = vpop.f32.mrf.mxu1 }
 0x48c   :  { %v1015_v60 = vsub.f32 0.0, %v1014_v28  ;;  %v1021_v3 = vadd.f32 %v969_v29, %v4926_v24 }
 0x48d   :  { %v971_v21 = vpop.f32.mrf.mxu0  ;;  %v1011_v22 = vpop.f32.mrf.mxu1 }
 0x48e   :  { %v1016_v55 = vmul.f32 1.442695, %v1015_v60  ;;  %v1022_v4 = vsub.f32 0.0, %v1021_v3  ;;  %v5170_v3 = vld [vmem:[#allocation4 + $0x60] ss:$12 sps:$4 sm:$0xff]  }
 0x48f   :  { %v972_v53 = vpop.f32.mrf.mxu0  ;;  %v3627_v25 = vpop.f32.mrf.mxu1 }
 0x490   :  { %4112 = vpow2.f32 %v1016_v55  ;;  %v1023_v57 = vmul.f32 1.442695, %v1022_v4  ;;  %v5150_v53 = vld [vmem:[#allocation4 + $0xb0] ss:$12 sps:$4 sm:$0xff]   ;;  %v5165_v25 = vld [vmem:[#allocation4 + $0x80] ss:$12 sps:$4 sm:$0xff]  }
 0x491   :  { %v5173_v4 = vld [vmem:[#allocation4 + $0x68] ss:$12 sps:$4 sm:$0xff]  }
 0x492   :  { %4114 = vpow2.f32 %v1023_v57  ;;  %v5176_v57 = vld [vmem:[#allocation4 + $0x4c] ss:$12 sps:$4 sm:$0xff]  }
 0x49d   :  { %v4113_v59 = vpop.eup %4112 }
 0x49e   :  { %v1018_v6 = vadd.f32 1.0, %v4113_v59  ;;  %v5180_v59 = vld [vmem:[#allocation4 + $0x48] ss:$12 sps:$4 sm:$0xff]  }
 0x49f   :  { %v4115_v63 = vpop.eup %4114 }
 0x4a0   :  { %4116 = vrcp.f32 %v1018_v6  ;;  %v1025_v32 = vadd.f32 1.0, %v4115_v63  ;;  %v5183_v6 = vld [vmem:[#allocation4 + $0x50] ss:$12 sps:$4 sm:$0xff]   ;;  %v5186_v63 = vld [vmem:[#allocation4 + $0x34] ss:$12 sps:$4 sm:$0xff]  }
 0x4ad   :  { %v4117_v18 = vpop.eup %4116 }
 0x4ae   :  { %v1029_v0 = vmul.f32 %v4117_v18, %v1028_v19  ;;  %v5190_v19 = vld [vmem:[#allocation4 + $0x30] ss:$12 sps:$4 sm:$0xff]   ;;  %v5193_v18 = vld [vmem:[#allocation4 + $0x38] ss:$12 sps:$4 sm:$0xff]  }
 0x4b0   :  { %v1030_v14 = vadd.f32 %v1029_v0, %v4909_v7  ;;  %v5097_v7 = vld [vmem:[#allocation4 + $0x94] ss:$12 sps:$4 sm:$0xff]   ;;  %v5196_v0 = vld [vmem:[#allocation4 + $0x1c] ss:$12 sps:$4 sm:$0xff]  }
 0x4b2   :  { %4118 = vtanh.f32 %v1030_v14  ;;  %v5200_v14 = vld [vmem:[#allocation4 + $0x18] ss:$12 sps:$4 sm:$0xff]  }
 0x4b3   :  { %4120 = vrcp.f32 %v1025_v32  ;;  %v5204_v32 = vld [vmem:[#allocation4 + $0x4] ss:$12 sps:$4 sm:$0xff]  }
 0x4bf   :  { %v4119_v17 = vpop.eup %4118 }
 0x4c0   :  { %v1032_v10 = vsub.f32 %v5043_v11, %v4119_v17  ;;  %v4121_v24 = vpop.eup %4120 }
 0x4c2   :  { %v1033_v31 = vmul.f32 %v4121_v24, %v1032_v10 }
 0x4c4   :  { %v5089_v52 = vadd.f32 %v4119_v17, %v1033_v31  ;;  %v5208_v17 = vld [vmem:[#allocation4] ss:$12 sps:$4 sm:$0xff]  }
 0x4c6   :  { %v1039_v2 = vpack.c.bf16 %v5089_v52, %v5089_v52 }
 0x4c8   :  { %1073 = vmatmul.mubr.bf16.vlgmr.msra.gmra.mxu0 %v1039_v2  ;;  %3645 = vmatmul.mubr.bf16.vlgmr.msra.gmra.mxu1 %v1039_v2 }
 0x4c9   :  { %1148 = vmatpush1.bf16.msra.mxu0 %v5093_v15  ;;  %3649 = vmatpush3.bf16.msra.mxu1 %v4777_v33  ;;  %v5112_v33 = vld [vmem:[#allocation4 + $0x78] ss:$12 sps:$4 sm:$0xff]  }
 0x4ca   :  { %1149 = vmatprep.subr.bf16.mxu0 %v5097_v7  ;;  %3650 = vmatprep.subr.bf16.mxu1 %v5932_v54 }
 0x4cb   :  { %1179 = vmatprep.mubr.bf16.mxu0 %v5933_v62  ;;  %3664 = vmatprep.mubr.msk.bf16.mxu1 %vm4565_vm2, %v5932_v54 }
 0x4cd   :  { %1150 = vmatpush1.bf16.msra.mxu0 %v5104_v5  ;;  %3651 = vmatpush3.bf16.msra.mxu1 %v4781_v34 }
 0x4ce   :  { %1151 = vmatprep.subr.bf16.mxu0 %v5108_v9  ;;  %3652 = vmatprep.subr.bf16.mxu1 %v5932_v54 }
 0x4d1   :  { %1152 = vmatpush1.bf16.msra.mxu0 %v5112_v33  ;;  %3653 = vmatpush3.bf16.msra.mxu1 %v4795_v39 }
 0x4d2   :  { %1153 = vmatprep.subr.bf16.mxu0 %v5116_v13  ;;  %3654 = vmatprep.subr.bf16.mxu1 %v5932_v54 }
 0x4d5   :  { %1154 = vmatpush1.bf16.msra.mxu0 %v4784_v35  ;;  %3655 = vmatpush3.bf16.msra.mxu1 %v4804_v41 }
 0x4d6   :  { %1155 = vmatprep.subr.bf16.mxu0 %v4788_v37  ;;  %3656 = vmatprep.subr.bf16.mxu1 %v5932_v54 }
 0x4d9   :  { %1156 = vmatpush1.bf16.msra.mxu0 %v4791_v38  ;;  %3657 = vmatpush3.bf16.msra.mxu1 %v4816_v44 }
 0x4da   :  { %1157 = vmatprep.subr.bf16.mxu0 %v4800_v40  ;;  %3658 = vmatprep.subr.bf16.mxu1 %v5932_v54 }
 0x4dd   :  { %1158 = vmatpush1.bf16.msra.mxu0 %v4806_v42  ;;  %3659 = vmatpush3.bf16.msra.mxu1 %v4826_v47 }
 0x4de   :  { %1159 = vmatprep.subr.bf16.mxu0 %v4809_v43  ;;  %3660 = vmatprep.subr.bf16.mxu1 %v5932_v54 }
 0x4e1   :  { %1160 = vmatpush1.bf16.msra.mxu0 %v4818_v45  ;;  %3661 = vmatpush3.bf16.msra.mxu1 %v4836_v49 }
 0x4e2   :  { %1161 = vmatprep.subr.bf16.mxu0 %v4820_v46  ;;  %3662 = vmatprep.subr.bf16.mxu1 %v5932_v54 }
 0x4e5   :  { %1162 = vmatpush1.bf16.msra.mxu0 %v4828_v48  ;;  %3663 = vmatpush3.bf16.msra.mxu1 %v4841_v50 }
 0x4e6   :  { %1254 = vmatprep.subr.bf16.mxu0 %v5080_v16  ;;  %3668 = vmatprep.subr.bf16.mxu1 %v5932_v54 }
 0x588   :  { %v1074_v34 = vpop.f32.mrf.mxu0  ;;  %v1115_v35 = vpop.f32.mrf.mxu1 }
 0x589   :  { %v1121_v37 = vadd.f32 %v1074_v34, %v4931_v36  ;;  %v1135_v36 = vadd.f32 %v4950_v51, %v1115_v35 }
 0x58a   :  { %v1076_v38 = vpop.f32.mrf.mxu0  ;;  %v3646_v39 = vpop.f32.mrf.mxu1 }
 0x58b   :  { %v1122_v40 = vsub.f32 0.0, %v1121_v37  ;;  %v1128_v46 = vadd.f32 %v1076_v38, %v4936_v1 }
 0x58c   :  { %v1078_v41 = vpop.f32.mrf.mxu0  ;;  %v1118_v42 = vpop.f32.mrf.mxu1 }
 0x58d   :  { %v1123_v43 = vmul.f32 1.442695, %v1122_v40  ;;  %v1129_v47 = vsub.f32 0.0, %v1128_v46 }
 0x58e   :  { %v1079_v44 = vpop.f32.mrf.mxu0  ;;  %v3647_v45 = vpop.f32.mrf.mxu1 }
 0x58f   :  { %4122 = vpow2.f32 %v1123_v43  ;;  %v1130_v48 = vmul.f32 1.442695, %v1129_v47 }
 0x591   :  { %4124 = vpow2.f32 %v1130_v48 }
 0x59c   :  { %v4123_v27 = vpop.eup %4122 }
 0x59d   :  { %v1125_v11 = vadd.f32 1.0, %v4123_v27 }
 0x59e   :  { %v4125_v58 = vpop.eup %4124 }
 0x59f   :  { %4126 = vrcp.f32 %v1125_v11  ;;  %v1132_v29 = vadd.f32 1.0, %v4125_v58 }
 0x5ac   :  { %v4127_v20 = vpop.eup %4126 }
 0x5ad   :  { %v1136_v26 = vmul.f32 %v4127_v20, %v1135_v36 }
 0x5af   :  { %v1137_v28 = vadd.f32 %v1136_v26, %v4924_v23  ;;  %v5159_v23 = vld [vmem:[#allocation4 + $0x98] ss:$12 sps:$4 sm:$0xff]  }
 0x5b1   :  { %4128 = vtanh.f32 %v1137_v28 }
 0x5b2   :  { %4130 = vrcp.f32 %v1132_v29 }
 0x5be   :  { %v4129_v30 = vpop.eup %4128 }
 0x5bf   :  { %v1139_v60 = vsub.f32 %v5089_v52, %v4129_v30  ;;  %v4131_v1 = vpop.eup %4130 }
 0x5c1   :  { %v1140_v21 = vmul.f32 %v4131_v1, %v1139_v60 }
 0x5c3   :  { %v5145_v22 = vadd.f32 %v4129_v30, %v1140_v21  ;;  %v5935_v21 = vld [vmem:[#allocation35_spill] sm:$0xff] }
 0x5c5   :  { %v1146_v55 = vpack.c.bf16 %v5145_v22, %v5145_v22 }
 0x5c7   :  { %1180 = vmatmul.mubr.bf16.vlgmr.msra.gmra.mxu0 %v1146_v55  ;;  %3665 = vmatmul.mubr.bf16.vlgmr.msra.gmra.mxu1 %v1146_v55 }
 0x5c8   :  { %1255 = vmatpush1.bf16.msra.mxu0 %v5093_v15  ;;  %3669 = vmatpush3.bf16.msra.mxu1 %v5150_v53 }
 0x5c9   :  { %1256 = vmatprep.subr.bf16.mxu0 %v5097_v7  ;;  %3670 = vmatprep.subr.bf16.mxu1 %v5932_v54 }
 0x5ca   :  { %1286 = vmatprep.mubr.bf16.mxu0 %v5933_v62  ;;  %3684 = vmatprep.mubr.msk.bf16.mxu1 %vm4565_vm2, %v5932_v54 }
 0x5cc   :  { %1257 = vmatpush1.bf16.msra.mxu0 %v5104_v5  ;;  %3671 = vmatpush3.bf16.msra.mxu1 %v5159_v23 }
 0x5cd   :  { %1258 = vmatprep.subr.bf16.mxu0 %v5108_v9  ;;  %3672 = vmatprep.subr.bf16.mxu1 %v5932_v54 }
 0x5d0   :  { %1259 = vmatpush1.bf16.msra.mxu0 %v5112_v33  ;;  %3673 = vmatpush3.bf16.msra.mxu1 %v5165_v25 }
 0x5d1   :  { %1260 = vmatprep.subr.bf16.mxu0 %v5116_v13  ;;  %3674 = vmatprep.subr.bf16.mxu1 %v5932_v54 }
 0x5d4   :  { %1261 = vmatpush1.bf16.msra.mxu0 %v5170_v3  ;;  %3675 = vmatpush3.bf16.msra.mxu1 %v5173_v4 }
 0x5d5   :  { %1262 = vmatprep.subr.bf16.mxu0 %v5176_v57  ;;  %3676 = vmatprep.subr.bf16.mxu1 %v5932_v54 }
 0x5d8   :  { %1263 = vmatpush1.bf16.msra.mxu0 %v5180_v59  ;;  %3677 = vmatpush3.bf16.msra.mxu1 %v5183_v6 }
 0x5d9   :  { %1264 = vmatprep.subr.bf16.mxu0 %v5186_v63  ;;  %3678 = vmatprep.subr.bf16.mxu1 %v5932_v54 }
 0x5dc   :  { %1265 = vmatpush1.bf16.msra.mxu0 %v5190_v19  ;;  %3679 = vmatpush3.bf16.msra.mxu1 %v5193_v18 }
 0x5dd   :  { %1266 = vmatprep.subr.bf16.mxu0 %v5196_v0  ;;  %3680 = vmatprep.subr.bf16.mxu1 %v5932_v54 }
 0x5e0   :  { %1267 = vmatpush1.bf16.msra.mxu0 %v5200_v14  ;;  %3681 = vmatpush3.bf16.msra.mxu1 %v4836_v49 }
 0x5e1   :  { %1268 = vmatprep.subr.bf16.mxu0 %v5204_v32  ;;  %3682 = vmatprep.subr.bf16.mxu1 %v5932_v54 }
 0x5e4   :  { %1269 = vmatpush1.bf16.msra.mxu0 %v5208_v17  ;;  %3683 = vmatpush3.bf16.msra.mxu1 %v4841_v50 }
 0x5e5   :  { %1361 = vmatprep.subr.bf16.mxu0 %v5080_v16  ;;  %3688 = vmatprep.subr.bf16.mxu1 %v5932_v54 }
 0x687   :  { %v1181_v10 = vpop.f32.mrf.mxu0  ;;  %v1222_v24 = vpop.f32.mrf.mxu1 }
 0x688   :  { %v1228_v49 = vadd.f32 %v1181_v10, %v4938_v8  ;;  %v1242_v8 = vadd.f32 %v4950_v51, %v1222_v24  ;;  %v4017_v24 = vld [vmem:[%s5893_s10 + $0x38] sm:$0xff]  }
 0x689   :  { %v1183_v31 = vpop.f32.mrf.mxu0  ;;  %v3666_v52 = vpop.f32.mrf.mxu1 }
 0x68a   :  { %v1229_v2 = vsub.f32 0.0, %v1228_v49  ;;  %v1235_v40 = vadd.f32 %v1183_v31, %v4940_v12  ;;  %v4018_v49 = vld [vmem:[%s5895_s12 + $0x38] sm:$0xff]   ;;  %v4019_v31 = vld [vmem:[%s5893_s10 + $0x30] sm:$0xff]  }
 0x68b   :  { %v1185_v34 = vpop.f32.mrf.mxu0  ;;  %v1225_v35 = vpop.f32.mrf.mxu1  ;;  %v4020_v52 = vld [vmem:[%s5895_s12 + $0x30] sm:$0xff]  }
 0x68c   :  { %v1230_v37 = vmul.f32 1.442695, %v1229_v2  ;;  %v1236_v50 = vsub.f32 0.0, %v1235_v40  ;;  %v4021_v2 = vld [vmem:[%s5893_s10 + $0x28] sm:$0xff]   ;;  %v4023_v35 = vld [vmem:[%s5893_s10 + $0x20] sm:$0xff]   ;;  %v4027_v40 = vld [vmem:[%s5893_s10 + $0x10] sm:$0xff]  }
 0x68d   :  { %v1186_v38 = vpop.f32.mrf.mxu0  ;;  %v3667_v39 = vpop.f32.mrf.mxu1  ;;  %v4022_v34 = vld [vmem:[%s5895_s12 + $0x28] sm:$0xff]  }
 0x68e   :  { %4132 = vpow2.f32 %v1230_v37  ;;  %v1237_v41 = vmul.f32 1.442695, %v1236_v50  ;;  %v4024_v37 = vld [vmem:[%s5895_s12 + $0x20] sm:$0xff]   ;;  %v4025_v38 = vld [vmem:[%s5893_s10 + $0x18] sm:$0xff]   ;;  %v4028_v50 = vld [vmem:[%s5895_s12 + $0x10] sm:$0xff]  }
 0x68f   :  { %v4026_v39 = vld [vmem:[%s5895_s12 + $0x18] sm:$0xff]  }
 0x690   :  { %4134 = vpow2.f32 %v1237_v41  ;;  %v4029_v41 = vld [vmem:[%s5893_s10 + $0x8] sm:$0xff]  }
 0x69b   :  { %v4133_v16 = vpop.eup %4132 }
 0x69c   :  { %v1232_v42 = vadd.f32 1.0, %v4133_v16  ;;  %v4030_v16 = vld [vmem:[%s5895_s12 + $0x8] sm:$0xff]  }
 0x69d   :  { %v4135_v43 = vpop.eup %4134 }
 0x69e   :  { %4136 = vrcp.f32 %v1232_v42  ;;  %v1239_v47 = vadd.f32 1.0, %v4135_v43  ;;  %v4031_v42 = vld [vmem:[%s5893_s10] sm:$0xff]  }
 0x69f   :  { %v4032_v43 = vld [vmem:[%s5895_s12] sm:$0xff]  }
 0x6ab   :  { %v4137_v44 = vpop.eup %4136 }
 0x6ac   :  { %v1243_v45 = vmul.f32 %v4137_v44, %v1242_v8 }
 0x6ae   :  { %v1244_v46 = vadd.f32 %v1243_v45, %v4934_v61  ;;  %v4268_v61 = vld [vmem:[#allocation4 + $0x20] ss:$12 sps:$4 sm:$0xff]  }
 0x6af   :  { %v5937_v45 = vld [vmem:[#allocation36_spill] sm:$0xff] }
 0x6b0   :  { %4138 = vtanh.f32 %v1244_v46 }
 0x6b1   :  { %4140 = vrcp.f32 %v1239_v47 }
 0x6bd   :  { %v4139_v48 = vpop.eup %4138 }
 0x6be   :  { %v1246_v27 = vsub.f32 %v5145_v22, %v4139_v48  ;;  %v4141_v12 = vpop.eup %4140 }
 0x6c0   :  { %v1247_v11 = vmul.f32 %v4141_v12, %v1246_v27 }
 0x6c2   :  { %v5219_v58 = vadd.f32 %v4139_v48, %v1247_v11 }
 0x6c4   :  { %v1253_v36 = vpack.c.bf16 %v5219_v58, %v5219_v58 }
 0x6c6   :  { %1287 = vmatmul.mubr.bf16.vlgmr.msra.gmra.mxu0 %v1253_v36  ;;  %3685 = vmatmul.mubr.bf16.vlgmr.msra.gmra.mxu1 %v1253_v36 }
 0x6c7   :  { %1362 = vmatpush1.bf16.msra.mxu0 %v5093_v15  ;;  %3689 = vmatpush3.bf16.msra.mxu1 %v5150_v53  ;;  %v4269_v15 = vld [vmem:[#allocation4 + $0x8] ss:$12 sps:$4 sm:$0xff]  }
 0x6c8   :  { %1363 = vmatprep.subr.bf16.mxu0 %v5097_v7  ;;  %3690 = vmatprep.subr.bf16.mxu1 %v5932_v54 }
 0x6c9   :  { %1393 = vmatprep.mubr.bf16.mxu0 %v5933_v62  ;;  %3704 = vmatprep.mubr.msk.bf16.mxu1 %vm4565_vm2, %v5932_v54 }
 0x6cb   :  { %1364 = vmatpush1.bf16.msra.mxu0 %v5104_v5  ;;  %3691 = vmatpush3.bf16.msra.mxu1 %v5159_v23 }
 0x6cc   :  { %1365 = vmatprep.subr.bf16.mxu0 %v5108_v9  ;;  %3692 = vmatprep.subr.bf16.mxu1 %v5932_v54  ;;  %v5934_v9 = vld [vmem:[#allocation34_spill] sm:$0xff] }
 0x6cf   :  { %1366 = vmatpush1.bf16.msra.mxu0 %v5112_v33  ;;  %3693 = vmatpush3.bf16.msra.mxu1 %v5165_v25 }
 0x6d0   :  { %1367 = vmatprep.subr.bf16.mxu0 %v5116_v13  ;;  %3694 = vmatprep.subr.bf16.mxu1 %v5932_v54 }
 0x6d3   :  { %1368 = vmatpush1.bf16.msra.mxu0 %v5170_v3  ;;  %3695 = vmatpush3.bf16.msra.mxu1 %v5173_v4 }
 0x6d4   :  { %1369 = vmatprep.subr.bf16.mxu0 %v5176_v57  ;;  %3696 = vmatprep.subr.bf16.mxu1 %v5932_v54 }
 0x6d7   :  { %1370 = vmatpush1.bf16.msra.mxu0 %v5180_v59  ;;  %3697 = vmatpush3.bf16.msra.mxu1 %v5183_v6  ;;  %v5936_v6 = vld [vmem:[#allocation32_spill] sm:$0xff] }
 0x6d8   :  { %1371 = vmatprep.subr.bf16.mxu0 %v5186_v63  ;;  %3698 = vmatprep.subr.bf16.mxu1 %v5932_v54 }
 0x6db   :  { %1372 = vmatpush1.bf16.msra.mxu0 %v5190_v19  ;;  %3699 = vmatpush3.bf16.msra.mxu1 %v5193_v18 }
 0x6dc   :  { %1373 = vmatprep.subr.bf16.mxu0 %v5196_v0  ;;  %3700 = vmatprep.subr.bf16.mxu1 %v5932_v54 }
 0x6df   :  { %1374 = vmatpush1.bf16.msra.mxu0 %v5200_v14  ;;  %3701 = vmatpush3.bf16.msra.mxu1 %v4268_v61 }
 0x6e0   :  { %1375 = vmatprep.subr.bf16.mxu0 %v5204_v32  ;;  %3702 = vmatprep.subr.bf16.mxu1 %v5932_v54 }
 0x6e3   :  { %1376 = vmatpush1.bf16.msra.mxu0 %v5208_v17  ;;  %3703 = vmatpush3.bf16.msra.mxu1 %v4269_v15 }
 0x6e4   :  { %3708 = vmatprep.subr.bf16.mxu0 %v5932_v54  ;;  %3728 = vmatprep.subr.bf16.mxu1 %v5932_v54 }
 0x786   :  { %v1288_v7 = vpop.f32.mrf.mxu0  ;;  %v1329_v5 = vpop.f32.mrf.mxu1 }
 0x787   :  { %v1335_v33 = vadd.f32 %v1288_v7, %v5934_v9  ;;  %v1349_v4 = vadd.f32 %v4950_v51, %v1329_v5 }
 0x788   :  { %v1290_v13 = vpop.f32.mrf.mxu0  ;;  %v3686_v20 = vpop.f32.mrf.mxu1 }
 0x789   :  { %v1336_v26 = vsub.f32 0.0, %v1335_v33  ;;  %v1342_v22 = vadd.f32 %v1290_v13, %v5935_v21 }
 0x78a   :  { %v1292_v28 = vpop.f32.mrf.mxu0  ;;  %v1332_v29 = vpop.f32.mrf.mxu1 }
 0x78b   :  { %v1337_v30 = vmul.f32 1.442695, %v1336_v26  ;;  %v1343_v55 = vsub.f32 0.0, %v1342_v22  ;;  %v5938_v29 = vld [vmem:[#allocation33_spill] sm:$0xff] }
 0x78c   :  { %v1293_v60 = vpop.f32.mrf.mxu0  ;;  %v3687_v1 = vpop.f32.mrf.mxu1 }
 0x78d   :  { %4142 = vpow2.f32 %v1337_v30  ;;  %v1344_v53 = vmul.f32 1.442695, %v1343_v55 }
 0x78f   :  { %4144 = vpow2.f32 %v1344_v53  ;;  %v4033_v53 = vld [vmem:[#allocation17 + $0x38] sm:$0xff]  }
 0x79a   :  { %v4143_v23 = vpop.eup %4142 }
 0x79b   :  { %v1339_v25 = vadd.f32 1.0, %v4143_v23 }
 0x79c   :  { %v4145_v3 = vpop.eup %4144 }
 0x79d   :  { %4146 = vrcp.f32 %v1339_v25  ;;  %v1346_v19 = vadd.f32 1.0, %v4145_v3  ;;  %v4034_v25 = vld [vmem:[#allocation17 + $0x30] sm:$0xff]   ;;  %v4036_v3 = vld [vmem:[#allocation17 + $0x20] sm:$0xff]  }
 0x7aa   :  { %v4147_v57 = vpop.eup %4146 }
 0x7ab   :  { %v1350_v59 = vmul.f32 %v4147_v57, %v1349_v4  ;;  %v4037_v4 = vld [vmem:[#allocation17 + $0x18] sm:$0xff]   ;;  %v4038_v57 = vld [vmem:[#allocation17 + $0x10] sm:$0xff]  }
 0x7ad   :  { %v1351_v63 = vadd.f32 %v1350_v59, %v5936_v6  ;;  %v4039_v59 = vld [vmem:[#allocation17 + $0x8] sm:$0xff]   ;;  %v4040_v6 = vld [vmem:[#allocation17] sm:$0xff]  }
 0x7af   :  { %4148 = vtanh.f32 %v1351_v63  ;;  %v1806_v63 = vld [vmem:[#allocation8] sm:$0x3f] }
 0x7b0   :  { %4150 = vrcp.f32 %v1346_v19  ;;  %v5939_v19 = vld [vmem:[#allocation31_spill] sm:$0xff] }
 0x7bc   :  { %v4149_v18 = vpop.eup %4148 }
 0x7bd   :  { %v1353_v0 = vsub.f32 %v5219_v58, %v4149_v18  ;;  %v4151_v14 = vpop.eup %4150 }
 0x7bf   :  { %v1354_v32 = vmul.f32 %v4151_v14, %v1353_v0  ;;  %v1870_v0 = vcombine.high %v1806_v63, %v1806_v63  ;;  %v1841_v14 = vld [vmem:[%s5925_s6] sm:$0xff] }
 0x7c1   :  { %v5261_v17 = vadd.f32 %v4149_v18, %v1354_v32  ;;  %v1877_v18 = vrot.slane %v1806_v63, %v5939_v19  ;;  %v1842_v32 = vld [vmem:[%s5925_s6 + $0x8] sm:$0xff]  ;;  %v3293_v63 = vld [vmem:[#allocation18] ss:$0 sm:$0xff] }
 0x7c3   :  { %v1360_v10 = vpack.c.bf16 %v5261_v17, %v5261_v17 }
 0x7c5   :  { %1394 = vmatmul.mubr.bf16.vlgmr.msra.gmra.mxu0 %v1360_v10  ;;  %3705 = vmatmul.mubr.bf16.vlgmr.msra.gmra.mxu1 %v1360_v10  ;;  %v1899_v10 = vsel %vm303_vm0, %v1877_v18, 0 }
 0x7c6   :  { %3724 = vmatprep.mubr.msk.bf16.mxu0 %vm4565_vm2, %v5932_v54  ;;  %3744 = vmatprep.mubr.msk.bf16.mxu1 %vm4565_vm2, %v5932_v54 }
 0x7c7   :  { %3709 = vmatpush3.bf16.msra.mxu0 %v4017_v24  ;;  %3729 = vmatpush3.bf16.msra.mxu1 %v4018_v49  ;;  %v1884_v24 = vrot.slane %v1870_v0, %v5939_v19  ;;  %v5356_v49 = vld [vmem:[#allocation9 + $0xac] ss:$12 sps:$4 sm:$0xff]  }
 0x7c8   :  { %3710 = vmatprep.subr.bf16.mxu0 %v5932_v54  ;;  %3730 = vmatprep.subr.bf16.mxu1 %v5932_v54 }
 0x7cb   :  { %3711 = vmatpush3.bf16.msra.mxu0 %v4019_v31  ;;  %3731 = vmatpush3.bf16.msra.mxu1 %v4020_v52  ;;  %v1849_v31 = vpack.c.bf16 %v1842_v32, %v1841_v14  ;;  %v5361_v52 = vld [vmem:[#allocation9 + $0xa8] ss:$12 sps:$4 sm:$0xff]  }
 0x7cc   :  { %3712 = vmatprep.subr.bf16.mxu0 %v5932_v54  ;;  %3732 = vmatprep.subr.bf16.mxu1 %v5932_v54 }
 0x7cf   :  { %3713 = vmatpush3.bf16.msra.mxu0 %v4021_v2  ;;  %3733 = vmatpush3.bf16.msra.mxu1 %v4022_v34  ;;  %v5364_v2 = vld [vmem:[#allocation9 + $0x94] ss:$12 sps:$4 sm:$0xff]   ;;  %v1843_v34 = vld [vmem:[%s5925_s6 + $0x10] sm:$0xff] }
 0x7d0   :  { %3714 = vmatprep.subr.bf16.mxu0 %v5932_v54  ;;  %3734 = vmatprep.subr.bf16.mxu1 %v5932_v54 }
 0x7d3   :  { %3715 = vmatpush3.bf16.msra.mxu0 %v4023_v35  ;;  %3735 = vmatpush3.bf16.msra.mxu1 %v4024_v37  ;;  %v1844_v35 = vld [vmem:[%s5925_s6 + $0x18] sm:$0xff] }
 0x7d4   :  { %3716 = vmatprep.subr.bf16.mxu0 %v5932_v54  ;;  %3736 = vmatprep.subr.bf16.mxu1 %v5932_v54  ;;  %v5374_v37 = vld [vmem:[#allocation9 + $0x90] ss:$12 sps:$4 sm:$0xff]  }
 0x7d7   :  { %3717 = vmatpush3.bf16.msra.mxu0 %v4025_v38  ;;  %3737 = vmatpush3.bf16.msra.mxu1 %v4026_v39  ;;  %v1850_v38 = vpack.c.bf16 %v1844_v35, %v1843_v34  ;;  %v5377_v39 = vld [vmem:[#allocation9 + $0x7c] ss:$12 sps:$4 sm:$0xff]  }
 0x7d8   :  { %3718 = vmatprep.subr.bf16.mxu0 %v5932_v54  ;;  %3738 = vmatprep.subr.bf16.mxu1 %v5932_v54 }
 0x7db   :  { %3719 = vmatpush3.bf16.msra.mxu0 %v4027_v40  ;;  %3739 = vmatpush3.bf16.msra.mxu1 %v4028_v50  ;;  %v5380_v40 = vld [vmem:[#allocation9 + $0x78] ss:$12 sps:$4 sm:$0xff]  }
 0x7dc   :  { %3720 = vmatprep.subr.bf16.mxu0 %v5932_v54  ;;  %3740 = vmatprep.subr.bf16.mxu1 %v5932_v54  ;;  %v5384_v50 = vld [vmem:[#allocation9 + $0x64] ss:$12 sps:$4 sm:$0xff]  }
 0x7df   :  { %3721 = vmatpush3.bf16.msra.mxu0 %v4029_v41  ;;  %3741 = vmatpush3.bf16.msra.mxu1 %v4030_v16  ;;  %v1845_v41 = vld [vmem:[%s5925_s6 + $0x20] sm:$0xff]  ;;  %v1846_v16 = vld [vmem:[%s5925_s6 + $0x28] sm:$0xff] }
 0x7e0   :  { %3722 = vmatprep.subr.bf16.mxu0 %v5932_v54  ;;  %3742 = vmatprep.subr.bf16.mxu1 %v5932_v54 }
 0x7e3   :  { %3723 = vmatpush3.bf16.msra.mxu0 %v4031_v42  ;;  %3743 = vmatpush3.bf16.msra.mxu1 %v4032_v43  ;;  %v1851_v42 = vpack.c.bf16 %v1846_v16, %v1845_v41  ;;  %v3275_v43 = vld [vmem:[#allocation14] ss:$0 sm:$0xff] }
 0x7e4   :  { %3748 = vmatprep.subr.bf16.mxu0 %v5932_v54 }
 0x885   :  { %v1395_v8 = vpop.f32.mrf.mxu0  ;;  %v1436_v44 = vpop.f32.mrf.mxu1 }
 0x886   :  { %v1442_v46 = vadd.f32 %v1395_v8, %v5937_v45  ;;  %v1456_v20 = vadd.f32 %v4950_v51, %v1436_v44  ;;  %v4035_v51 = vld [vmem:[#allocation17 + $0x28] sm:$0xff]   ;;  %v3284_v8 = vld [vmem:[#allocation15] ss:$0 sm:$0xff] }
 0x887   :  { %v1397_v47 = vpop.f32.mrf.mxu0  ;;  %v3706_v48 = vpop.f32.mrf.mxu1 }
 0x888   :  { %v1443_v27 = vsub.f32 0.0, %v1442_v46  ;;  %v1449_v15 = vadd.f32 %v1397_v47, %v4948_v56 }
 0x889   :  { %v1399_v12 = vpop.f32.mrf.mxu0  ;;  %v1439_v11 = vpop.f32.mrf.mxu1 }
 0x88a   :  { %v1444_v58 = vmul.f32 1.442695, %v1443_v27  ;;  %v1450_v7 = vsub.f32 0.0, %v1449_v15  ;;  %v1688_v15 = vld [vmem:[%s5940_s4] sm:$0xff] }
 0x88b   :  { %v1400_v36 = vpop.f32.mrf.mxu0  ;;  %v3707_v61 = vpop.f32.mrf.mxu1 }
 0x88c   :  { %4152 = vpow2.f32 %v1444_v58  ;;  %v1451_v5 = vmul.f32 1.442695, %v1450_v7 }
 0x88e   :  { %4154 = vpow2.f32 %v1451_v5 }
 0x899   :  { %v4153_v9 = vpop.eup %4152 }
 0x89a   :  { %v1446_v33 = vadd.f32 1.0, %v4153_v9 }
 0x89b   :  { %v4155_v13 = vpop.eup %4154 }
 0x89c   :  { %4156 = vrcp.f32 %v1446_v33  ;;  %v1453_v60 = vadd.f32 1.0, %v4155_v13  ;;  %v1905_v13 = vsel %vm303_vm0, %v1884_v24, 0 }
 0x8a9   :  { %v4157_v26 = vpop.eup %4156 }
 0x8aa   :  { %v1457_v28 = vmul.f32 %v4157_v26, %v1456_v20  ;;  %v5409_v20 = vld [vmem:[#allocation9 + $0xb0] ss:$12 sps:$4 sm:$0xff]   ;;  %v5413_v26 = vld [vmem:[#allocation9 + $0x98] ss:$12 sps:$4 sm:$0xff]  }
 0x8ac   :  { %v1458_v30 = vadd.f32 %v1457_v28, %v5938_v29  ;;  %v5418_v28 = vld [vmem:[#allocation9 + $0x80] ss:$12 sps:$4 sm:$0xff]  }
 0x8ad   :  { %v5423_v29 = vld [vmem:[#allocation9 + $0x60] ss:$12 sps:$4 sm:$0xff]  }
 0x8ae   :  { %4158 = vtanh.f32 %v1458_v30  ;;  %v5425_v30 = vld [vmem:[#allocation9 + $0x68] ss:$12 sps:$4 sm:$0xff]  }
 0x8af   :  { %4160 = vrcp.f32 %v1453_v60  ;;  %v5429_v60 = vld [vmem:[#allocation9 + $0x4c] ss:$12 sps:$4 sm:$0xff]  }
 0x8bb   :  { %v4159_v1 = vpop.eup %4158 }
 0x8bc   :  { %v1460_v21 = vsub.f32 %v5261_v17, %v4159_v1  ;;  %v4161_v56 = vpop.eup %4160  ;;  %v1885_v17 = vcombine.high %v1877_v18, %v1877_v18 }
 0x8be   :  { %v1461_v22 = vmul.f32 %v4161_v56, %v1460_v21  ;;  %3302 = vmatprep.subr.msk.bf16.mxu1 %vm303_vm0, %v1885_v17  ;;  %v5434_v21 = vld [vmem:[#allocation9 + $0x50] ss:$12 sps:$4 sm:$0xff]   ;;  %v1847_v56 = vld [vmem:[%s5925_s6 + $0x30] sm:$0xff] }
 0x8c0   :  { %v1462_v55 = vadd.f32 %v4159_v1, %v1461_v22  ;;  %v5432_v1 = vld [vmem:[#allocation9 + $0x48] ss:$12 sps:$4 sm:$0xff]  }
 0x8c1   :  { %v1848_v22 = vld [vmem:[%s5925_s6 + $0x38] sm:$0xff] }
 0x8c2   :  { %v1479_v23 = vpack.c.bf16 %v1462_v55, %v1462_v55  ;;  %v1852_v55 = vpack.c.bf16 %v1848_v22, %v1847_v56 }
 0x8c4   :  { %3725 = vmatmul.mubr.bf16.vlgmr.msra.gmra.mxu0 %v1479_v23  ;;  %3745 = vmatmul.mubr.bf16.vlgmr.msra.gmra.mxu1 %v1479_v23  ;;  %v5449_v23 = vld [vmem:[#allocation9 + $0x30] ss:$12 sps:$4 sm:$0xff]  }
 0x8c5   :  { %3749 = vmatpush3.bf16.msra.mxu0 %v4033_v53  ;;  %3764 = vmatprep.mubr.msk.bf16.mxu0 %vm4565_vm2, %v5932_v54  ;;  %v5445_v53 = vld [vmem:[#allocation9 + $0x34] ss:$12 sps:$4 sm:$0xff]  }
 0x8c6   :  { %3750 = vmatprep.subr.bf16.mxu0 %v5932_v54  ;;  %1939 = vmatprep.mubr.bf16.mxu1 %v5933_v62 }
 0x8c7   :  { %1922 = vmatpush1.bf16.msra.mxu1 %v1899_v10 }
 0x8c8   :  { %2207 = vmatprep.subr.bf16.mxu1 %v5356_v49 }
 0x8c9   :  { %3751 = vmatpush3.bf16.msra.mxu0 %v4034_v25  ;;  %v5451_v25 = vld [vmem:[#allocation9 + $0x38] ss:$12 sps:$4 sm:$0xff]  }
 0x8ca   :  { %3752 = vmatprep.subr.bf16.mxu0 %v5932_v54 }
 0x8cc   :  { %3303 = vmatmul.mubr.msk.bf16.vlgmr.msra.gmra.mxu1 %vm290_vm1, %v1849_v31 }
 0x8cd   :  { %3753 = vmatpush3.bf16.msra.mxu0 %v4035_v51  ;;  %2208 = vmatpush1.bf16.msra.mxu1 %v5361_v52  ;;  %v5454_v51 = vld [vmem:[#allocation9 + $0x1c] ss:$12 sps:$4 sm:$0xff]  }
 0x8ce   :  { %3754 = vmatprep.subr.bf16.mxu0 %v5932_v54  ;;  %1949 = vmatprep.mubr.bf16.mxu1 %v5933_v62 }
 0x8cf   :  { %2209 = vmatprep.subr.bf16.mxu1 %v5364_v2 }
 0x8d1   :  { %3755 = vmatpush3.bf16.msra.mxu0 %v4036_v3  ;;  %2210 = vmatpush1.bf16.msra.mxu1 %v5374_v37  ;;  %v5460_v3 = vld [vmem:[#allocation9 + $0x18] ss:$12 sps:$4 sm:$0xff]  }
 0x8d2   :  { %3756 = vmatprep.subr.bf16.mxu0 %v5932_v54  ;;  %2211 = vmatprep.subr.bf16.mxu1 %v5377_v39 }
 0x8d4   :  { %3304 = vmatmul.mubr.msk.bf16.gmra.mxu1 %vm290_vm1, %v1850_v38 }
 0x8d5   :  { %3757 = vmatpush3.bf16.msra.mxu0 %v4037_v4  ;;  %2212 = vmatpush1.bf16.msra.mxu1 %v5380_v40  ;;  %v5462_v4 = vld [vmem:[#allocation9 + $0x20] ss:$12 sps:$4 sm:$0xff]  }
 0x8d6   :  { %3758 = vmatprep.subr.bf16.mxu0 %v5932_v54  ;;  %1959 = vmatprep.mubr.bf16.mxu1 %v5933_v62 }
 0x8d7   :  { %2213 = vmatprep.subr.bf16.mxu1 %v5384_v50 }
 0x8d9   :  { %3759 = vmatpush3.bf16.msra.mxu0 %v4038_v57  ;;  %2214 = vmatpush1.bf16.msra.mxu1 %v5423_v29  ;;  %v5466_v57 = vld [vmem:[#allocation9 + $0x4] ss:$12 sps:$4 sm:$0xff]  }
 0x8da   :  { %3760 = vmatprep.subr.bf16.mxu0 %v5932_v54  ;;  %2215 = vmatprep.subr.bf16.mxu1 %v5429_v60 }
 0x8dc   :  { %3305 = vmatmul.mubr.msk.bf16.gmra.mxu1 %vm290_vm1, %v1851_v42 }
 0x8dd   :  { %3761 = vmatpush3.bf16.msra.mxu0 %v4039_v59  ;;  %1969 = vmatprep.mubr.bf16.mxu1 %v5933_v62  ;;  %v5472_v59 = vld [vmem:[#allocation9] ss:$12 sps:$4 sm:$0xff]  }
 0x8de   :  { %3762 = vmatprep.subr.bf16.mxu0 %v5932_v54  ;;  %2216 = vmatpush1.bf16.msra.mxu1 %v5432_v1 }
 0x8df   :  { %2217 = vmatprep.subr.bf16.mxu1 %v5445_v53 }
 0x8e1   :  { %3763 = vmatpush3.bf16.msra.mxu0 %v4040_v6  ;;  %v5474_v6 = vld [vmem:[#allocation9 + $0x8] ss:$12 sps:$4 sm:$0xff]  }
 0x8e2   :  { %3963 = vmatprep.subr.msk.bf16.mxu0 %vm303_vm0, %v1884_v24  ;;  %2218 = vmatpush1.bf16.msra.mxu1 %v5449_v23 }
 0x8e3   :  { %2219 = vmatprep.subr.bf16.mxu1 %v5454_v51 }
 0x8e4   :  { %3306 = vmatmul.mubr.msk.bf16.gmra.mxu1 %vm290_vm1, %v1852_v55 }
 0x8e5   :  { %2239 = vmatprep.mubr.bf16.mxu1 %v5933_v62 }
 0x8e6   :  { %2220 = vmatpush1.bf16.msra.mxu1 %v5460_v3 }
 0x8e7   :  { %2221 = vmatprep.subr.bf16.mxu1 %v5466_v57 }
 0x8ea   :  { %2222 = vmatpush1.bf16.msra.mxu1 %v5472_v59 }
 0x8eb   :  { %2314 = vmatprep.subr.bf16.mxu1 %v5356_v49 }
 0x984   :  { %v1569_v44 = vpop.f32.mrf.mxu0  ;;  %v1680_v45 = vpop.f32.mrf.mxu1 }
 0x985   :  { %v1570_v46 = vadd.f32 %v3275_v43, %v1569_v44  ;;  %v1681_v47 = vadd.f32 %v3284_v8, %v1680_v45 }
 0x986   :  { %v3726_v48 = vpop.f32.mrf.mxu0  ;;  %v3746_v27 = vpop.f32.mrf.mxu1 }
 0x987   :  { %1686 = vst [vmem:[%s5902_s19] sm:$0xff] %v1570_v46  ;;  %1687 = vst [vmem:[%s5903_s20] sm:$0xff] %v1681_v47  ;;  %v1689_v12 = vmul.f32 1.442695, %v1681_v47 }
 0x988   :  { %v1572_v11 = vpop.f32.mrf.mxu0  ;;  %v1683_v58 = vpop.f32.mrf.mxu1 }
 0x989   :  { %4162 = vpow2.f32 %v1689_v12 }
 0x98a   :  { %v3727_v36 = vpop.f32.mrf.mxu0  ;;  %v3747_v61 = vpop.f32.mrf.mxu1 }
 0x98b   :  { %v1839_v61 = vld [vmem:[#allocation11] sm:$0x7] }
 0x98c   :  { %v1941_v24 = vpop.f32.mrf.mxu1 }
 0x996   :  { %v4163_v7 = vpop.eup %4162 }
 0x997   :  { %v1691_v5 = vmul.f32 %v4163_v7, %v1688_v15 }
 0x999   :  { %v1692_v9 = vadd.f32 %v1691_v5, %v1570_v46  ;;  %v5947_v5 = vld [vmem:[#allocation30_spill] sm:$0xff] }
 0x99b   :  { %v1709_v33 = vpack.c.bf16 %v1692_v9, %v1692_v9  ;;  %v5948_v9 = vsub.s32 0, %v5947_v5 }
 0x99d   :  { %3765 = vmatmul.mubr.bf16.vlgmr.msra.gmra.mxu0 %v1709_v33  ;;  %v5561_v33 = vrot.slane %v1839_v61, %v5948_v9 }
 0x99e   :  { %3769 = vmatpush3.bf16.msra.mxu0 %v1905_v13  ;;  %3770 = vmatprep.mubr.msk.bf16.mxu0 %vm290_vm1, %v1849_v31  ;;  %v1943_v31 = vpop.f32.mrf.mxu1 }
 0x99f   :  { %3778 = vmatprep.subr.bf16.mxu0 %v5932_v54  ;;  %v1942_v22 = vadd.f32 %v1941_v24, %v5561_v33 }
 0x9a0   :  { %v5521_v34 = vpop.f32.mrf.mxu1 }
 0x9a2   :  { %v5523_v35 = vpop.f32.mrf.mxu1 }
 0x9a5   :  { %3771 = vmatmul.mubr.msk.bf16.vlgmr.msra.gmra.mxu0 %vm290_vm1, %v1850_v38  ;;  %v5525_v38 = vpop.f32.mrf.mxu1 }
 0x9a6   :  { %3779 = vmatpush3.bf16.msra.mxu0 %v5409_v20  ;;  %3774 = vmatprep.mubr.msk.bf16.mxu0 %vm290_vm1, %v1851_v42 }
 0x9a7   :  { %3780 = vmatprep.subr.bf16.mxu0 %v5932_v54  ;;  %v5527_v41 = vpop.f32.mrf.mxu1 }
 0x9a9   :  { %v5529_v16 = vpop.f32.mrf.mxu1 }
 0x9aa   :  { %3781 = vmatpush3.bf16.msra.mxu0 %v5413_v26 }
 0x9ab   :  { %3782 = vmatprep.subr.bf16.mxu0 %v5932_v54  ;;  %v5531_v42 = vpop.f32.mrf.mxu1 }
 0x9ad   :  { %3775 = vmatmul.mubr.msk.bf16.gmra.mxu0 %vm290_vm1, %v1852_v55  ;;  %v5535_v8 = vpop.f32.mrf.mxu1 }
 0x9ae   :  { %3783 = vmatpush3.bf16.msra.mxu0 %v5418_v28  ;;  %3794 = vmatprep.mubr.msk.bf16.mxu0 %vm4565_vm2, %v5932_v54 }
 0x9af   :  { %3784 = vmatprep.subr.bf16.mxu0 %v5932_v54  ;;  %v5537_v45 = vpop.f32.mrf.mxu1 }
 0x9b1   :  { %v5541_v47 = vpop.f32.mrf.mxu1 }
 0x9b2   :  { %3785 = vmatpush3.bf16.msra.mxu0 %v5425_v30 }
 0x9b3   :  { %3786 = vmatprep.subr.bf16.mxu0 %v5932_v54  ;;  %v5545_v27 = vpop.f32.mrf.mxu1 }
 0x9b4   :  { %5941 = vst [vmem:[#allocation34_spill] sm:$0xff] %v5545_v27 }
 0x9b5   :  { %v5549_v11 = vpop.f32.mrf.mxu1 }
 0x9b6   :  { %3787 = vmatpush3.bf16.msra.mxu0 %v5434_v21  ;;  %5943 = vst [vmem:[#allocation32_spill] sm:$0xff] %v5549_v11 }
 0x9b7   :  { %3788 = vmatprep.subr.bf16.mxu0 %v5932_v54  ;;  %v5553_v36 = vpop.f32.mrf.mxu1 }
 0x9b8   :  { %5944 = vst [vmem:[#allocation36_spill] sm:$0xff] %v5553_v36 }
 0x9b9   :  { %v5557_v7 = vpop.f32.mrf.mxu1 }
 0x9ba   :  { %3789 = vmatpush3.bf16.msra.mxu0 %v5451_v25  ;;  %5946 = vst [vmem:[#allocation31_spill] sm:$0xff] %v5557_v7 }
 0x9bb   :  { %3790 = vmatprep.subr.bf16.mxu0 %v5932_v54  ;;  %v5565_v56 = vpop.f32.mrf.mxu1 }
 0x9bc   :  { %5950 = vst [vmem:[#allocation37_spill] sm:$0xff] %v5565_v56 }
 0x9be   :  { %3791 = vmatpush3.bf16.msra.mxu0 %v5462_v4 }
 0x9bf   :  { %3792 = vmatprep.subr.bf16.mxu0 %v5932_v54 }
 0x9c2   :  { %3793 = vmatpush3.bf16.msra.mxu0 %v5474_v6 }
 0x9c3   :  { %3798 = vmatprep.subr.bf16.mxu0 %v5932_v54 }
 0xa5d   :  { %v1799_v19 = vpop.f32.mrf.mxu0 }
 0xa5e   :  { %v1800_v18 = vadd.f32 %v3293_v63, %v1799_v19 }
 0xa5f   :  { %v3766_v0 = vpop.f32.mrf.mxu0 }
 0xa60   :  { %4164 = vtanh.f32 %v1800_v18 }
 0xa61   :  { %v1802_v14 = vpop.f32.mrf.mxu0 }
 0xa63   :  { %v3767_v32 = vpop.f32.mrf.mxu0 }
 0xa64   :  { %v5951_v32 = vsub.s32 1, %v5947_v5 }
 0xa65   :  { %v5533_v43 = vpop.f32.mrf.mxu0 }
 0xa67   :  { %v2014_v44 = vpop.f32.mrf.mxu0 }
 0xa69   :  { %v5539_v46 = vpop.f32.mrf.mxu0 }
 0xa6b   :  { %v5543_v48 = vpop.f32.mrf.mxu0 }
 0xa6d   :  { %v5482_v17 = vpop.eup %4164  ;;  %v5547_v12 = vpop.f32.mrf.mxu0 }
 0xa6e   :  { %v2078_v10 = vpack.c.bf16 %v5482_v17, %v5482_v17  ;;  %5942 = vst [vmem:[#allocation35_spill] sm:$0xff] %v5547_v12 }
 0xa6f   :  { %v5551_v58 = vpop.f32.mrf.mxu0 }
 0xa70   :  { %2240 = vmatmul.mubr.bf16.vlgmr.msra.gmra.mxu1 %v2078_v10  ;;  %3795 = vmatmul.mubr.bf16.vlgmr.msra.gmra.mxu0 %v2078_v10  ;;  %v5570_v10 = vrot.slane %v1839_v61, %v5951_v32 }
 0xa71   :  { %2315 = vmatpush1.bf16.msra.mxu1 %v5361_v52  ;;  %3799 = vmatpush3.bf16.msra.mxu0 %v5409_v20  ;;  %v5555_v15 = vpop.f32.mrf.mxu0 }
 0xa72   :  { %2316 = vmatprep.subr.bf16.mxu1 %v5364_v2  ;;  %3800 = vmatprep.subr.bf16.mxu0 %v5932_v54  ;;  %5945 = vst [vmem:[#allocation33_spill] sm:$0xff] %v5555_v15  ;;  %v1944_v56 = vadd.f32 %v1943_v31, %v5570_v10 }
 0xa73   :  { %2346 = vmatprep.mubr.bf16.mxu1 %v5933_v62  ;;  %3814 = vmatprep.mubr.msk.bf16.mxu0 %vm4565_vm2, %v5932_v54  ;;  %v5563_v13 = vpop.f32.mrf.mxu0 }
 0xa74   :  { %5949 = vst [vmem:[#allocation30_spill] sm:$0xff] %v5563_v13 }
 0xa75   :  { %2317 = vmatpush1.bf16.msra.mxu1 %v5374_v37  ;;  %3801 = vmatpush3.bf16.msra.mxu0 %v5413_v26 }
 0xa76   :  { %2318 = vmatprep.subr.bf16.mxu1 %v5377_v39  ;;  %3802 = vmatprep.subr.bf16.mxu0 %v5932_v54 }
 0xa79   :  { %2319 = vmatpush1.bf16.msra.mxu1 %v5380_v40  ;;  %3803 = vmatpush3.bf16.msra.mxu0 %v5418_v28 }
 0xa7a   :  { %2320 = vmatprep.subr.bf16.mxu1 %v5384_v50  ;;  %3804 = vmatprep.subr.bf16.mxu0 %v5932_v54 }
 0xa7d   :  { %2321 = vmatpush1.bf16.msra.mxu1 %v5423_v29  ;;  %3805 = vmatpush3.bf16.msra.mxu0 %v5425_v30 }
 0xa7e   :  { %2322 = vmatprep.subr.bf16.mxu1 %v5429_v60  ;;  %3806 = vmatprep.subr.bf16.mxu0 %v5932_v54 }
 0xa81   :  { %2323 = vmatpush1.bf16.msra.mxu1 %v5432_v1  ;;  %3807 = vmatpush3.bf16.msra.mxu0 %v5434_v21 }
 0xa82   :  { %2324 = vmatprep.subr.bf16.mxu1 %v5445_v53  ;;  %3808 = vmatprep.subr.bf16.mxu0 %v5932_v54 }
 0xa85   :  { %2325 = vmatpush1.bf16.msra.mxu1 %v5449_v23  ;;  %3809 = vmatpush3.bf16.msra.mxu0 %v5451_v25 }
 0xa86   :  { %2326 = vmatprep.subr.bf16.mxu1 %v5454_v51  ;;  %3810 = vmatprep.subr.bf16.mxu0 %v5932_v54 }
 0xa89   :  { %2327 = vmatpush1.bf16.msra.mxu1 %v5460_v3  ;;  %3811 = vmatpush3.bf16.msra.mxu0 %v5462_v4 }
 0xa8a   :  { %2328 = vmatprep.subr.bf16.mxu1 %v5466_v57  ;;  %3812 = vmatprep.subr.bf16.mxu0 %v5932_v54 }
 0xa8d   :  { %2329 = vmatpush1.bf16.msra.mxu1 %v5472_v59  ;;  %3813 = vmatpush3.bf16.msra.mxu0 %v5474_v6 }
 0xa8e   :  { %2422 = vmatprep.subr.bf16.mxu1 %v5356_v49  ;;  %3818 = vmatprep.subr.bf16.mxu0 %v5932_v54 }
 0xb30   :  { %v2241_v55 = vpop.f32.mrf.mxu1  ;;  %v2282_v63 = vpop.f32.mrf.mxu0 }
 0xb31   :  { %v2288_v19 = vadd.f32 %v2241_v55, %v1942_v22  ;;  %v5573_v55 = vld [vmem:[#allocation12] ss:$0 sm:$0xff] }
 0xb32   :  { %v2243_v18 = vpop.f32.mrf.mxu1  ;;  %v3796_v0 = vpop.f32.mrf.mxu0 }
 0xb33   :  { %v2289_v14 = vsub.f32 0.0, %v2288_v19  ;;  %v2295_v11 = vadd.f32 %v2243_v18, %v1944_v56  ;;  %v5952_v19 = vsub.s32 2, %v5947_v5 }
 0xb34   :  { %v2245_v15 = vpop.f32.mrf.mxu1  ;;  %v2285_v7 = vpop.f32.mrf.mxu0 }
 0xb35   :  { %v2290_v9 = vmul.f32 1.442695, %v2289_v14  ;;  %v2296_v24 = vsub.f32 0.0, %v2295_v11  ;;  %v5577_v0 = vrot.slane %v1839_v61, %v5952_v19 }
 0xb36   :  { %v2246_v12 = vpop.f32.mrf.mxu1  ;;  %v3797_v36 = vpop.f32.mrf.mxu0 }
 0xb37   :  { %4166 = vpow2.f32 %v2290_v9  ;;  %v2297_v13 = vmul.f32 1.442695, %v2296_v24  ;;  %v2302_v12 = vadd.f32 %v5573_v55, %v2282_v63  ;;  %v2015_v7 = vadd.f32 %v2014_v44, %v5577_v0 }
 0xb39   :  { %4168 = vpow2.f32 %v2297_v13 }
 0xb44   :  { %v4167_v27 = vpop.eup %4166 }
 0xb45   :  { %v2292_v22 = vadd.f32 1.0, %v4167_v27 }
 0xb46   :  { %v4169_v15 = vpop.eup %4168 }
 0xb47   :  { %4170 = vrcp.f32 %v2292_v22  ;;  %v2299_v11 = vadd.f32 1.0, %v4169_v15 }
 0xb54   :  { %v4171_v36 = vpop.eup %4170 }
 0xb55   :  { %v2303_v31 = vmul.f32 %v4171_v36, %v2302_v12 }
 0xb57   :  { %v2304_v56 = vadd.f32 %v2303_v31, %v2015_v7  ;;  %v1948_v31 = vadd.f32 %v5523_v35, %v5570_v10 }
 0xb59   :  { %4172 = vtanh.f32 %v2304_v56 }
 0xb5a   :  { %4174 = vrcp.f32 %v2299_v11 }
 0xb66   :  { %v4173_v27 = vpop.eup %4172 }
 0xb67   :  { %v2306_v13 = vsub.f32 %v5482_v17, %v4173_v27  ;;  %v4175_v18 = vpop.eup %4174  ;;  %v1946_v17 = vadd.f32 %v5521_v34, %v5561_v33 }
 0xb69   :  { %v2307_v14 = vmul.f32 %v4175_v18, %v2306_v13 }
 0xb6b   :  { %v5582_v32 = vadd.f32 %v4173_v27, %v2307_v14 }
 0xb6d   :  { %v2313_v61 = vpack.c.bf16 %v5582_v32, %v5582_v32 }
 0xb6f   :  { %2347 = vmatmul.mubr.bf16.vlgmr.msra.gmra.mxu1 %v2313_v61  ;;  %3815 = vmatmul.mubr.bf16.vlgmr.msra.gmra.mxu0 %v2313_v61 }
 0xb70   :  { %2423 = vmatpush1.bf16.msra.mxu1 %v5361_v52  ;;  %3819 = vmatpush3.bf16.msra.mxu0 %v5409_v20 }
 0xb71   :  { %2424 = vmatprep.subr.bf16.mxu1 %v5364_v2  ;;  %3820 = vmatprep.subr.bf16.mxu0 %v5932_v54 }
 0xb72   :  { %2454 = vmatprep.mubr.bf16.mxu1 %v5933_v62  ;;  %3834 = vmatprep.mubr.msk.bf16.mxu0 %vm4565_vm2, %v5932_v54 }
 0xb74   :  { %2425 = vmatpush1.bf16.msra.mxu1 %v5374_v37  ;;  %3821 = vmatpush3.bf16.msra.mxu0 %v5413_v26 }
 0xb75   :  { %2426 = vmatprep.subr.bf16.mxu1 %v5377_v39  ;;  %3822 = vmatprep.subr.bf16.mxu0 %v5932_v54 }
 0xb78   :  { %2427 = vmatpush1.bf16.msra.mxu1 %v5380_v40  ;;  %3823 = vmatpush3.bf16.msra.mxu0 %v5418_v28 }
 0xb79   :  { %2428 = vmatprep.subr.bf16.mxu1 %v5384_v50  ;;  %3824 = vmatprep.subr.bf16.mxu0 %v5932_v54 }
 0xb7c   :  { %2429 = vmatpush1.bf16.msra.mxu1 %v5423_v29  ;;  %3825 = vmatpush3.bf16.msra.mxu0 %v5425_v30 }
 0xb7d   :  { %2430 = vmatprep.subr.bf16.mxu1 %v5429_v60  ;;  %3826 = vmatprep.subr.bf16.mxu0 %v5932_v54 }
 0xb80   :  { %2431 = vmatpush1.bf16.msra.mxu1 %v5432_v1  ;;  %3827 = vmatpush3.bf16.msra.mxu0 %v5434_v21 }
 0xb81   :  { %2432 = vmatprep.subr.bf16.mxu1 %v5445_v53  ;;  %3828 = vmatprep.subr.bf16.mxu0 %v5932_v54 }
 0xb84   :  { %2433 = vmatpush1.bf16.msra.mxu1 %v5449_v23  ;;  %3829 = vmatpush3.bf16.msra.mxu0 %v5451_v25 }
 0xb85   :  { %2434 = vmatprep.subr.bf16.mxu1 %v5454_v51  ;;  %3830 = vmatprep.subr.bf16.mxu0 %v5932_v54 }
 0xb88   :  { %2435 = vmatpush1.bf16.msra.mxu1 %v5460_v3  ;;  %3831 = vmatpush3.bf16.msra.mxu0 %v5462_v4 }
 0xb89   :  { %2436 = vmatprep.subr.bf16.mxu1 %v5466_v57  ;;  %3832 = vmatprep.subr.bf16.mxu0 %v5932_v54 }
 0xb8c   :  { %2437 = vmatpush1.bf16.msra.mxu1 %v5472_v59  ;;  %3833 = vmatpush3.bf16.msra.mxu0 %v5474_v6 }
 0xb8d   :  { %2530 = vmatprep.subr.bf16.mxu1 %v5356_v49  ;;  %3838 = vmatprep.subr.bf16.mxu0 %v5932_v54 }
 0xc2f   :  { %v2348_v44 = vpop.f32.mrf.mxu1  ;;  %v2389_v5 = vpop.f32.mrf.mxu0 }
 0xc30   :  { %v2395_v63 = vadd.f32 %v2348_v44, %v1946_v17  ;;  %v2409_v14 = vadd.f32 %v5573_v55, %v2389_v5  ;;  %v2018_v17 = vadd.f32 %v5543_v48, %v5577_v0  ;;  %v1952_v48 = vadd.f32 %v5525_v38, %v5561_v33 }
 0xc31   :  { %v2350_v9 = vpop.f32.mrf.mxu1  ;;  %v3816_v24 = vpop.f32.mrf.mxu0 }
 0xc32   :  { %v2396_v22 = vsub.f32 0.0, %v2395_v63  ;;  %v2402_v56 = vadd.f32 %v2350_v9, %v1948_v31 }
 0xc33   :  { %v2352_v19 = vpop.f32.mrf.mxu1  ;;  %v2392_v15 = vpop.f32.mrf.mxu0 }
 0xc34   :  { %v2397_v12 = vmul.f32 1.442695, %v2396_v22  ;;  %v2403_v11 = vsub.f32 0.0, %v2402_v56 }
 0xc35   :  { %v2353_v36 = vpop.f32.mrf.mxu1  ;;  %v3817_v7 = vpop.f32.mrf.mxu0 }
 0xc36   :  { %4176 = vpow2.f32 %v2397_v12  ;;  %v2404_v27 = vmul.f32 1.442695, %v2403_v11 }
 0xc38   :  { %4178 = vpow2.f32 %v2404_v27 }
 0xc43   :  { %v4177_v13 = vpop.eup %4176 }
 0xc44   :  { %v2399_v34 = vadd.f32 1.0, %v4177_v13 }
 0xc45   :  { %v4179_v18 = vpop.eup %4178 }
 0xc46   :  { %4180 = vrcp.f32 %v2399_v34  ;;  %v2406_v24 = vadd.f32 1.0, %v4179_v18 }
 0xc53   :  { %v4181_v61 = vpop.eup %4180 }
 0xc54   :  { %v2410_v44 = vmul.f32 %v4181_v61, %v2409_v14  ;;  %v1954_v61 = vadd.f32 %v5527_v41, %v5570_v10 }
 0xc56   :  { %v2411_v63 = vadd.f32 %v2410_v44, %v2018_v17 }
 0xc58   :  { %4182 = vtanh.f32 %v2411_v63 }
 0xc59   :  { %4184 = vrcp.f32 %v2406_v24 }
 0xc65   :  { %v4183_v35 = vpop.eup %4182 }
 0xc66   :  { %v2413_v9 = vsub.f32 %v5582_v32, %v4183_v35  ;;  %v4185_v22 = vpop.eup %4184 }
 0xc68   :  { %v2414_v19 = vmul.f32 %v4185_v22, %v2413_v9 }
 0xc6a   :  { %v5629_v15 = vadd.f32 %v4183_v35, %v2414_v19  ;;  %v2023_v19 = vadd.f32 %v5533_v43, %v5577_v0  ;;  %v1956_v43 = vadd.f32 %v5529_v16, %v5561_v33 }
 0xc6c   :  { %v2421_v12 = vpack.c.bf16 %v5629_v15, %v5629_v15 }
 0xc6e   :  { %2455 = vmatmul.mubr.bf16.vlgmr.msra.gmra.mxu1 %v2421_v12  ;;  %3835 = vmatmul.mubr.bf16.vlgmr.msra.gmra.mxu0 %v2421_v12 }
 0xc6f   :  { %2531 = vmatpush1.bf16.msra.mxu1 %v5361_v52  ;;  %3839 = vmatpush3.bf16.msra.mxu0 %v5409_v20 }
 0xc70   :  { %2532 = vmatprep.subr.bf16.mxu1 %v5364_v2  ;;  %3840 = vmatprep.subr.bf16.mxu0 %v5932_v54 }
 0xc71   :  { %2562 = vmatprep.mubr.bf16.mxu1 %v5933_v62  ;;  %3854 = vmatprep.mubr.msk.bf16.mxu0 %vm4565_vm2, %v5932_v54 }
 0xc73   :  { %2533 = vmatpush1.bf16.msra.mxu1 %v5374_v37  ;;  %3841 = vmatpush3.bf16.msra.mxu0 %v5413_v26 }
 0xc74   :  { %2534 = vmatprep.subr.bf16.mxu1 %v5377_v39  ;;  %3842 = vmatprep.subr.bf16.mxu0 %v5932_v54 }
 0xc77   :  { %2535 = vmatpush1.bf16.msra.mxu1 %v5380_v40  ;;  %3843 = vmatpush3.bf16.msra.mxu0 %v5418_v28 }
 0xc78   :  { %2536 = vmatprep.subr.bf16.mxu1 %v5384_v50  ;;  %3844 = vmatprep.subr.bf16.mxu0 %v5932_v54 }
 0xc7b   :  { %2537 = vmatpush1.bf16.msra.mxu1 %v5423_v29  ;;  %3845 = vmatpush3.bf16.msra.mxu0 %v5425_v30 }
 0xc7c   :  { %2538 = vmatprep.subr.bf16.mxu1 %v5429_v60  ;;  %3846 = vmatprep.subr.bf16.mxu0 %v5932_v54 }
 0xc7f   :  { %2539 = vmatpush1.bf16.msra.mxu1 %v5432_v1  ;;  %3847 = vmatpush3.bf16.msra.mxu0 %v5434_v21 }
 0xc80   :  { %2540 = vmatprep.subr.bf16.mxu1 %v5445_v53  ;;  %3848 = vmatprep.subr.bf16.mxu0 %v5932_v54 }
 0xc83   :  { %2541 = vmatpush1.bf16.msra.mxu1 %v5449_v23  ;;  %3849 = vmatpush3.bf16.msra.mxu0 %v5451_v25 }
 0xc84   :  { %2542 = vmatprep.subr.bf16.mxu1 %v5454_v51  ;;  %3850 = vmatprep.subr.bf16.mxu0 %v5932_v54 }
 0xc87   :  { %2543 = vmatpush1.bf16.msra.mxu1 %v5460_v3  ;;  %3851 = vmatpush3.bf16.msra.mxu0 %v5462_v4 }
 0xc88   :  { %2544 = vmatprep.subr.bf16.mxu1 %v5466_v57  ;;  %3852 = vmatprep.subr.bf16.mxu0 %v5932_v54 }
 0xc8b   :  { %2545 = vmatpush1.bf16.msra.mxu1 %v5472_v59  ;;  %3853 = vmatpush3.bf16.msra.mxu0 %v5474_v6 }
 0xc8c   :  { %2638 = vmatprep.subr.bf16.mxu1 %v5356_v49  ;;  %3858 = vmatprep.subr.bf16.mxu0 %v5932_v54 }
 0xd2e   :  { %v2456_v5 = vpop.f32.mrf.mxu1  ;;  %v2497_v36 = vpop.f32.mrf.mxu0 }
 0xd2f   :  { %v2503_v7 = vadd.f32 %v2456_v5, %v1952_v48  ;;  %v2517_v9 = vadd.f32 %v5573_v55, %v2497_v36 }
 0xd30   :  { %v2458_v31 = vpop.f32.mrf.mxu1  ;;  %v3836_v56 = vpop.f32.mrf.mxu0 }
 0xd31   :  { %v2504_v11 = vsub.f32 0.0, %v2503_v7  ;;  %v2510_v17 = vadd.f32 %v2458_v31, %v1954_v61 }
 0xd32   :  { %v2460_v27 = vpop.f32.mrf.mxu1  ;;  %v2500_v13 = vpop.f32.mrf.mxu0 }
 0xd33   :  { %v2505_v34 = vmul.f32 1.442695, %v2504_v11  ;;  %v2511_v44 = vsub.f32 0.0, %v2510_v17 }
 0xd34   :  { %v2461_v18 = vpop.f32.mrf.mxu1  ;;  %v3837_v14 = vpop.f32.mrf.mxu0 }
 0xd35   :  { %4186 = vpow2.f32 %v2505_v34  ;;  %v2512_v63 = vmul.f32 1.442695, %v2511_v44 }
 0xd37   :  { %4188 = vpow2.f32 %v2512_v63 }
 0xd42   :  { %v4187_v24 = vpop.eup %4186 }
 0xd43   :  { %v2507_v38 = vadd.f32 1.0, %v4187_v24 }
 0xd44   :  { %v4189_v35 = vpop.eup %4188 }
 0xd45   :  { %4190 = vrcp.f32 %v2507_v38  ;;  %v2514_v5 = vadd.f32 1.0, %v4189_v35  ;;  %v1958_v35 = vadd.f32 %v5531_v42, %v5570_v10 }
 0xd52   :  { %v4191_v22 = vpop.eup %4190 }
 0xd53   :  { %v2518_v12 = vmul.f32 %v4191_v22, %v2517_v9 }
 0xd55   :  { %v2519_v48 = vadd.f32 %v2518_v12, %v2023_v19 }
 0xd57   :  { %4192 = vtanh.f32 %v2519_v48 }
 0xd58   :  { %4194 = vrcp.f32 %v2514_v5 }
 0xd64   :  { %v4193_v41 = vpop.eup %4192 }
 0xd65   :  { %v2521_v7 = vsub.f32 %v5629_v15, %v4193_v41  ;;  %v4195_v31 = vpop.eup %4194 }
 0xd67   :  { %v2522_v56 = vmul.f32 %v4195_v31, %v2521_v7  ;;  %v2026_v7 = vadd.f32 %v5539_v46, %v5577_v0  ;;  %v1962_v46 = vadd.f32 %v5535_v8, %v5561_v33 }
 0xd69   :  { %v5676_v11 = vadd.f32 %v4193_v41, %v2522_v56 }
 0xd6b   :  { %v2529_v27 = vpack.c.bf16 %v5676_v11, %v5676_v11 }
 0xd6d   :  { %2563 = vmatmul.mubr.bf16.vlgmr.msra.gmra.mxu1 %v2529_v27  ;;  %3855 = vmatmul.mubr.bf16.vlgmr.msra.gmra.mxu0 %v2529_v27 }
 0xd6e   :  { %2639 = vmatpush1.bf16.msra.mxu1 %v5361_v52  ;;  %3859 = vmatpush3.bf16.msra.mxu0 %v5409_v20 }
 0xd6f   :  { %2640 = vmatprep.subr.bf16.mxu1 %v5364_v2  ;;  %3860 = vmatprep.subr.bf16.mxu0 %v5932_v54 }
 0xd70   :  { %2670 = vmatprep.mubr.bf16.mxu1 %v5933_v62  ;;  %3874 = vmatprep.mubr.msk.bf16.mxu0 %vm4565_vm2, %v5932_v54 }
 0xd72   :  { %2641 = vmatpush1.bf16.msra.mxu1 %v5374_v37  ;;  %3861 = vmatpush3.bf16.msra.mxu0 %v5413_v26 }
 0xd73   :  { %2642 = vmatprep.subr.bf16.mxu1 %v5377_v39  ;;  %3862 = vmatprep.subr.bf16.mxu0 %v5932_v54 }
 0xd76   :  { %2643 = vmatpush1.bf16.msra.mxu1 %v5380_v40  ;;  %3863 = vmatpush3.bf16.msra.mxu0 %v5418_v28 }
 0xd77   :  { %2644 = vmatprep.subr.bf16.mxu1 %v5384_v50  ;;  %3864 = vmatprep.subr.bf16.mxu0 %v5932_v54 }
 0xd7a   :  { %2645 = vmatpush1.bf16.msra.mxu1 %v5423_v29  ;;  %3865 = vmatpush3.bf16.msra.mxu0 %v5425_v30 }
 0xd7b   :  { %2646 = vmatprep.subr.bf16.mxu1 %v5429_v60  ;;  %3866 = vmatprep.subr.bf16.mxu0 %v5932_v54 }
 0xd7e   :  { %2647 = vmatpush1.bf16.msra.mxu1 %v5432_v1  ;;  %3867 = vmatpush3.bf16.msra.mxu0 %v5434_v21 }
 0xd7f   :  { %2648 = vmatprep.subr.bf16.mxu1 %v5445_v53  ;;  %3868 = vmatprep.subr.bf16.mxu0 %v5932_v54 }
 0xd82   :  { %2649 = vmatpush1.bf16.msra.mxu1 %v5449_v23  ;;  %3869 = vmatpush3.bf16.msra.mxu0 %v5451_v25 }
 0xd83   :  { %2650 = vmatprep.subr.bf16.mxu1 %v5454_v51  ;;  %3870 = vmatprep.subr.bf16.mxu0 %v5932_v54 }
 0xd86   :  { %2651 = vmatpush1.bf16.msra.mxu1 %v5460_v3  ;;  %3871 = vmatpush3.bf16.msra.mxu0 %v5462_v4 }
 0xd87   :  { %2652 = vmatprep.subr.bf16.mxu1 %v5466_v57  ;;  %3872 = vmatprep.subr.bf16.mxu0 %v5932_v54 }
 0xd8a   :  { %2653 = vmatpush1.bf16.msra.mxu1 %v5472_v59  ;;  %3873 = vmatpush3.bf16.msra.mxu0 %v5474_v6 }
 0xd8b   :  { %2746 = vmatprep.subr.bf16.mxu1 %v5356_v49  ;;  %3878 = vmatprep.subr.bf16.mxu0 %v5932_v54 }
 0xe2d   :  { %v2564_v36 = vpop.f32.mrf.mxu1  ;;  %v2605_v13 = vpop.f32.mrf.mxu0 }
 0xe2e   :  { %v2611_v34 = vadd.f32 %v2564_v36, %v1956_v43  ;;  %v2625_v5 = vadd.f32 %v5573_v55, %v2605_v13 }
 0xe2f   :  { %v2566_v18 = vpop.f32.mrf.mxu1  ;;  %v3856_v14 = vpop.f32.mrf.mxu0 }
 0xe30   :  { %v2612_v61 = vsub.f32 0.0, %v2611_v34  ;;  %v2618_v9 = vadd.f32 %v2566_v18, %v1958_v35 }
 0xe31   :  { %v2568_v17 = vpop.f32.mrf.mxu1  ;;  %v2608_v44 = vpop.f32.mrf.mxu0 }
 0xe32   :  { %v2613_v63 = vmul.f32 1.442695, %v2612_v61  ;;  %v2619_v22 = vsub.f32 0.0, %v2618_v9 }
 0xe33   :  { %v2569_v24 = vpop.f32.mrf.mxu1  ;;  %v3857_v38 = vpop.f32.mrf.mxu0 }
 0xe34   :  { %4196 = vpow2.f32 %v2613_v63  ;;  %v2620_v19 = vmul.f32 1.442695, %v2619_v22 }
 0xe36   :  { %4198 = vpow2.f32 %v2620_v19 }
 0xe41   :  { %v4197_v12 = vpop.eup %4196 }
 0xe42   :  { %v2615_v16 = vadd.f32 1.0, %v4197_v12 }
 0xe43   :  { %v4199_v48 = vpop.eup %4198 }
 0xe44   :  { %4200 = vrcp.f32 %v2615_v16  ;;  %v2622_v27 = vadd.f32 1.0, %v4199_v48 }
 0xe51   :  { %v4201_v41 = vpop.eup %4200 }
 0xe52   :  { %v2626_v31 = vmul.f32 %v4201_v41, %v2625_v5 }
 0xe54   :  { %v2627_v56 = vadd.f32 %v2626_v31, %v2026_v7 }
 0xe56   :  { %4202 = vtanh.f32 %v2627_v56  ;;  %v2031_v56 = vadd.f32 %v5551_v58, %v5577_v0 }
 0xe57   :  { %4204 = vrcp.f32 %v2622_v27 }
 0xe63   :  { %v4203_v42 = vpop.eup %4202 }
 0xe64   :  { %v2629_v43 = vsub.f32 %v5676_v11, %v4203_v42  ;;  %v4205_v36 = vpop.eup %4204 }
 0xe66   :  { %v2630_v34 = vmul.f32 %v4205_v36, %v2629_v43 }
 0xe68   :  { %v5723_v18 = vadd.f32 %v4203_v42, %v2630_v34 }
 0xe6a   :  { %v2637_v14 = vpack.c.bf16 %v5723_v18, %v5723_v18 }
 0xe6c   :  { %2671 = vmatmul.mubr.bf16.vlgmr.msra.gmra.mxu1 %v2637_v14  ;;  %3875 = vmatmul.mubr.bf16.vlgmr.msra.gmra.mxu0 %v2637_v14 }
 0xe6d   :  { %2747 = vmatpush1.bf16.msra.mxu1 %v5361_v52  ;;  %3879 = vmatpush3.bf16.msra.mxu0 %v5409_v20 }
 0xe6e   :  { %2748 = vmatprep.subr.bf16.mxu1 %v5364_v2  ;;  %3880 = vmatprep.subr.bf16.mxu0 %v5932_v54 }
 0xe6f   :  { %2778 = vmatprep.mubr.bf16.mxu1 %v5933_v62  ;;  %3894 = vmatprep.mubr.msk.bf16.mxu0 %vm4565_vm2, %v5932_v54 }
 0xe71   :  { %2749 = vmatpush1.bf16.msra.mxu1 %v5374_v37  ;;  %3881 = vmatpush3.bf16.msra.mxu0 %v5413_v26 }
 0xe72   :  { %2750 = vmatprep.subr.bf16.mxu1 %v5377_v39  ;;  %3882 = vmatprep.subr.bf16.mxu0 %v5932_v54 }
 0xe75   :  { %2751 = vmatpush1.bf16.msra.mxu1 %v5380_v40  ;;  %3883 = vmatpush3.bf16.msra.mxu0 %v5418_v28 }
 0xe76   :  { %2752 = vmatprep.subr.bf16.mxu1 %v5384_v50  ;;  %3884 = vmatprep.subr.bf16.mxu0 %v5932_v54 }
 0xe79   :  { %2753 = vmatpush1.bf16.msra.mxu1 %v5423_v29  ;;  %3885 = vmatpush3.bf16.msra.mxu0 %v5425_v30 }
 0xe7a   :  { %2754 = vmatprep.subr.bf16.mxu1 %v5429_v60  ;;  %3886 = vmatprep.subr.bf16.mxu0 %v5932_v54 }
 0xe7d   :  { %2755 = vmatpush1.bf16.msra.mxu1 %v5432_v1  ;;  %3887 = vmatpush3.bf16.msra.mxu0 %v5434_v21 }
 0xe7e   :  { %2756 = vmatprep.subr.bf16.mxu1 %v5445_v53  ;;  %3888 = vmatprep.subr.bf16.mxu0 %v5932_v54 }
 0xe81   :  { %2757 = vmatpush1.bf16.msra.mxu1 %v5449_v23  ;;  %3889 = vmatpush3.bf16.msra.mxu0 %v5451_v25 }
 0xe82   :  { %2758 = vmatprep.subr.bf16.mxu1 %v5454_v51  ;;  %3890 = vmatprep.subr.bf16.mxu0 %v5932_v54 }
 0xe85   :  { %2759 = vmatpush1.bf16.msra.mxu1 %v5460_v3  ;;  %3891 = vmatpush3.bf16.msra.mxu0 %v5462_v4 }
 0xe86   :  { %2760 = vmatprep.subr.bf16.mxu1 %v5466_v57  ;;  %3892 = vmatprep.subr.bf16.mxu0 %v5932_v54 }
 0xe89   :  { %2761 = vmatpush1.bf16.msra.mxu1 %v5472_v59  ;;  %3893 = vmatpush3.bf16.msra.mxu0 %v5474_v6 }
 0xe8a   :  { %2854 = vmatprep.subr.bf16.mxu1 %v5356_v49  ;;  %3898 = vmatprep.subr.bf16.mxu0 %v5932_v54  ;;  %v1964_v49 = vadd.f32 %v5537_v45, %v5570_v10 }
 0xf2c   :  { %v2672_v13 = vpop.f32.mrf.mxu1  ;;  %v2713_v61 = vpop.f32.mrf.mxu0 }
 0xf2d   :  { %v2719_v17 = vadd.f32 %v2672_v13, %v1962_v46  ;;  %v2733_v7 = vadd.f32 %v5573_v55, %v2713_v61  ;;  %v5954_v61 = vld [vmem:[#allocation30_spill] sm:$0xff] }
 0xf2e   :  { %v2674_v44 = vpop.f32.mrf.mxu1  ;;  %v3876_v63 = vpop.f32.mrf.mxu0 }
 0xf2f   :  { %v2720_v24 = vsub.f32 0.0, %v2719_v17  ;;  %v2726_v12 = vadd.f32 %v2674_v44, %v1964_v49  ;;  %v2034_v17 = vadd.f32 %v5954_v61, %v5577_v0 }
 0xf30   :  { %v2676_v38 = vpop.f32.mrf.mxu1  ;;  %v2716_v35 = vpop.f32.mrf.mxu0 }
 0xf31   :  { %v2721_v9 = vmul.f32 1.442695, %v2720_v24  ;;  %v2727_v16 = vsub.f32 0.0, %v2726_v12  ;;  %v4271_v12 = vld [vmem:[#allocation9 + $0xa8] ss:$12 sps:$4 sm:$0xff]  }
 0xf32   :  { %v2677_v22 = vpop.f32.mrf.mxu1  ;;  %v3877_v19 = vpop.f32.mrf.mxu0 }
 0xf33   :  { %4206 = vpow2.f32 %v2721_v9  ;;  %v2728_v48 = vmul.f32 1.442695, %v2727_v16  ;;  %v4272_v16 = vld [vmem:[#allocation9 + $0xb0] ss:$12 sps:$4 sm:$0xff]  }
 0xf35   :  { %4208 = vpow2.f32 %v2728_v48  ;;  %v4273_v48 = vld [vmem:[#allocation9 + $0x94] ss:$12 sps:$4 sm:$0xff]  }
 0xf40   :  { %v4207_v5 = vpop.eup %4206 }
 0xf41   :  { %v2723_v8 = vadd.f32 1.0, %v4207_v5  ;;  %v4274_v5 = vld [vmem:[#allocation9 + $0x90] ss:$12 sps:$4 sm:$0xff]  }
 0xf42   :  { %v4209_v41 = vpop.eup %4208 }
 0xf43   :  { %4210 = vrcp.f32 %v2723_v8  ;;  %v2730_v43 = vadd.f32 1.0, %v4209_v41  ;;  %v4275_v8 = vld [vmem:[#allocation9 + $0x98] ss:$12 sps:$4 sm:$0xff]   ;;  %v4276_v41 = vld [vmem:[#allocation9 + $0x7c] ss:$12 sps:$4 sm:$0xff]  }
 0xf50   :  { %v4211_v31 = vpop.eup %4210 }
 0xf51   :  { %v2734_v27 = vmul.f32 %v4211_v31, %v2733_v7  ;;  %v4277_v7 = vld [vmem:[#allocation9 + $0x78] ss:$12 sps:$4 sm:$0xff]   ;;  %v4278_v31 = vld [vmem:[#allocation9 + $0x80] ss:$12 sps:$4 sm:$0xff]  }
 0xf53   :  { %v2735_v42 = vadd.f32 %v2734_v27, %v2031_v56  ;;  %v4279_v56 = vld [vmem:[#allocation9 + $0x64] ss:$12 sps:$4 sm:$0xff]   ;;  %v4281_v27 = vld [vmem:[#allocation9 + $0x68] ss:$12 sps:$4 sm:$0xff]  }
 0xf55   :  { %4212 = vtanh.f32 %v2735_v42  ;;  %v4282_v42 = vld [vmem:[#allocation9 + $0x4c] ss:$12 sps:$4 sm:$0xff]  }
 0xf56   :  { %4214 = vrcp.f32 %v2730_v43  ;;  %v4283_v43 = vld [vmem:[#allocation9 + $0x48] ss:$12 sps:$4 sm:$0xff]  }
 0xf62   :  { %v4213_v45 = vpop.eup %4212 }
 0xf63   :  { %v2737_v36 = vsub.f32 %v5723_v18, %v4213_v45  ;;  %v4215_v34 = vpop.eup %4214 }
 0xf65   :  { %v2738_v14 = vmul.f32 %v4215_v34, %v2737_v36  ;;  %v4285_v36 = vld [vmem:[#allocation9 + $0x34] ss:$12 sps:$4 sm:$0xff]   ;;  %v4286_v34 = vld [vmem:[#allocation9 + $0x30] ss:$12 sps:$4 sm:$0xff]  }
 0xf67   :  { %v5770_v46 = vadd.f32 %v4213_v45, %v2738_v14  ;;  %v4284_v45 = vld [vmem:[#allocation9 + $0x50] ss:$12 sps:$4 sm:$0xff]   ;;  %v4287_v14 = vld [vmem:[#allocation9 + $0x38] ss:$12 sps:$4 sm:$0xff]  }
 0xf69   :  { %v2745_v13 = vpack.c.bf16 %v5770_v46, %v5770_v46 }
 0xf6b   :  { %2779 = vmatmul.mubr.bf16.vlgmr.msra.gmra.mxu1 %v2745_v13  ;;  %3895 = vmatmul.mubr.bf16.vlgmr.msra.gmra.mxu0 %v2745_v13  ;;  %v4288_v13 = vld [vmem:[#allocation9 + $0x1c] ss:$12 sps:$4 sm:$0xff]  }
 0xf6c   :  { %2855 = vmatpush1.bf16.msra.mxu1 %v5361_v52  ;;  %3899 = vmatpush3.bf16.msra.mxu0 %v5409_v20  ;;  %v4270_v52 = vld [vmem:[#allocation9 + $0xac] ss:$12 sps:$4 sm:$0xff]  }
 0xf6d   :  { %2856 = vmatprep.subr.bf16.mxu1 %v5364_v2  ;;  %3900 = vmatprep.subr.bf16.mxu0 %v5932_v54  ;;  %v1966_v2 = vadd.f32 %v5541_v47, %v5561_v33 }
 0xf6e   :  { %2886 = vmatprep.mubr.bf16.mxu1 %v5933_v62  ;;  %3914 = vmatprep.mubr.msk.bf16.mxu0 %vm4565_vm2, %v5932_v54 }
 0xf70   :  { %2857 = vmatpush1.bf16.msra.mxu1 %v5374_v37  ;;  %3901 = vmatpush3.bf16.msra.mxu0 %v5413_v26 }
 0xf71   :  { %2858 = vmatprep.subr.bf16.mxu1 %v5377_v39  ;;  %3902 = vmatprep.subr.bf16.mxu0 %v5932_v54 }
 0xf74   :  { %2859 = vmatpush1.bf16.msra.mxu1 %v5380_v40  ;;  %3903 = vmatpush3.bf16.msra.mxu0 %v5418_v28 }
 0xf75   :  { %2860 = vmatprep.subr.bf16.mxu1 %v5384_v50  ;;  %3904 = vmatprep.subr.bf16.mxu0 %v5932_v54 }
 0xf78   :  { %2861 = vmatpush1.bf16.msra.mxu1 %v5423_v29  ;;  %3905 = vmatpush3.bf16.msra.mxu0 %v5425_v30 }
 0xf79   :  { %2862 = vmatprep.subr.bf16.mxu1 %v5429_v60  ;;  %3906 = vmatprep.subr.bf16.mxu0 %v5932_v54 }
 0xf7c   :  { %2863 = vmatpush1.bf16.msra.mxu1 %v5432_v1  ;;  %3907 = vmatpush3.bf16.msra.mxu0 %v5434_v21  ;;  %v5953_v21 = vld [vmem:[#allocation34_spill] sm:$0xff] }
 0xf7d   :  { %2864 = vmatprep.subr.bf16.mxu1 %v5445_v53  ;;  %3908 = vmatprep.subr.bf16.mxu0 %v5932_v54  ;;  %v1968_v53 = vadd.f32 %v5953_v21, %v5570_v10 }
 0xf80   :  { %2865 = vmatpush1.bf16.msra.mxu1 %v5449_v23  ;;  %3909 = vmatpush3.bf16.msra.mxu0 %v5451_v25 }
 0xf81   :  { %2866 = vmatprep.subr.bf16.mxu1 %v5454_v51  ;;  %3910 = vmatprep.subr.bf16.mxu0 %v5932_v54 }
 0xf84   :  { %2867 = vmatpush1.bf16.msra.mxu1 %v5460_v3  ;;  %3911 = vmatpush3.bf16.msra.mxu0 %v5462_v4 }
 0xf85   :  { %2868 = vmatprep.subr.bf16.mxu1 %v5466_v57  ;;  %3912 = vmatprep.subr.bf16.mxu0 %v5932_v54 }
 0xf88   :  { %2869 = vmatpush1.bf16.msra.mxu1 %v5472_v59  ;;  %3913 = vmatpush3.bf16.msra.mxu0 %v5474_v6 }
 0xf89   :  { %2962 = vmatprep.subr.bf16.mxu1 %v4270_v52  ;;  %3918 = vmatprep.subr.bf16.mxu0 %v5932_v54  ;;  %v4289_v52 = vld [vmem:[#allocation9 + $0x18] ss:$12 sps:$4 sm:$0xff]  }
0x102b   :  { %v2780_v37 = vpop.f32.mrf.mxu1  ;;  %v2821_v39 = vpop.f32.mrf.mxu0 }
0x102c   :  { %v2827_v40 = vadd.f32 %v2780_v37, %v1966_v2  ;;  %v2841_v47 = vadd.f32 %v5573_v55, %v2821_v39  ;;  %v4290_v2 = vld [vmem:[#allocation9 + $0x20] ss:$12 sps:$4 sm:$0xff]   ;;  %v4291_v37 = vld [vmem:[#allocation9 + $0x4] ss:$12 sps:$4 sm:$0xff]  }
0x102d   :  { %v2782_v50 = vpop.f32.mrf.mxu1  ;;  %v3896_v20 = vpop.f32.mrf.mxu0  ;;  %v4074_v39 = vld [vmem:[#allocation20 + $0x38] sm:$0xff]  }
0x102e   :  { %v2828_v26 = vsub.f32 0.0, %v2827_v40  ;;  %v2834_v23 = vadd.f32 %v2782_v50, %v1968_v53  ;;  %v5955_v40 = vld [vmem:[#allocation32_spill] sm:$0xff] }
0x102f   :  { %v2784_v28 = vpop.f32.mrf.mxu1  ;;  %v2824_v29 = vpop.f32.mrf.mxu0  ;;  %v1972_v50 = vadd.f32 %v5955_v40, %v5561_v33 }
0x1030   :  { %v2829_v30 = vmul.f32 1.442695, %v2828_v26  ;;  %v2835_v25 = vsub.f32 0.0, %v2834_v23 }
0x1031   :  { %v2785_v60 = vpop.f32.mrf.mxu1  ;;  %v3897_v1 = vpop.f32.mrf.mxu0 }
0x1032   :  { %4216 = vpow2.f32 %v2829_v30  ;;  %v2836_v51 = vmul.f32 1.442695, %v2835_v25 }
0x1034   :  { %4218 = vpow2.f32 %v2836_v51 }
0x103f   :  { %v4217_v3 = vpop.eup %4216 }
0x1040   :  { %v2831_v4 = vadd.f32 1.0, %v4217_v3 }
0x1041   :  { %v4219_v57 = vpop.eup %4218 }
0x1042   :  { %4220 = vrcp.f32 %v2831_v4  ;;  %v2838_v24 = vadd.f32 1.0, %v4219_v57 }
0x104f   :  { %v4221_v58 = vpop.eup %4220 }
0x1050   :  { %v2842_v44 = vmul.f32 %v4221_v58, %v2841_v47 }
0x1052   :  { %v2843_v63 = vadd.f32 %v2842_v44, %v2034_v17  ;;  %v5957_v17 = vld [vmem:[#allocation35_spill] sm:$0xff] }
0x1053   :  { %v2039_v44 = vadd.f32 %v5957_v17, %v5577_v0 }
0x1054   :  { %4222 = vtanh.f32 %v2843_v63 }
0x1055   :  { %4224 = vrcp.f32 %v2838_v24 }
0x1061   :  { %v4223_v38 = vpop.eup %4222 }
0x1062   :  { %v2845_v35 = vsub.f32 %v5770_v46, %v4223_v38  ;;  %v4225_v9 = vpop.eup %4224 }
0x1064   :  { %v2846_v22 = vmul.f32 %v4225_v9, %v2845_v35 }
0x1066   :  { %v5816_v19 = vadd.f32 %v4223_v38, %v2846_v22 }
0x1068   :  { %v2853_v49 = vpack.c.bf16 %v5816_v19, %v5816_v19 }
0x106a   :  { %2887 = vmatmul.mubr.bf16.vlgmr.msra.gmra.mxu1 %v2853_v49  ;;  %3915 = vmatmul.mubr.bf16.vlgmr.msra.gmra.mxu0 %v2853_v49 }
0x106b   :  { %2963 = vmatpush1.bf16.msra.mxu1 %v4271_v12  ;;  %3919 = vmatpush3.bf16.msra.mxu0 %v4272_v16 }
0x106c   :  { %2964 = vmatprep.subr.bf16.mxu1 %v4273_v48  ;;  %3920 = vmatprep.subr.bf16.mxu0 %v5932_v54  ;;  %v4075_v48 = vld [vmem:[#allocation20 + $0x30] sm:$0xff]  }
0x106d   :  { %2994 = vmatprep.mubr.bf16.mxu1 %v5933_v62  ;;  %3934 = vmatprep.mubr.msk.bf16.mxu0 %vm4565_vm2, %v5932_v54  ;;  %v4280_v62 = vld [vmem:[#allocation9 + $0x60] ss:$12 sps:$4 sm:$0xff]  }
0x106f   :  { %2965 = vmatpush1.bf16.msra.mxu1 %v4274_v5  ;;  %3921 = vmatpush3.bf16.msra.mxu0 %v4275_v8  ;;  %v3090_v5 = vpack.c.bf16 %v5629_v15, %v5582_v32  ;;  %v4076_v8 = vld [vmem:[#allocation20 + $0x28] sm:$0xff]   ;;  %v4081_v32 = vld [vmem:[#allocation20] sm:$0xff]   ;;  %v3091_v15 = vpack.c.bf16 %v5723_v18, %v5676_v11 }
0x1070   :  { %2966 = vmatprep.subr.bf16.mxu1 %v4276_v41  ;;  %3922 = vmatprep.subr.bf16.mxu0 %v5932_v54  ;;  %v4077_v41 = vld [vmem:[#allocation20 + $0x20] sm:$0xff]  }
0x1071   :  { %v5959_v11 = vld [vmem:[#allocation37_spill] sm:$0xff] }
0x1072   :  { %v1978_v18 = vadd.f32 %v5959_v11, %v5570_v10 }
0x1073   :  { %2967 = vmatpush1.bf16.msra.mxu1 %v4277_v7  ;;  %3923 = vmatpush3.bf16.msra.mxu0 %v4278_v31  ;;  %v4078_v7 = vld [vmem:[#allocation20 + $0x18] sm:$0xff]   ;;  %v4079_v31 = vld [vmem:[#allocation20 + $0x10] sm:$0xff]  }
0x1074   :  { %2968 = vmatprep.subr.bf16.mxu1 %v4279_v56  ;;  %3924 = vmatprep.subr.bf16.mxu0 %v5932_v54  ;;  %v4080_v56 = vld [vmem:[#allocation20 + $0x8] sm:$0xff]  }
0x1077   :  { %2969 = vmatpush1.bf16.msra.mxu1 %v4280_v62  ;;  %3925 = vmatpush3.bf16.msra.mxu0 %v4281_v27  ;;  %v3092_v62 = vpack.c.bf16 %v5816_v19, %v5770_v46  ;;  %v5958_v27 = vld [vmem:[#allocation31_spill] sm:$0xff] }
0x1078   :  { %2970 = vmatprep.subr.bf16.mxu1 %v4282_v42  ;;  %3926 = vmatprep.subr.bf16.mxu0 %v5932_v54  ;;  %v1976_v42 = vadd.f32 %v5958_v27, %v5561_v33 }
0x107b   :  { %2971 = vmatpush1.bf16.msra.mxu1 %v4283_v43  ;;  %3927 = vmatpush3.bf16.msra.mxu0 %v4284_v45 }
0x107c   :  { %2972 = vmatprep.subr.bf16.mxu1 %v4285_v36  ;;  %3928 = vmatprep.subr.bf16.mxu0 %v5932_v54 }
0x107f   :  { %2973 = vmatpush1.bf16.msra.mxu1 %v4286_v34  ;;  %3929 = vmatpush3.bf16.msra.mxu0 %v4287_v14 }
0x1080   :  { %2974 = vmatprep.subr.bf16.mxu1 %v4288_v13  ;;  %3930 = vmatprep.subr.bf16.mxu0 %v5932_v54 }
0x1083   :  { %2975 = vmatpush1.bf16.msra.mxu1 %v4289_v52  ;;  %3931 = vmatpush3.bf16.msra.mxu0 %v4290_v2 }
0x1084   :  { %2976 = vmatprep.subr.bf16.mxu1 %v4291_v37  ;;  %3932 = vmatprep.subr.bf16.mxu0 %v5932_v54 }
0x1087   :  { %2977 = vmatpush1.bf16.msra.mxu1 %v5472_v59  ;;  %3933 = vmatpush3.bf16.msra.mxu0 %v5474_v6  ;;  %v5956_v59 = vld [vmem:[#allocation36_spill] sm:$0xff] }
0x1088   :  { %3938 = vmatprep.subr.bf16.mxu1 %v4074_v39  ;;  %v1974_v6 = vadd.f32 %v5956_v59, %v5570_v10 }
0x112a   :  { %v2888_v20 = vpop.f32.mrf.mxu1  ;;  %v2929_v26 = vpop.f32.mrf.mxu0 }
0x112b   :  { %v2935_v28 = vadd.f32 %v2888_v20, %v1972_v50  ;;  %v2949_v58 = vadd.f32 %v5573_v55, %v2929_v26  ;;  %v3336_v26 = vld [vmem:[#allocation21] ss:$0 sm:$0xff] }
0x112c   :  { %v2890_v29 = vpop.f32.mrf.mxu1  ;;  %v3916_v30 = vpop.f32.mrf.mxu0 }
0x112d   :  { %v2936_v60 = vsub.f32 0.0, %v2935_v28  ;;  %v2942_v25 = vadd.f32 %v2890_v29, %v1974_v6 }
0x112e   :  { %v2892_v1 = vpop.f32.mrf.mxu1  ;;  %v2932_v21 = vpop.f32.mrf.mxu0 }
0x112f   :  { %v2937_v53 = vmul.f32 1.442695, %v2936_v60  ;;  %v2943_v51 = vsub.f32 0.0, %v2942_v25 }
0x1130   :  { %v2893_v23 = vpop.f32.mrf.mxu1  ;;  %v3917_v54 = vpop.f32.mrf.mxu0 }
0x1131   :  { %4226 = vpow2.f32 %v2937_v53  ;;  %v2944_v3 = vmul.f32 1.442695, %v2943_v51  ;;  %v5960_v23 = vld [vmem:[#allocation33_spill] sm:$0xff] }
0x1132   :  { %v2042_v54 = vadd.f32 %v5960_v23, %v5577_v0 }
0x1133   :  { %4228 = vpow2.f32 %v2944_v3 }
0x113e   :  { %v4227_v4 = vpop.eup %4226 }
0x113f   :  { %v2939_v57 = vadd.f32 1.0, %v4227_v4 }
0x1140   :  { %v4229_v47 = vpop.eup %4228 }
0x1141   :  { %4230 = vrcp.f32 %v2939_v57  ;;  %v2946_v38 = vadd.f32 1.0, %v4229_v47 }
0x114e   :  { %v4231_v61 = vpop.eup %4230 }
0x114f   :  { %v2950_v63 = vmul.f32 %v4231_v61, %v2949_v58 }
0x1151   :  { %v2951_v24 = vadd.f32 %v2950_v63, %v2039_v44 }
0x1153   :  { %4232 = vtanh.f32 %v2951_v24 }
0x1154   :  { %4234 = vrcp.f32 %v2946_v38 }
0x1160   :  { %v4233_v35 = vpop.eup %4232 }
0x1161   :  { %v2953_v9 = vsub.f32 %v5816_v19, %v4233_v35  ;;  %v4235_v22 = vpop.eup %4234 }
0x1163   :  { %v2954_v49 = vmul.f32 %v4235_v22, %v2953_v9 }
0x1165   :  { %v5840_v12 = vadd.f32 %v4233_v35, %v2954_v49 }
0x1167   :  { %v2961_v16 = vpack.c.bf16 %v5840_v12, %v5840_v12 }
0x1169   :  { %2995 = vmatmul.mubr.bf16.vlgmr.msra.gmra.mxu1 %v2961_v16  ;;  %3935 = vmatmul.mubr.bf16.vlgmr.msra.gmra.mxu0 %v2961_v16 }
0x116a   :  { %3939 = vmatpush3.bf16.msra.mxu1 %v4074_v39  ;;  %3954 = vmatprep.mubr.bf16.mxu1 %v3090_v5 }
0x116b   :  { %3940 = vmatprep.subr.bf16.mxu1 %v4075_v48 }
0x116e   :  { %3941 = vmatpush3.bf16.msra.mxu1 %v4075_v48 }
0x116f   :  { %3942 = vmatprep.subr.bf16.mxu1 %v4076_v8 }
0x1172   :  { %3943 = vmatpush3.bf16.msra.mxu1 %v4076_v8 }
0x1173   :  { %3944 = vmatprep.subr.bf16.mxu1 %v4077_v41 }
0x1176   :  { %3945 = vmatpush3.bf16.msra.mxu1 %v4077_v41 }
0x1177   :  { %3946 = vmatprep.subr.bf16.mxu1 %v4078_v7 }
0x117a   :  { %3947 = vmatpush3.bf16.msra.mxu1 %v4078_v7 }
0x117b   :  { %3948 = vmatprep.subr.bf16.mxu1 %v4079_v31 }
0x117e   :  { %3949 = vmatpush3.bf16.msra.mxu1 %v4079_v31 }
0x117f   :  { %3950 = vmatprep.subr.bf16.mxu1 %v4080_v56 }
0x1182   :  { %3951 = vmatpush3.bf16.msra.mxu1 %v4080_v56 }
0x1183   :  { %3952 = vmatprep.subr.bf16.mxu1 %v4081_v32 }
0x1186   :  { %3953 = vmatpush3.bf16.msra.mxu1 %v4081_v32 }
0x1189   :  { %3955 = vmatmul.mubr.bf16.vlgmr.msra.gmra.mxu1 %v3091_v15 }
0x118a   :  { %3958 = vmatprep.mubr.bf16.mxu1 %v3092_v62 }
0x1229   :  { %v2996_v43 = vpop.f32.mrf.mxu1  ;;  %v3037_v45 = vpop.f32.mrf.mxu0 }
0x122a   :  { %v3043_v36 = vadd.f32 %v2996_v43, %v1976_v42  ;;  %v3057_v1 = vadd.f32 %v5573_v55, %v3037_v45 }
0x122b   :  { %v2998_v34 = vpop.f32.mrf.mxu1  ;;  %v3936_v14 = vpop.f32.mrf.mxu0 }
0x122c   :  { %v3044_v13 = vsub.f32 0.0, %v3043_v36  ;;  %v3050_v46 = vadd.f32 %v2998_v34, %v1978_v18 }
0x122d   :  { %v3000_v52 = vpop.f32.mrf.mxu1  ;;  %v3040_v2 = vpop.f32.mrf.mxu0 }
0x122e   :  { %v3045_v37 = vmul.f32 1.442695, %v3044_v13  ;;  %v3051_v19 = vsub.f32 0.0, %v3050_v46 }
0x122f   :  { %v3001_v39 = vpop.f32.mrf.mxu1  ;;  %v3937_v40 = vpop.f32.mrf.mxu0 }
0x1230   :  { %4236 = vpow2.f32 %v3045_v37  ;;  %v3052_v50 = vmul.f32 1.442695, %v3051_v19 }
0x1232   :  { %4238 = vpow2.f32 %v3052_v50 }
0x123d   :  { %v4237_v20 = vpop.eup %4236 }
0x123e   :  { %v3047_v33 = vadd.f32 1.0, %v4237_v20 }
0x123f   :  { %v4239_v60 = vpop.eup %4238 }
0x1240   :  { %4240 = vrcp.f32 %v3047_v33  ;;  %v3054_v3 = vadd.f32 1.0, %v4239_v60 }
0x1249   :  { %v3956_v28 = vpop.f32.mrf.mxu1 }
0x124a   :  { %v3192_v29 = vadd.f32 %v3956_v28, %v3336_v26 }
0x124b   :  { %v3183_v30 = vpop.f32.mrf.mxu1 }
0x124c   :  { %3216 = vst [vmem:[%s5901_s18 + $0x10] sm:$0xff] %v3192_v29  ;;  %v3184_v21 = vadd.f32 %v3336_v26, %v3183_v30 }
0x124d   :  { %v4241_v10 = vpop.eup %4240  ;;  %v3957_v53 = vpop.f32.mrf.mxu1 }
0x124e   :  { %v3058_v59 = vmul.f32 %v4241_v10, %v3057_v1  ;;  %3214 = vst [vmem:[%s5901_s18] sm:$0xff] %v3184_v21  ;;  %v3195_v6 = vadd.f32 %v3957_v53, %v3336_v26 }
0x124f   :  { %v3186_v25 = vpop.f32.mrf.mxu1 }
0x1250   :  { %v3059_v51 = vadd.f32 %v3058_v59, %v2042_v54  ;;  %3217 = vst [vmem:[%s5901_s18 + $0x18] sm:$0xff] %v3195_v6  ;;  %v3187_v55 = vadd.f32 %v3336_v26, %v3186_v25 }
0x1252   :  { %4242 = vtanh.f32 %v3059_v51  ;;  %3215 = vst [vmem:[%s5901_s18 + $0x8] sm:$0xff] %v3187_v55 }
0x1253   :  { %4244 = vrcp.f32 %v3054_v3 }
0x125f   :  { %v4243_v0 = vpop.eup %4242 }
0x1260   :  { %v3061_v4 = vsub.f32 %v5840_v12, %v4243_v0  ;;  %v4245_v57 = vpop.eup %4244 }
0x1262   :  { %v3062_v47 = vmul.f32 %v4245_v57, %v3061_v4 }
0x1264   :  { %v3063_v58 = vadd.f32 %v4243_v0, %v3062_v47 }
0x1266   :  { %v3093_v61 = vpack.c.bf16 %v3063_v58, %v5840_v12 }
0x1268   :  { %3959 = vmatmul.mubr.bf16.gmra.mxu1 %v3093_v61 }
0x1328   :  { %v3960_v17 = vpop.f32.mrf.mxu1 }
0x1329   :  { %v3208_v44 = vadd.f32 %v3960_v17, %v3336_v26 }
0x132a   :  { %v3199_v63 = vpop.f32.mrf.mxu1 }
0x132b   :  { %3220 = vst [vmem:[%s5901_s18 + $0x30] sm:$0xff] %v3208_v44  ;;  %v3200_v24 = vadd.f32 %v3336_v26, %v3199_v63 }
0x132c   :  { %v3961_v38 = vpop.f32.mrf.mxu1 }
0x132d   :  { %3218 = vst [vmem:[%s5901_s18 + $0x20] sm:$0xff] %v3200_v24  ;;  %v3211_v35 = vadd.f32 %v3961_v38, %v3336_v26 }
0x132e   :  { %v3202_v9 = vpop.f32.mrf.mxu1 }
0x132f   :  { %3221 = vst [vmem:[%s5901_s18 + $0x38] sm:$0xff] %v3211_v35  ;;  %v3203_v22 = vadd.f32 %v3336_v26, %v3202_v9 }
0x1331   :  { %3219 = vst [vmem:[%s5901_s18 + $0x28] sm:$0xff] %v3203_v22 }
0x1332   :  { %3234 = vsyncpa [#allocation5], 1 }
0x1333   :  { %3235 = vsyncpa [#allocation7], 1 }
0x1334   :  { %3236 = vsyncpa [#allocation10], 1 }
0x1335   :  { %3237 = vsyncpa [#allocation13], 1 }
0x1336   :  { %3238 = vsyncpa [#allocation16], 1 }
0x1337   :  { %3239 = vsyncpa [#allocation19], 1 }
0x1338   :  { %3240 = vsyncpa [#allocation22], 1 }

</bundles_post_ra>
